<compile_context>
chip_gen: v6e
topology: v6e:2x2x1
jax: 0.10.0
libtpu: 0.0.40
codegen_flags: <defaults>
</compile_context>

<pallas_src>
import jax
import jax.numpy as jnp
from jax.experimental import pallas as pl
from jax.experimental.pallas import tpu as pltpu

IMAGE_SIZE = 64
PATCH = 16
IN_CH = 3
PGRID = IMAGE_SIZE // PATCH           # 4 patches per side
NUM_PATCHES = PGRID * PGRID           # 16
SEQ = NUM_PATCHES + 1                 # 17 (CLS + patches)
SEQP = 24                             # SEQ padded to a sublane multiple of 8
HIDDEN = 128
HEADS = 4
HEAD_DIM = HIDDEN // HEADS            # 32
MLP = 256
LAYERS = 10
NUM_CLASSES = 3
CLS_PAD = 128                         # lane-dense classifier output width
PATCH_FLAT = PATCH * PATCH            # 256 grayscale patch vector
EPS_VIT = 1e-12                       # ViT layer_norm_eps
EPS_HEAD = 1e-5                       # torch.nn.LayerNorm default (classifier head)
BLOCK_BATCH = 8                       # samples per grid step (TB)
NEG_INF = -1e30


# ---------------------------------------------------------------------------
# in-kernel helpers
# ---------------------------------------------------------------------------
def _layernorm(x, g, b, eps):
    # two-pass (x - mu)^2 variance: robust against cancellation.
    mu = jnp.mean(x, axis=-1, keepdims=True)
    xc = x - mu
    var = jnp.mean(xc * xc, axis=-1, keepdims=True)
    return xc * jax.lax.rsqrt(var + eps) * g + b


def _bf16(x):
    return x.astype(jnp.bfloat16)


def _dot(a, b):
    return jnp.dot(a, b, preferred_element_type=jnp.float32)


# ---------------------------------------------------------------------------
# The fused ViT kernel: grid = (num_batch_blocks,), layers looped in-kernel
# ---------------------------------------------------------------------------
def _make_kernel(tb):
    rows = tb * SEQP

    def kernel(patches_ref, patch_w_ref, cls_pos_ref,
               wqkv_ref, wo_ref, w1_ref, w2_ref,
               lnp_ref, bqkv_ref, b1_ref, bvec_ref,
               head_ln_ref, cls_w_ref, cls_b_ref,
               logits_ref, resid):
        # --- patch embedding + (CLS token + pos-embed + patch bias) table ---
        emb = _dot(patches_ref[...], patch_w_ref[...])           # (rows, H) f32
        table = cls_pos_ref[...]                                 # (SEQP, H) f32
        for s in range(tb):                                      # static unroll
            r0 = s * SEQP
            resid[r0:r0 + SEQP, :] = emb[r0:r0 + SEQP] + table

        # additive key mask: pad-token key columns (>= SEQ) get ~ -inf scores.
        col = jax.lax.broadcasted_iota(jnp.int32, (SEQP, SEQP), 1)
        kmask = jnp.where(col < SEQ, 0.0, NEG_INF).astype(jnp.float32)

        # --- encoder layers; weights are VMEM-resident, indexed by l --------
        def layer_body(l, carry):
            x = resid[...]                                       # (rows, H) f32
            lnp = lnp_ref[l]                                     # (4, H)  f32
            bvec = bvec_ref[l]                                   # (2, H)  f32

            # self-attention (layernorm_before); 1/sqrt(hd) folded into Wq/bq.
            h = _bf16(_layernorm(x, lnp[0:1], lnp[1:2], EPS_VIT))
            qkv = _bf16(_dot(h, wqkv_ref[l]) + bqkv_ref[l])      # (rows, 3H) bf16
            q = qkv[:, 0:HIDDEN]
            k = qkv[:, HIDDEN:2 * HIDDEN]
            v = qkv[:, 2 * HIDDEN:3 * HIDDEN]

            ctx_blocks = []
            for s in range(tb):                                  # static unroll
                r0 = s * SEQP
                qs = q[r0:r0 + SEQP]
                ks = k[r0:r0 + SEQP]
                vs = v[r0:r0 + SEQP]
                head_ctx = []
                for hd in range(HEADS):                          # static unroll
                    lo = hd * HEAD_DIM
                    qh = qs[:, lo:lo + HEAD_DIM]                 # (SEQP, 32) bf16
                    kh = ks[:, lo:lo + HEAD_DIM]
                    vh = vs[:, lo:lo + HEAD_DIM]
                    sc = jax.lax.dot_general(
                        qh, kh, (((1,), (1,)), ((), ())),
                        preferred_element_type=jnp.float32) + kmask
                    sc = sc - jnp.max(sc, axis=-1, keepdims=True)
                    p = jnp.exp(sc)
                    p = p / jnp.sum(p, axis=-1, keepdims=True)   # exact division
                    head_ctx.append(_bf16(_dot(_bf16(p), vh)))   # (SEQP, 32)
                ctx_blocks.append(jnp.concatenate(head_ctx, axis=1))   # (SEQP, H)
            ctx = jnp.concatenate(ctx_blocks, axis=0)            # (rows, H) bf16
            x = x + _dot(ctx, wo_ref[l]) + bvec[0:1]             # single Wo matmul

            # MLP (layernorm_after)
            h2 = _bf16(_layernorm(x, lnp[2:3], lnp[3:4], EPS_VIT))
            m = _dot(h2, w1_ref[l]) + b1_ref[l]                  # (rows, MLP) f32
            # TODO(synk): HF ViT uses exact (erf) GELU; tanh-approx GELU used for TPU lowering.
            m = jax.nn.gelu(m, approximate=True)
            x = x + _dot(_bf16(m), w2_ref[l]) + bvec[1:2]

            resid[...] = x
            return carry

        jax.lax.fori_loop(0, LAYERS, layer_body, jnp.float32(0.0))

        # --- final ViT layernorm + classifier (LayerNorm + Linear) on CLS ---
        hl = head_ln_ref[...]                                    # (4, H) f32
        cls_rows = [resid[s * SEQP:s * SEQP + 1, :] for s in range(tb)]
        cls = jnp.concatenate(cls_rows, axis=0)                  # (tb, H) f32
        t = _layernorm(cls, hl[0:1], hl[1:2], EPS_VIT)           # ViT final LN
        t = _layernorm(t, hl[2:3], hl[3:4], EPS_HEAD)            # classifier LN
        logits_ref[...] = _dot(_bf16(t), cls_w_ref[...]) + cls_b_ref[...]

    return kernel


def fused_vit(patch_tokens, params, tb, grid_b):
    rows = tb * SEQP

    def fixed(shape):
        n = len(shape)
        return pl.BlockSpec(shape, lambda i, _n=n: (0,) * _n)

    in_specs = [
        pl.BlockSpec((rows, PATCH_FLAT), lambda i: (i, 0)),      # patch tokens (bf16)
        fixed((PATCH_FLAT, HIDDEN)),                             # patch proj (gray-folded, bf16)
        fixed((SEQP, HIDDEN)),                                   # cls + pos-embed + bias table
        fixed((LAYERS, HIDDEN, 3 * HIDDEN)),                     # stacked Wqkv (bf16)
        fixed((LAYERS, HIDDEN, HIDDEN)),                         # stacked Wo   (bf16)
        fixed((LAYERS, HIDDEN, MLP)),                            # stacked W1   (bf16)
        fixed((LAYERS, MLP, HIDDEN)),                            # stacked W2   (bf16)
        fixed((LAYERS, 4, HIDDEN)),                              # ln1_g, ln1_b, ln2_g, ln2_b
        fixed((LAYERS, 1, 3 * HIDDEN)),                          # qkv bias (q pre-scaled)
        fixed((LAYERS, 1, MLP)),                                 # fc1 bias
        fixed((LAYERS, 2, HIDDEN)),                              # attn-out bias, fc2 bias
        fixed((4, HIDDEN)),                                      # vit-LN g/b, classifier-LN g/b
        fixed((HIDDEN, CLS_PAD)),                                # classifier weight (lane-padded)
        fixed((1, CLS_PAD)),                                     # classifier bias   (lane-padded)
    ]
    out_spec = pl.BlockSpec((tb, CLS_PAD), lambda i: (i, 0))

    return pl.pallas_call(
        _make_kernel(tb),
        out_shape=jax.ShapeDtypeStruct((grid_b * tb, CLS_PAD), jnp.float32),
        grid_spec=pltpu.PrefetchScalarGridSpec(
            num_scalar_prefetch=0,
            grid=(grid_b,),                                      # batch blocks only
            in_specs=in_specs,
            out_specs=out_spec,
            scratch_shapes=[pltpu.VMEM((rows, HIDDEN), jnp.float32)],  # residual
        ),
        compiler_params=pltpu.CompilerParams(
            dimension_semantics=("parallel",),
            vmem_limit_bytes=32 * 1024 * 1024,                   # ~6 MiB used; v7x guardrail
        ),
    )(patch_tokens, params["patch_w"], params["cls_pos"],
      params["wqkv"], params["wo"], params["w1"], params["w2"],
      params["lnp"], params["bqkv"], params["b1"], params["bvec"],
      params["head_ln"], params["cls_w"], params["cls_b"])


# ---------------------------------------------------------------------------
# Parameter init (deterministic, synthetic) — packed/folded for the kernel
# ---------------------------------------------------------------------------
def init_params(key):
    std = 0.02
    ks = iter(jax.random.split(key, 4 + LAYERS * 6))

    def nrm(shape):
        return (std * jax.random.normal(next(ks), shape)).astype(jnp.float32)

    def zeros(shape):
        return jnp.zeros(shape, jnp.float32)

    def ones(shape):
        return jnp.ones(shape, jnp.float32)

    scale = 1.0 / (HEAD_DIM ** 0.5)
    bf16 = jnp.bfloat16

    # Patch projection: synth the full RGB conv weight ((c, ph, pw) flattening),
    # then fold x.repeat(1, 3, 1, 1) analytically by summing the channel blocks.
    w_rgb = nrm((IN_CH * PATCH_FLAT, HIDDEN))                    # (768, 128)
    patch_w = (w_rgb[0:PATCH_FLAT]
               + w_rgb[PATCH_FLAT:2 * PATCH_FLAT]
               + w_rgb[2 * PATCH_FLAT:3 * PATCH_FLAT])           # (256, 128)
    patch_b = zeros((HIDDEN,))

    cls_token = nrm((1, HIDDEN))
    pos_embed = nrm((SEQ, HIDDEN))
    # row0 = cls + pos[0]; rows1..16 = pos + patch bias; rows 17..23 = 0 (pad).
    cls_pos = jnp.concatenate(
        [cls_token + pos_embed[:1],
         pos_embed[1:] + patch_b[None, :],
         jnp.zeros((SEQP - SEQ, HIDDEN), jnp.float32)], axis=0)  # (SEQP, H)

    wqkv, bqkv, wo, w1, w2, b1, bvec = [], [], [], [], [], [], []
    for _ in range(LAYERS):
        wq_, wk_, wv_ = nrm((HIDDEN, HIDDEN)), nrm((HIDDEN, HIDDEN)), nrm((HIDDEN, HIDDEN))
        bq_, bk_, bv_ = zeros((HIDDEN,)), zeros((HIDDEN,)), zeros((HIDDEN,))
        # fold 1/sqrt(head_dim) into the Q projection (weights AND bias).
        wqkv.append(jnp.concatenate([wq_ * scale, wk_, wv_], axis=1))
        bqkv.append(jnp.concatenate([bq_ * scale, bk_, bv_])[None, :])
        wo.append(nrm((HIDDEN, HIDDEN)))
        w1.append(nrm((HIDDEN, MLP)))
        w2.append(nrm((MLP, HIDDEN)))
        b1.append(zeros((1, MLP)))
        bvec.append(jnp.stack([zeros((HIDDEN,)), zeros((HIDDEN,))]))  # [attn-out b, fc2 b]

    lnp = jnp.stack([ones((LAYERS, HIDDEN)), zeros((LAYERS, HIDDEN)),
                     ones((LAYERS, HIDDEN)), zeros((LAYERS, HIDDEN))], axis=1)
    head_ln = jnp.stack([ones((HIDDEN,)), zeros((HIDDEN,)),
                         ones((HIDDEN,)), zeros((HIDDEN,))], axis=0)

    cls_w_small = nrm((HIDDEN, NUM_CLASSES))
    cls_w = jnp.zeros((HIDDEN, CLS_PAD), jnp.float32).at[:, :NUM_CLASSES].set(cls_w_small)

    return {
        "patch_w": patch_w.astype(bf16),                         # (256, 128)
        "cls_pos": cls_pos,                                      # (24, 128) f32
        "wqkv": jnp.stack(wqkv).astype(bf16),                    # (L, 128, 384)
        "bqkv": jnp.stack(bqkv),                                 # (L, 1, 384)
        "wo": jnp.stack(wo).astype(bf16),                        # (L, 128, 128)
        "w1": jnp.stack(w1).astype(bf16),                        # (L, 128, 256)
        "w2": jnp.stack(w2).astype(bf16),                        # (L, 256, 128)
        "b1": jnp.stack(b1),                                     # (L, 1, 256)
        "bvec": jnp.stack(bvec),                                 # (L, 2, 128)
        "lnp": lnp,                                              # (L, 4, 128)
        "head_ln": head_ln,                                      # (4, 128)
        "cls_w": cls_w.astype(bf16),                             # (128, 128)
        "cls_b": zeros((1, CLS_PAD)),                            # (1, 128)
    }


# ---------------------------------------------------------------------------
# Full forward
# ---------------------------------------------------------------------------
@jax.jit
def model_forward(x_gray, params):
    B = x_gray.shape[0]
    tb = B if B <= BLOCK_BATCH else BLOCK_BATCH                  # samples per grid step
    grid_b = -(-B // tb)
    b_pad = grid_b * tb

    # grayscale -> RGB repeat is folded into patch_w at init, so patches come
    # straight from the single gray channel; (ph, pw) ordering matches the
    # per-channel torch Conv2d weight flattening.
    p = x_gray.reshape(B, PGRID, PATCH, PGRID, PATCH)
    p = jnp.transpose(p, (0, 1, 3, 2, 4)).reshape(B, NUM_PATCHES, PATCH_FLAT)
    # prepend zero CLS row, pad tokens 17 -> 24 and batch -> b_pad; DMA in bf16.
    p = jnp.pad(p, ((0, b_pad - B), (1, SEQP - SEQ), (0, 0)))
    p = p.astype(jnp.bfloat16).reshape(b_pad * SEQP, PATCH_FLAT)

    logits_pad = fused_vit(p, params, tb, grid_b)                # (b_pad, 128)
    return logits_pad[:B, :NUM_CLASSES]                          # (B, 3)


if __name__ == "__main__":
    key = jax.random.PRNGKey(0)
    pkey, xkey = jax.random.split(key)
    params = init_params(pkey)

    x = jax.random.normal(xkey, (2, 1, IMAGE_SIZE, IMAGE_SIZE), dtype=jnp.float32)

    logits = model_forward(x, params)
    jax.block_until_ready(logits)
    assert logits.shape == (2, NUM_CLASSES), logits.shape
    assert bool(jnp.all(jnp.isfinite(logits)))
    print("KERNEL_OK")
</pallas_src>

<mosaic_0001>
module attributes {stable_mosaic.version = 11 : i64} {
  func.func @kernel(%arg0: i32, %arg1: memref<48x256xbf16, #tpu.memory_space<vmem>>, %arg2: memref<256x128xbf16, #tpu.memory_space<vmem>>, %arg3: memref<24x128xf32, #tpu.memory_space<vmem>>, %arg4: memref<10x128x384xbf16, #tpu.memory_space<vmem>>, %arg5: memref<10x128x128xbf16, #tpu.memory_space<vmem>>, %arg6: memref<10x128x256xbf16, #tpu.memory_space<vmem>>, %arg7: memref<10x256x128xbf16, #tpu.memory_space<vmem>>, %arg8: memref<10x4x128xf32, #tpu.memory_space<vmem>>, %arg9: memref<10x1x384xf32, #tpu.memory_space<vmem>>, %arg10: memref<10x1x256xf32, #tpu.memory_space<vmem>>, %arg11: memref<10x2x128xf32, #tpu.memory_space<vmem>>, %arg12: memref<4x128xf32, #tpu.memory_space<vmem>>, %arg13: memref<128x128xbf16, #tpu.memory_space<vmem>>, %arg14: memref<1x128xf32, #tpu.memory_space<vmem>>, %arg15: memref<2x128xf32, #tpu.memory_space<vmem>>, %arg16: memref<48x128xf32, #tpu.memory_space<vmem>>) attributes {dimension_semantics = [#tpu.dimension_semantics<parallel>], iteration_bounds = array<i64: 1>, scalar_prefetch = 0 : i64, scratch_operands = 1 : i64, tpu.core_type = #tpu.core_type<tc>, window_params = [{transform_indices = @transform_0, window_bounds = array<i64: 48, 256>}, {pipeline_mode = #tpu.pipeline_mode<synchronous>, transform_indices = @transform_1, window_bounds = array<i64: 256, 128>}, {pipeline_mode = #tpu.pipeline_mode<synchronous>, transform_indices = @transform_2, window_bounds = array<i64: 24, 128>}, {pipeline_mode = #tpu.pipeline_mode<synchronous>, transform_indices = @transform_3, window_bounds = array<i64: 10, 128, 384>}, {pipeline_mode = #tpu.pipeline_mode<synchronous>, transform_indices = @transform_4, window_bounds = array<i64: 10, 128, 128>}, {pipeline_mode = #tpu.pipeline_mode<synchronous>, transform_indices = @transform_5, window_bounds = array<i64: 10, 128, 256>}, {pipeline_mode = #tpu.pipeline_mode<synchronous>, transform_indices = @transform_6, window_bounds = array<i64: 10, 256, 128>}, {pipeline_mode = #tpu.pipeline_mode<synchronous>, transform_indices = @transform_7, window_bounds = array<i64: 10, 4, 128>}, {pipeline_mode = #tpu.pipeline_mode<synchronous>, transform_indices = @transform_8, window_bounds = array<i64: 10, 1, 384>}, {pipeline_mode = #tpu.pipeline_mode<synchronous>, transform_indices = @transform_9, window_bounds = array<i64: 10, 1, 256>}, {pipeline_mode = #tpu.pipeline_mode<synchronous>, transform_indices = @transform_10, window_bounds = array<i64: 10, 2, 128>}, {pipeline_mode = #tpu.pipeline_mode<synchronous>, transform_indices = @transform_11, window_bounds = array<i64: 4, 128>}, {pipeline_mode = #tpu.pipeline_mode<synchronous>, transform_indices = @transform_12, window_bounds = array<i64: 128, 128>}, {pipeline_mode = #tpu.pipeline_mode<synchronous>, transform_indices = @transform_13, window_bounds = array<i64: 1, 128>}, {transform_indices = @transform_14, window_bounds = array<i64: 2, 128>}]} {
    %c0 = arith.constant 0 : index
    %c0_0 = arith.constant 0 : index
    %0 = vector.load %arg1[%c0, %c0_0] : memref<48x256xbf16, #tpu.memory_space<vmem>>, vector<48x256xbf16>
    %c0_1 = arith.constant 0 : index
    %c0_2 = arith.constant 0 : index
    %1 = vector.load %arg2[%c0_1, %c0_2] : memref<256x128xbf16, #tpu.memory_space<vmem>>, vector<256x128xbf16>
    %cst = arith.constant dense<0.000000e+00> : vector<48x128xf32>
    %2 = tpu.matmul %0, %1, %cst {dimension_numbers = #tpu.dot_dimension_numbers<[1], [0], [0], [1], [0, 0, 1, 1], [], []>} : vector<48x256xbf16>, vector<256x128xbf16>, vector<48x128xf32> -> vector<48x128xf32>
    %c0_3 = arith.constant 0 : index
    %c0_4 = arith.constant 0 : index
    %3 = vector.load %arg3[%c0_3, %c0_4] : memref<24x128xf32, #tpu.memory_space<vmem>>, vector<24x128xf32>
    %4 = vector.extract_strided_slice %2 {offsets = [0, 0], sizes = [24, 128], strides = [1, 1]} : vector<48x128xf32> to vector<24x128xf32>
    %5 = arith.addf %4, %3 : vector<24x128xf32>
    %c0_5 = arith.constant 0 : index
    %c0_6 = arith.constant 0 : index
    %6 = vector.load %arg16[%c0_5, %c0_6] : memref<48x128xf32, #tpu.memory_space<vmem>>, vector<24x128xf32>
    tpu.vector_store %arg16[%c0_5, %c0_6], %5 {strides = array<i32>} : memref<48x128xf32, #tpu.memory_space<vmem>>, vector<24x128xf32>,
    %7 = vector.extract_strided_slice %2 {offsets = [24, 0], sizes = [24, 128], strides = [1, 1]} : vector<48x128xf32> to vector<24x128xf32>
    %8 = arith.addf %7, %3 : vector<24x128xf32>
    %c24 = arith.constant 24 : index
    %c0_7 = arith.constant 0 : index
    %9 = vector.load %arg16[%c24, %c0_7] : memref<48x128xf32, #tpu.memory_space<vmem>>, vector<24x128xf32>
    tpu.vector_store %arg16[%c24, %c0_7], %8 {strides = array<i32>} : memref<48x128xf32, #tpu.memory_space<vmem>>, vector<24x128xf32>,
    %10 = tpu.iota {dimensions = array<i32: 1>} : vector<24x24xi32>
    %c17_i32 = arith.constant 17 : i32
    %11 = vector.broadcast %c17_i32 : i32 to vector<24x24xi32>
    %12 = arith.cmpi slt, %10, %11 : vector<24x24xi32>
    %cst_8 = arith.constant 0.000000e+00 : f32
    %cst_9 = arith.constant -1.000000e+30 : f32
    %13 = vector.broadcast %cst_8 : f32 to vector<24x24xf32>
    %14 = vector.broadcast %cst_9 : f32 to vector<24x24xf32>
    %15 = arith.select %12, %13, %14 : vector<24x24xi1>, vector<24x24xf32>
    %c0_i32 = arith.constant 0 : i32
    %c10_i32 = arith.constant 10 : i32
    %16 = arith.addi %c0_i32, %c10_i32 : i32
    %c1_i32 = arith.constant 1 : i32
    scf.for %arg17 = %c0_i32 to %16 step %c1_i32  : i32 {
      %c0_34 = arith.constant 0 : index
      %c0_35 = arith.constant 0 : index
      %72 = vector.load %arg16[%c0_34, %c0_35] : memref<48x128xf32, #tpu.memory_space<vmem>>, vector<48x128xf32>
      %73 = arith.index_cast %arg17 : i32 to index
      %c0_36 = arith.constant 0 : index
      %c0_37 = arith.constant 0 : index
      %74 = vector.load %arg8[%73, %c0_36, %c0_37] : memref<10x4x128xf32, #tpu.memory_space<vmem>>, vector<1x4x128xf32>
      %75 = vector.shape_cast %74 : vector<1x4x128xf32> to vector<4x128xf32>
      %76 = arith.index_cast %arg17 : i32 to index
      %c0_38 = arith.constant 0 : index
      %c0_39 = arith.constant 0 : index
      %77 = vector.load %arg11[%76, %c0_38, %c0_39] : memref<10x2x128xf32, #tpu.memory_space<vmem>>, vector<1x2x128xf32>
      %78 = vector.shape_cast %77 : vector<1x2x128xf32> to vector<2x128xf32>
      %79 = vector.extract_strided_slice %75 {offsets = [0, 0], sizes = [1, 128], strides = [1, 1]} : vector<4x128xf32> to vector<1x128xf32>
      %80 = vector.extract_strided_slice %75 {offsets = [1, 0], sizes = [1, 128], strides = [1, 1]} : vector<4x128xf32> to vector<1x128xf32>
      %cst_40 = arith.constant dense<0.000000e+00> : vector<48xf32>
      %81 = vector.multi_reduction <add>, %72, %cst_40 [1] : vector<48x128xf32> to vector<48xf32>
      %82 = vector.shape_cast %81 : vector<48xf32> to vector<48x1xf32>
      %cst_41 = arith.constant 1.280000e+02 : f32
      %83 = vector.broadcast %cst_41 : f32 to vector<48x1xf32>
      %84 = arith.divf %82, %83 : vector<48x1xf32>
      %85 = vector.broadcast %84 : vector<48x1xf32> to vector<48x128xf32>
      %86 = arith.subf %72, %85 : vector<48x128xf32>
      %87 = arith.mulf %86, %86 : vector<48x128xf32>
      %cst_42 = arith.constant dense<0.000000e+00> : vector<48xf32>
      %88 = vector.multi_reduction <add>, %87, %cst_42 [1] : vector<48x128xf32> to vector<48xf32>
      %89 = vector.shape_cast %88 : vector<48xf32> to vector<48x1xf32>
      %cst_43 = arith.constant 1.280000e+02 : f32
      %90 = vector.broadcast %cst_43 : f32 to vector<48x1xf32>
      %91 = arith.divf %89, %90 : vector<48x1xf32>
      %cst_44 = arith.constant 9.99999996E-13 : f32
      %92 = vector.broadcast %cst_44 : f32 to vector<48x1xf32>
      %93 = arith.addf %91, %92 : vector<48x1xf32>
      %94 = math.rsqrt %93 : vector<48x1xf32>
      %95 = vector.broadcast %94 : vector<48x1xf32> to vector<48x128xf32>
      %96 = arith.mulf %86, %95 : vector<48x128xf32>
      %97 = vector.broadcast %79 : vector<1x128xf32> to vector<48x128xf32>
      %98 = arith.mulf %96, %97 : vector<48x128xf32>
      %99 = vector.broadcast %80 : vector<1x128xf32> to vector<48x128xf32>
      %100 = arith.addf %98, %99 : vector<48x128xf32>
      %101 = arith.truncf %100 : vector<48x128xf32> to vector<48x128xbf16>
      %102 = arith.index_cast %arg17 : i32 to index
      %c0_45 = arith.constant 0 : index
      %c0_46 = arith.constant 0 : index
      %103 = vector.load %arg4[%102, %c0_45, %c0_46] : memref<10x128x384xbf16, #tpu.memory_space<vmem>>, vector<1x128x384xbf16>
      %104 = vector.shape_cast %103 : vector<1x128x384xbf16> to vector<128x384xbf16>
      %cst_47 = arith.constant dense<0.000000e+00> : vector<48x384xf32>
      %105 = tpu.matmul %101, %104, %cst_47 {dimension_numbers = #tpu.dot_dimension_numbers<[1], [0], [0], [1], [0, 0, 1, 1], [], []>} : vector<48x128xbf16>, vector<128x384xbf16>, vector<48x384xf32> -> vector<48x384xf32>
      %106 = arith.index_cast %arg17 : i32 to index
      %c0_48 = arith.constant 0 : index
      %c0_49 = arith.constant 0 : index
      %107 = vector.load %arg9[%106, %c0_48, %c0_49] : memref<10x1x384xf32, #tpu.memory_space<vmem>>, vector<1x1x384xf32>
      %108 = vector.shape_cast %107 : vector<1x1x384xf32> to vector<1x384xf32>
      %109 = vector.broadcast %108 : vector<1x384xf32> to vector<48x384xf32>
      %110 = arith.addf %105, %109 : vector<48x384xf32>
      %111 = arith.truncf %110 : vector<48x384xf32> to vector<48x384xbf16>
      %112 = vector.extract_strided_slice %111 {offsets = [0, 0], sizes = [48, 128], strides = [1, 1]} : vector<48x384xbf16> to vector<48x128xbf16>
      %113 = vector.extract_strided_slice %111 {offsets = [0, 128], sizes = [48, 128], strides = [1, 1]} : vector<48x384xbf16> to vector<48x128xbf16>
      %114 = vector.extract_strided_slice %111 {offsets = [0, 256], sizes = [48, 128], strides = [1, 1]} : vector<48x384xbf16> to vector<48x128xbf16>
      %115 = vector.extract_strided_slice %112 {offsets = [0, 0], sizes = [24, 128], strides = [1, 1]} : vector<48x128xbf16> to vector<24x128xbf16>
      %116 = vector.extract_strided_slice %113 {offsets = [0, 0], sizes = [24, 128], strides = [1, 1]} : vector<48x128xbf16> to vector<24x128xbf16>
      %117 = vector.extract_strided_slice %114 {offsets = [0, 0], sizes = [24, 128], strides = [1, 1]} : vector<48x128xbf16> to vector<24x128xbf16>
      %118 = vector.extract_strided_slice %115 {offsets = [0, 0], sizes = [24, 32], strides = [1, 1]} : vector<24x128xbf16> to vector<24x32xbf16>
      %119 = vector.extract_strided_slice %116 {offsets = [0, 0], sizes = [24, 32], strides = [1, 1]} : vector<24x128xbf16> to vector<24x32xbf16>
      %120 = vector.extract_strided_slice %117 {offsets = [0, 0], sizes = [24, 32], strides = [1, 1]} : vector<24x128xbf16> to vector<24x32xbf16>
      %cst_50 = arith.constant dense<0.000000e+00> : vector<24x24xf32>
      %121 = tpu.matmul %118, %119, %cst_50 {dimension_numbers = #tpu.dot_dimension_numbers<[1], [1], [0], [0], [0, 0, 1, 0], [], []>} : vector<24x32xbf16>, vector<24x32xbf16>, vector<24x24xf32> -> vector<24x24xf32>
      %122 = arith.addf %121, %15 : vector<24x24xf32>
      %cst_51 = arith.constant dense<0xFF800000> : vector<24xf32>
      %123 = vector.multi_reduction <maximumf>, %122, %cst_51 [1] : vector<24x24xf32> to vector<24xf32>
      %124 = vector.shape_cast %123 : vector<24xf32> to vector<24x1xf32>
      %125 = vector.broadcast %124 : vector<24x1xf32> to vector<24x24xf32>
      %126 = arith.subf %122, %125 : vector<24x24xf32>
      %127 = math.exp %126 : vector<24x24xf32>
      %cst_52 = arith.constant dense<0.000000e+00> : vector<24xf32>
      %128 = vector.multi_reduction <add>, %127, %cst_52 [1] : vector<24x24xf32> to vector<24xf32>
      %129 = vector.shape_cast %128 : vector<24xf32> to vector<24x1xf32>
      %130 = vector.broadcast %129 : vector<24x1xf32> to vector<24x24xf32>
      %131 = arith.divf %127, %130 : vector<24x24xf32>
      %132 = arith.truncf %131 : vector<24x24xf32> to vector<24x24xbf16>
      %cst_53 = arith.constant dense<0.000000e+00> : vector<24x32xf32>
      %133 = tpu.matmul %132, %120, %cst_53 {dimension_numbers = #tpu.dot_dimension_numbers<[1], [0], [0], [1], [0, 0, 1, 1], [], []>} : vector<24x24xbf16>, vector<24x32xbf16>, vector<24x32xf32> -> vector<24x32xf32>
      %134 = arith.truncf %133 : vector<24x32xf32> to vector<24x32xbf16>
      %135 = vector.extract_strided_slice %115 {offsets = [0, 32], sizes = [24, 32], strides = [1, 1]} : vector<24x128xbf16> to vector<24x32xbf16>
      %136 = vector.extract_strided_slice %116 {offsets = [0, 32], sizes = [24, 32], strides = [1, 1]} : vector<24x128xbf16> to vector<24x32xbf16>
      %137 = vector.extract_strided_slice %117 {offsets = [0, 32], sizes = [24, 32], strides = [1, 1]} : vector<24x128xbf16> to vector<24x32xbf16>
      %cst_54 = arith.constant dense<0.000000e+00> : vector<24x24xf32>
      %138 = tpu.matmul %135, %136, %cst_54 {dimension_numbers = #tpu.dot_dimension_numbers<[1], [1], [0], [0], [0, 0, 1, 0], [], []>} : vector<24x32xbf16>, vector<24x32xbf16>, vector<24x24xf32> -> vector<24x24xf32>
      %139 = arith.addf %138, %15 : vector<24x24xf32>
      %cst_55 = arith.constant dense<0xFF800000> : vector<24xf32>
      %140 = vector.multi_reduction <maximumf>, %139, %cst_55 [1] : vector<24x24xf32> to vector<24xf32>
      %141 = vector.shape_cast %140 : vector<24xf32> to vector<24x1xf32>
      %142 = vector.broadcast %141 : vector<24x1xf32> to vector<24x24xf32>
      %143 = arith.subf %139, %142 : vector<24x24xf32>
      %144 = math.exp %143 : vector<24x24xf32>
      %cst_56 = arith.constant dense<0.000000e+00> : vector<24xf32>
      %145 = vector.multi_reduction <add>, %144, %cst_56 [1] : vector<24x24xf32> to vector<24xf32>
      %146 = vector.shape_cast %145 : vector<24xf32> to vector<24x1xf32>
      %147 = vector.broadcast %146 : vector<24x1xf32> to vector<24x24xf32>
      %148 = arith.divf %144, %147 : vector<24x24xf32>
      %149 = arith.truncf %148 : vector<24x24xf32> to vector<24x24xbf16>
      %cst_57 = arith.constant dense<0.000000e+00> : vector<24x32xf32>
      %150 = tpu.matmul %149, %137, %cst_57 {dimension_numbers = #tpu.dot_dimension_numbers<[1], [0], [0], [1], [0, 0, 1, 1], [], []>} : vector<24x24xbf16>, vector<24x32xbf16>, vector<24x32xf32> -> vector<24x32xf32>
      %151 = arith.truncf %150 : vector<24x32xf32> to vector<24x32xbf16>
      %152 = vector.extract_strided_slice %115 {offsets = [0, 64], sizes = [24, 32], strides = [1, 1]} : vector<24x128xbf16> to vector<24x32xbf16>
      %153 = vector.extract_strided_slice %116 {offsets = [0, 64], sizes = [24, 32], strides = [1, 1]} : vector<24x128xbf16> to vector<24x32xbf16>
      %154 = vector.extract_strided_slice %117 {offsets = [0, 64], sizes = [24, 32], strides = [1, 1]} : vector<24x128xbf16> to vector<24x32xbf16>
      %cst_58 = arith.constant dense<0.000000e+00> : vector<24x24xf32>
      %155 = tpu.matmul %152, %153, %cst_58 {dimension_numbers = #tpu.dot_dimension_numbers<[1], [1], [0], [0], [0, 0, 1, 0], [], []>} : vector<24x32xbf16>, vector<24x32xbf16>, vector<24x24xf32> -> vector<24x24xf32>
      %156 = arith.addf %155, %15 : vector<24x24xf32>
      %cst_59 = arith.constant dense<0xFF800000> : vector<24xf32>
      %157 = vector.multi_reduction <maximumf>, %156, %cst_59 [1] : vector<24x24xf32> to vector<24xf32>
      %158 = vector.shape_cast %157 : vector<24xf32> to vector<24x1xf32>
      %159 = vector.broadcast %158 : vector<24x1xf32> to vector<24x24xf32>
      %160 = arith.subf %156, %159 : vector<24x24xf32>
      %161 = math.exp %160 : vector<24x24xf32>
      %cst_60 = arith.constant dense<0.000000e+00> : vector<24xf32>
      %162 = vector.multi_reduction <add>, %161, %cst_60 [1] : vector<24x24xf32> to vector<24xf32>
      %163 = vector.shape_cast %162 : vector<24xf32> to vector<24x1xf32>
      %164 = vector.broadcast %163 : vector<24x1xf32> to vector<24x24xf32>
      %165 = arith.divf %161, %164 : vector<24x24xf32>
      %166 = arith.truncf %165 : vector<24x24xf32> to vector<24x24xbf16>
      %cst_61 = arith.constant dense<0.000000e+00> : vector<24x32xf32>
      %167 = tpu.matmul %166, %154, %cst_61 {dimension_numbers = #tpu.dot_dimension_numbers<[1], [0], [0], [1], [0, 0, 1, 1], [], []>} : vector<24x24xbf16>, vector<24x32xbf16>, vector<24x32xf32> -> vector<24x32xf32>
      %168 = arith.truncf %167 : vector<24x32xf32> to vector<24x32xbf16>
      %169 = vector.extract_strided_slice %115 {offsets = [0, 96], sizes = [24, 32], strides = [1, 1]} : vector<24x128xbf16> to vector<24x32xbf16>
      %170 = vector.extract_strided_slice %116 {offsets = [0, 96], sizes = [24, 32], strides = [1, 1]} : vector<24x128xbf16> to vector<24x32xbf16>
      %171 = vector.extract_strided_slice %117 {offsets = [0, 96], sizes = [24, 32], strides = [1, 1]} : vector<24x128xbf16> to vector<24x32xbf16>
      %cst_62 = arith.constant dense<0.000000e+00> : vector<24x24xf32>
      %172 = tpu.matmul %169, %170, %cst_62 {dimension_numbers = #tpu.dot_dimension_numbers<[1], [1], [0], [0], [0, 0, 1, 0], [], []>} : vector<24x32xbf16>, vector<24x32xbf16>, vector<24x24xf32> -> vector<24x24xf32>
      %173 = arith.addf %172, %15 : vector<24x24xf32>
      %cst_63 = arith.constant dense<0xFF800000> : vector<24xf32>
      %174 = vector.multi_reduction <maximumf>, %173, %cst_63 [1] : vector<24x24xf32> to vector<24xf32>
      %175 = vector.shape_cast %174 : vector<24xf32> to vector<24x1xf32>
      %176 = vector.broadcast %175 : vector<24x1xf32> to vector<24x24xf32>
      %177 = arith.subf %173, %176 : vector<24x24xf32>
      %178 = math.exp %177 : vector<24x24xf32>
      %cst_64 = arith.constant dense<0.000000e+00> : vector<24xf32>
      %179 = vector.multi_reduction <add>, %178, %cst_64 [1] : vector<24x24xf32> to vector<24xf32>
      %180 = vector.shape_cast %179 : vector<24xf32> to vector<24x1xf32>
      %181 = vector.broadcast %180 : vector<24x1xf32> to vector<24x24xf32>
      %182 = arith.divf %178, %181 : vector<24x24xf32>
      %183 = arith.truncf %182 : vector<24x24xf32> to vector<24x24xbf16>
      %cst_65 = arith.constant dense<0.000000e+00> : vector<24x32xf32>
      %184 = tpu.matmul %183, %171, %cst_65 {dimension_numbers = #tpu.dot_dimension_numbers<[1], [0], [0], [1], [0, 0, 1, 1], [], []>} : vector<24x24xbf16>, vector<24x32xbf16>, vector<24x32xf32> -> vector<24x32xf32>
      %185 = arith.truncf %184 : vector<24x32xf32> to vector<24x32xbf16>
      %186 = tpu.concatenate %134, %151, %168, %185 in 1 : vector<24x32xbf16>, vector<24x32xbf16>, vector<24x32xbf16>, vector<24x32xbf16> -> vector<24x128xbf16>
      %187 = vector.extract_strided_slice %112 {offsets = [24, 0], sizes = [24, 128], strides = [1, 1]} : vector<48x128xbf16> to vector<24x128xbf16>
      %188 = vector.extract_strided_slice %113 {offsets = [24, 0], sizes = [24, 128], strides = [1, 1]} : vector<48x128xbf16> to vector<24x128xbf16>
      %189 = vector.extract_strided_slice %114 {offsets = [24, 0], sizes = [24, 128], strides = [1, 1]} : vector<48x128xbf16> to vector<24x128xbf16>
      %190 = vector.extract_strided_slice %187 {offsets = [0, 0], sizes = [24, 32], strides = [1, 1]} : vector<24x128xbf16> to vector<24x32xbf16>
      %191 = vector.extract_strided_slice %188 {offsets = [0, 0], sizes = [24, 32], strides = [1, 1]} : vector<24x128xbf16> to vector<24x32xbf16>
      %192 = vector.extract_strided_slice %189 {offsets = [0, 0], sizes = [24, 32], strides = [1, 1]} : vector<24x128xbf16> to vector<24x32xbf16>
      %cst_66 = arith.constant dense<0.000000e+00> : vector<24x24xf32>
      %193 = tpu.matmul %190, %191, %cst_66 {dimension_numbers = #tpu.dot_dimension_numbers<[1], [1], [0], [0], [0, 0, 1, 0], [], []>} : vector<24x32xbf16>, vector<24x32xbf16>, vector<24x24xf32> -> vector<24x24xf32>
      %194 = arith.addf %193, %15 : vector<24x24xf32>
      %cst_67 = arith.constant dense<0xFF800000> : vector<24xf32>
      %195 = vector.multi_reduction <maximumf>, %194, %cst_67 [1] : vector<24x24xf32> to vector<24xf32>
      %196 = vector.shape_cast %195 : vector<24xf32> to vector<24x1xf32>
      %197 = vector.broadcast %196 : vector<24x1xf32> to vector<24x24xf32>
      %198 = arith.subf %194, %197 : vector<24x24xf32>
      %199 = math.exp %198 : vector<24x24xf32>
      %cst_68 = arith.constant dense<0.000000e+00> : vector<24xf32>
      %200 = vector.multi_reduction <add>, %199, %cst_68 [1] : vector<24x24xf32> to vector<24xf32>
      %201 = vector.shape_cast %200 : vector<24xf32> to vector<24x1xf32>
      %202 = vector.broadcast %201 : vector<24x1xf32> to vector<24x24xf32>
      %203 = arith.divf %199, %202 : vector<24x24xf32>
      %204 = arith.truncf %203 : vector<24x24xf32> to vector<24x24xbf16>
      %cst_69 = arith.constant dense<0.000000e+00> : vector<24x32xf32>
      %205 = tpu.matmul %204, %192, %cst_69 {dimension_numbers = #tpu.dot_dimension_numbers<[1], [0], [0], [1], [0, 0, 1, 1], [], []>} : vector<24x24xbf16>, vector<24x32xbf16>, vector<24x32xf32> -> vector<24x32xf32>
      %206 = arith.truncf %205 : vector<24x32xf32> to vector<24x32xbf16>
      %207 = vector.extract_strided_slice %187 {offsets = [0, 32], sizes = [24, 32], strides = [1, 1]} : vector<24x128xbf16> to vector<24x32xbf16>
      %208 = vector.extract_strided_slice %188 {offsets = [0, 32], sizes = [24, 32], strides = [1, 1]} : vector<24x128xbf16> to vector<24x32xbf16>
      %209 = vector.extract_strided_slice %189 {offsets = [0, 32], sizes = [24, 32], strides = [1, 1]} : vector<24x128xbf16> to vector<24x32xbf16>
      %cst_70 = arith.constant dense<0.000000e+00> : vector<24x24xf32>
      %210 = tpu.matmul %207, %208, %cst_70 {dimension_numbers = #tpu.dot_dimension_numbers<[1], [1], [0], [0], [0, 0, 1, 0], [], []>} : vector<24x32xbf16>, vector<24x32xbf16>, vector<24x24xf32> -> vector<24x24xf32>
      %211 = arith.addf %210, %15 : vector<24x24xf32>
      %cst_71 = arith.constant dense<0xFF800000> : vector<24xf32>
      %212 = vector.multi_reduction <maximumf>, %211, %cst_71 [1] : vector<24x24xf32> to vector<24xf32>
      %213 = vector.shape_cast %212 : vector<24xf32> to vector<24x1xf32>
      %214 = vector.broadcast %213 : vector<24x1xf32> to vector<24x24xf32>
      %215 = arith.subf %211, %214 : vector<24x24xf32>
      %216 = math.exp %215 : vector<24x24xf32>
      %cst_72 = arith.constant dense<0.000000e+00> : vector<24xf32>
      %217 = vector.multi_reduction <add>, %216, %cst_72 [1] : vector<24x24xf32> to vector<24xf32>
      %218 = vector.shape_cast %217 : vector<24xf32> to vector<24x1xf32>
      %219 = vector.broadcast %218 : vector<24x1xf32> to vector<24x24xf32>
      %220 = arith.divf %216, %219 : vector<24x24xf32>
      %221 = arith.truncf %220 : vector<24x24xf32> to vector<24x24xbf16>
      %cst_73 = arith.constant dense<0.000000e+00> : vector<24x32xf32>
      %222 = tpu.matmul %221, %209, %cst_73 {dimension_numbers = #tpu.dot_dimension_numbers<[1], [0], [0], [1], [0, 0, 1, 1], [], []>} : vector<24x24xbf16>, vector<24x32xbf16>, vector<24x32xf32> -> vector<24x32xf32>
      %223 = arith.truncf %222 : vector<24x32xf32> to vector<24x32xbf16>
      %224 = vector.extract_strided_slice %187 {offsets = [0, 64], sizes = [24, 32], strides = [1, 1]} : vector<24x128xbf16> to vector<24x32xbf16>
      %225 = vector.extract_strided_slice %188 {offsets = [0, 64], sizes = [24, 32], strides = [1, 1]} : vector<24x128xbf16> to vector<24x32xbf16>
      %226 = vector.extract_strided_slice %189 {offsets = [0, 64], sizes = [24, 32], strides = [1, 1]} : vector<24x128xbf16> to vector<24x32xbf16>
      %cst_74 = arith.constant dense<0.000000e+00> : vector<24x24xf32>
      %227 = tpu.matmul %224, %225, %cst_74 {dimension_numbers = #tpu.dot_dimension_numbers<[1], [1], [0], [0], [0, 0, 1, 0], [], []>} : vector<24x32xbf16>, vector<24x32xbf16>, vector<24x24xf32> -> vector<24x24xf32>
      %228 = arith.addf %227, %15 : vector<24x24xf32>
      %cst_75 = arith.constant dense<0xFF800000> : vector<24xf32>
      %229 = vector.multi_reduction <maximumf>, %228, %cst_75 [1] : vector<24x24xf32> to vector<24xf32>
      %230 = vector.shape_cast %229 : vector<24xf32> to vector<24x1xf32>
      %231 = vector.broadcast %230 : vector<24x1xf32> to vector<24x24xf32>
      %232 = arith.subf %228, %231 : vector<24x24xf32>
      %233 = math.exp %232 : vector<24x24xf32>
      %cst_76 = arith.constant dense<0.000000e+00> : vector<24xf32>
      %234 = vector.multi_reduction <add>, %233, %cst_76 [1] : vector<24x24xf32> to vector<24xf32>
      %235 = vector.shape_cast %234 : vector<24xf32> to vector<24x1xf32>
      %236 = vector.broadcast %235 : vector<24x1xf32> to vector<24x24xf32>
      %237 = arith.divf %233, %236 : vector<24x24xf32>
      %238 = arith.truncf %237 : vector<24x24xf32> to vector<24x24xbf16>
      %cst_77 = arith.constant dense<0.000000e+00> : vector<24x32xf32>
      %239 = tpu.matmul %238, %226, %cst_77 {dimension_numbers = #tpu.dot_dimension_numbers<[1], [0], [0], [1], [0, 0, 1, 1], [], []>} : vector<24x24xbf16>, vector<24x32xbf16>, vector<24x32xf32> -> vector<24x32xf32>
      %240 = arith.truncf %239 : vector<24x32xf32> to vector<24x32xbf16>
      %241 = vector.extract_strided_slice %187 {offsets = [0, 96], sizes = [24, 32], strides = [1, 1]} : vector<24x128xbf16> to vector<24x32xbf16>
      %242 = vector.extract_strided_slice %188 {offsets = [0, 96], sizes = [24, 32], strides = [1, 1]} : vector<24x128xbf16> to vector<24x32xbf16>
      %243 = vector.extract_strided_slice %189 {offsets = [0, 96], sizes = [24, 32], strides = [1, 1]} : vector<24x128xbf16> to vector<24x32xbf16>
      %cst_78 = arith.constant dense<0.000000e+00> : vector<24x24xf32>
      %244 = tpu.matmul %241, %242, %cst_78 {dimension_numbers = #tpu.dot_dimension_numbers<[1], [1], [0], [0], [0, 0, 1, 0], [], []>} : vector<24x32xbf16>, vector<24x32xbf16>, vector<24x24xf32> -> vector<24x24xf32>
      %245 = arith.addf %244, %15 : vector<24x24xf32>
      %cst_79 = arith.constant dense<0xFF800000> : vector<24xf32>
      %246 = vector.multi_reduction <maximumf>, %245, %cst_79 [1] : vector<24x24xf32> to vector<24xf32>
      %247 = vector.shape_cast %246 : vector<24xf32> to vector<24x1xf32>
      %248 = vector.broadcast %247 : vector<24x1xf32> to vector<24x24xf32>
      %249 = arith.subf %245, %248 : vector<24x24xf32>
      %250 = math.exp %249 : vector<24x24xf32>
      %cst_80 = arith.constant dense<0.000000e+00> : vector<24xf32>
      %251 = vector.multi_reduction <add>, %250, %cst_80 [1] : vector<24x24xf32> to vector<24xf32>
      %252 = vector.shape_cast %251 : vector<24xf32> to vector<24x1xf32>
      %253 = vector.broadcast %252 : vector<24x1xf32> to vector<24x24xf32>
      %254 = arith.divf %250, %253 : vector<24x24xf32>
      %255 = arith.truncf %254 : vector<24x24xf32> to vector<24x24xbf16>
      %cst_81 = arith.constant dense<0.000000e+00> : vector<24x32xf32>
      %256 = tpu.matmul %255, %243, %cst_81 {dimension_numbers = #tpu.dot_dimension_numbers<[1], [0], [0], [1], [0, 0, 1, 1], [], []>} : vector<24x24xbf16>, vector<24x32xbf16>, vector<24x32xf32> -> vector<24x32xf32>
      %257 = arith.truncf %256 : vector<24x32xf32> to vector<24x32xbf16>
      %258 = tpu.concatenate %206, %223, %240, %257 in 1 : vector<24x32xbf16>, vector<24x32xbf16>, vector<24x32xbf16>, vector<24x32xbf16> -> vector<24x128xbf16>
      %259 = tpu.concatenate %186, %258 in 0 : vector<24x128xbf16>, vector<24x128xbf16> -> vector<48x128xbf16>
      %260 = arith.index_cast %arg17 : i32 to index
      %c0_82 = arith.constant 0 : index
      %c0_83 = arith.constant 0 : index
      %261 = vector.load %arg5[%260, %c0_82, %c0_83] : memref<10x128x128xbf16, #tpu.memory_space<vmem>>, vector<1x128x128xbf16>
      %262 = vector.shape_cast %261 : vector<1x128x128xbf16> to vector<128x128xbf16>
      %cst_84 = arith.constant dense<0.000000e+00> : vector<48x128xf32>
      %263 = tpu.matmul %259, %262, %cst_84 {dimension_numbers = #tpu.dot_dimension_numbers<[1], [0], [0], [1], [0, 0, 1, 1], [], []>} : vector<48x128xbf16>, vector<128x128xbf16>, vector<48x128xf32> -> vector<48x128xf32>
      %264 = arith.addf %72, %263 : vector<48x128xf32>
      %265 = vector.extract_strided_slice %78 {offsets = [0, 0], sizes = [1, 128], strides = [1, 1]} : vector<2x128xf32> to vector<1x128xf32>
      %266 = vector.broadcast %265 : vector<1x128xf32> to vector<48x128xf32>
      %267 = arith.addf %264, %266 : vector<48x128xf32>
      %268 = vector.extract_strided_slice %75 {offsets = [2, 0], sizes = [1, 128], strides = [1, 1]} : vector<4x128xf32> to vector<1x128xf32>
      %269 = vector.extract_strided_slice %75 {offsets = [3, 0], sizes = [1, 128], strides = [1, 1]} : vector<4x128xf32> to vector<1x128xf32>
      %cst_85 = arith.constant dense<0.000000e+00> : vector<48xf32>
      %270 = vector.multi_reduction <add>, %267, %cst_85 [1] : vector<48x128xf32> to vector<48xf32>
      %271 = vector.shape_cast %270 : vector<48xf32> to vector<48x1xf32>
      %cst_86 = arith.constant 1.280000e+02 : f32
      %272 = vector.broadcast %cst_86 : f32 to vector<48x1xf32>
      %273 = arith.divf %271, %272 : vector<48x1xf32>
      %274 = vector.broadcast %273 : vector<48x1xf32> to vector<48x128xf32>
      %275 = arith.subf %267, %274 : vector<48x128xf32>
      %276 = arith.mulf %275, %275 : vector<48x128xf32>
      %cst_87 = arith.constant dense<0.000000e+00> : vector<48xf32>
      %277 = vector.multi_reduction <add>, %276, %cst_87 [1] : vector<48x128xf32> to vector<48xf32>
      %278 = vector.shape_cast %277 : vector<48xf32> to vector<48x1xf32>
      %cst_88 = arith.constant 1.280000e+02 : f32
      %279 = vector.broadcast %cst_88 : f32 to vector<48x1xf32>
      %280 = arith.divf %278, %279 : vector<48x1xf32>
      %cst_89 = arith.constant 9.99999996E-13 : f32
      %281 = vector.broadcast %cst_89 : f32 to vector<48x1xf32>
      %282 = arith.addf %280, %281 : vector<48x1xf32>
      %283 = math.rsqrt %282 : vector<48x1xf32>
      %284 = vector.broadcast %283 : vector<48x1xf32> to vector<48x128xf32>
      %285 = arith.mulf %275, %284 : vector<48x128xf32>
      %286 = vector.broadcast %268 : vector<1x128xf32> to vector<48x128xf32>
      %287 = arith.mulf %285, %286 : vector<48x128xf32>
      %288 = vector.broadcast %269 : vector<1x128xf32> to vector<48x128xf32>
      %289 = arith.addf %287, %288 : vector<48x128xf32>
      %290 = arith.truncf %289 : vector<48x128xf32> to vector<48x128xbf16>
      %291 = arith.index_cast %arg17 : i32 to index
      %c0_90 = arith.constant 0 : index
      %c0_91 = arith.constant 0 : index
      %292 = vector.load %arg6[%291, %c0_90, %c0_91] : memref<10x128x256xbf16, #tpu.memory_space<vmem>>, vector<1x128x256xbf16>
      %293 = vector.shape_cast %292 : vector<1x128x256xbf16> to vector<128x256xbf16>
      %cst_92 = arith.constant dense<0.000000e+00> : vector<48x256xf32>
      %294 = tpu.matmul %290, %293, %cst_92 {dimension_numbers = #tpu.dot_dimension_numbers<[1], [0], [0], [1], [0, 0, 1, 1], [], []>} : vector<48x128xbf16>, vector<128x256xbf16>, vector<48x256xf32> -> vector<48x256xf32>
      %295 = arith.index_cast %arg17 : i32 to index
      %c0_93 = arith.constant 0 : index
      %c0_94 = arith.constant 0 : index
      %296 = vector.load %arg10[%295, %c0_93, %c0_94] : memref<10x1x256xf32, #tpu.memory_space<vmem>>, vector<1x1x256xf32>
      %297 = vector.shape_cast %296 : vector<1x1x256xf32> to vector<1x256xf32>
      %298 = vector.broadcast %297 : vector<1x256xf32> to vector<48x256xf32>
      %299 = arith.addf %294, %298 : vector<48x256xf32>
      %300 = arith.mulf %299, %299 : vector<48x256xf32>
      %301 = arith.mulf %299, %300 : vector<48x256xf32>
      %cst_95 = arith.constant 4.471500e-02 : f32
      %302 = vector.broadcast %cst_95 : f32 to vector<48x256xf32>
      %303 = arith.mulf %302, %301 : vector<48x256xf32>
      %304 = arith.addf %299, %303 : vector<48x256xf32>
      %cst_96 = arith.constant 0.797884583 : f32
      %305 = vector.broadcast %cst_96 : f32 to vector<48x256xf32>
      %306 = arith.mulf %305, %304 : vector<48x256xf32>
      %307 = math.tanh %306 : vector<48x256xf32>
      %cst_97 = arith.constant 1.000000e+00 : f32
      %308 = vector.broadcast %cst_97 : f32 to vector<48x256xf32>
      %309 = arith.addf %308, %307 : vector<48x256xf32>
      %cst_98 = arith.constant 5.000000e-01 : f32
      %310 = vector.broadcast %cst_98 : f32 to vector<48x256xf32>
      %311 = arith.mulf %310, %309 : vector<48x256xf32>
      %312 = arith.mulf %299, %311 : vector<48x256xf32>
      %313 = arith.truncf %312 : vector<48x256xf32> to vector<48x256xbf16>
      %314 = arith.index_cast %arg17 : i32 to index
      %c0_99 = arith.constant 0 : index
      %c0_100 = arith.constant 0 : index
      %315 = vector.load %arg7[%314, %c0_99, %c0_100] : memref<10x256x128xbf16, #tpu.memory_space<vmem>>, vector<1x256x128xbf16>
      %316 = vector.shape_cast %315 : vector<1x256x128xbf16> to vector<256x128xbf16>
      %cst_101 = arith.constant dense<0.000000e+00> : vector<48x128xf32>
      %317 = tpu.matmul %313, %316, %cst_101 {dimension_numbers = #tpu.dot_dimension_numbers<[1], [0], [0], [1], [0, 0, 1, 1], [], []>} : vector<48x256xbf16>, vector<256x128xbf16>, vector<48x128xf32> -> vector<48x128xf32>
      %318 = arith.addf %267, %317 : vector<48x128xf32>
      %319 = vector.extract_strided_slice %78 {offsets = [1, 0], sizes = [1, 128], strides = [1, 1]} : vector<2x128xf32> to vector<1x128xf32>
      %320 = vector.broadcast %319 : vector<1x128xf32> to vector<48x128xf32>
      %321 = arith.addf %318, %320 : vector<48x128xf32>
      %c0_102 = arith.constant 0 : index
      %c0_103 = arith.constant 0 : index
      %322 = vector.load %arg16[%c0_102, %c0_103] : memref<48x128xf32, #tpu.memory_space<vmem>>, vector<48x128xf32>
      tpu.vector_store %arg16[%c0_102, %c0_103], %321 {strides = array<i32>} : memref<48x128xf32, #tpu.memory_space<vmem>>, vector<48x128xf32>,
    }
    %c10_i32_10 = arith.constant 10 : i32
    %c0_11 = arith.constant 0 : index
    %c0_12 = arith.constant 0 : index
    %17 = vector.load %arg12[%c0_11, %c0_12] : memref<4x128xf32, #tpu.memory_space<vmem>>, vector<4x128xf32>
    %c0_13 = arith.constant 0 : index
    %c0_14 = arith.constant 0 : index
    %18 = vector.load %arg16[%c0_13, %c0_14] : memref<48x128xf32, #tpu.memory_space<vmem>>, vector<1x128xf32>
    %c24_15 = arith.constant 24 : index
    %c0_16 = arith.constant 0 : index
    %19 = vector.load %arg16[%c24_15, %c0_16] : memref<48x128xf32, #tpu.memory_space<vmem>>, vector<1x128xf32>
    %20 = tpu.concatenate %18, %19 in 0 : vector<1x128xf32>, vector<1x128xf32> -> vector<2x128xf32>
    %21 = vector.extract_strided_slice %17 {offsets = [0, 0], sizes = [1, 128], strides = [1, 1]} : vector<4x128xf32> to vector<1x128xf32>
    %22 = vector.extract_strided_slice %17 {offsets = [1, 0], sizes = [1, 128], strides = [1, 1]} : vector<4x128xf32> to vector<1x128xf32>
    %cst_17 = arith.constant dense<0.000000e+00> : vector<2xf32>
    %23 = vector.multi_reduction <add>, %20, %cst_17 [1] : vector<2x128xf32> to vector<2xf32>
    %24 = vector.shape_cast %23 : vector<2xf32> to vector<2x1xf32>
    %cst_18 = arith.constant 1.280000e+02 : f32
    %25 = vector.broadcast %cst_18 : f32 to vector<2x1xf32>
    %26 = arith.divf %24, %25 : vector<2x1xf32>
    %27 = vector.broadcast %26 : vector<2x1xf32> to vector<2x128xf32>
    %28 = arith.subf %20, %27 : vector<2x128xf32>
    %29 = arith.mulf %28, %28 : vector<2x128xf32>
    %cst_19 = arith.constant dense<0.000000e+00> : vector<2xf32>
    %30 = vector.multi_reduction <add>, %29, %cst_19 [1] : vector<2x128xf32> to vector<2xf32>
    %31 = vector.shape_cast %30 : vector<2xf32> to vector<2x1xf32>
    %cst_20 = arith.constant 1.280000e+02 : f32
    %32 = vector.broadcast %cst_20 : f32 to vector<2x1xf32>
    %33 = arith.divf %31, %32 : vector<2x1xf32>
    %cst_21 = arith.constant 9.99999996E-13 : f32
    %34 = vector.broadcast %cst_21 : f32 to vector<2x1xf32>
    %35 = arith.addf %33, %34 : vector<2x1xf32>
    %36 = math.rsqrt %35 : vector<2x1xf32>
    %37 = vector.broadcast %36 : vector<2x1xf32> to vector<2x128xf32>
    %38 = arith.mulf %28, %37 : vector<2x128xf32>
    %39 = vector.broadcast %21 : vector<1x128xf32> to vector<2x128xf32>
    %40 = arith.mulf %38, %39 : vector<2x128xf32>
    %41 = vector.broadcast %22 : vector<1x128xf32> to vector<2x128xf32>
    %42 = arith.addf %40, %41 : vector<2x128xf32>
    %43 = vector.extract_strided_slice %17 {offsets = [2, 0], sizes = [1, 128], strides = [1, 1]} : vector<4x128xf32> to vector<1x128xf32>
    %44 = vector.extract_strided_slice %17 {offsets = [3, 0], sizes = [1, 128], strides = [1, 1]} : vector<4x128xf32> to vector<1x128xf32>
    %cst_22 = arith.constant dense<0.000000e+00> : vector<2xf32>
    %45 = vector.multi_reduction <add>, %42, %cst_22 [1] : vector<2x128xf32> to vector<2xf32>
    %46 = vector.shape_cast %45 : vector<2xf32> to vector<2x1xf32>
    %cst_23 = arith.constant 1.280000e+02 : f32
    %47 = vector.broadcast %cst_23 : f32 to vector<2x1xf32>
    %48 = arith.divf %46, %47 : vector<2x1xf32>
    %49 = vector.broadcast %48 : vector<2x1xf32> to vector<2x128xf32>
    %50 = arith.subf %42, %49 : vector<2x128xf32>
    %51 = arith.mulf %50, %50 : vector<2x128xf32>
    %cst_24 = arith.constant dense<0.000000e+00> : vector<2xf32>
    %52 = vector.multi_reduction <add>, %51, %cst_24 [1] : vector<2x128xf32> to vector<2xf32>
    %53 = vector.shape_cast %52 : vector<2xf32> to vector<2x1xf32>
    %cst_25 = arith.constant 1.280000e+02 : f32
    %54 = vector.broadcast %cst_25 : f32 to vector<2x1xf32>
    %55 = arith.divf %53, %54 : vector<2x1xf32>
    %cst_26 = arith.constant 9.99999974E-6 : f32
    %56 = vector.broadcast %cst_26 : f32 to vector<2x1xf32>
    %57 = arith.addf %55, %56 : vector<2x1xf32>
    %58 = math.rsqrt %57 : vector<2x1xf32>
    %59 = vector.broadcast %58 : vector<2x1xf32> to vector<2x128xf32>
    %60 = arith.mulf %50, %59 : vector<2x128xf32>
    %61 = vector.broadcast %43 : vector<1x128xf32> to vector<2x128xf32>
    %62 = arith.mulf %60, %61 : vector<2x128xf32>
    %63 = vector.broadcast %44 : vector<1x128xf32> to vector<2x128xf32>
    %64 = arith.addf %62, %63 : vector<2x128xf32>
    %65 = arith.truncf %64 : vector<2x128xf32> to vector<2x128xbf16>
    %c0_27 = arith.constant 0 : index
    %c0_28 = arith.constant 0 : index
    %66 = vector.load %arg13[%c0_27, %c0_28] : memref<128x128xbf16, #tpu.memory_space<vmem>>, vector<128x128xbf16>
    %cst_29 = arith.constant dense<0.000000e+00> : vector<2x128xf32>
    %67 = tpu.matmul %65, %66, %cst_29 {dimension_numbers = #tpu.dot_dimension_numbers<[1], [0], [0], [1], [0, 0, 1, 1], [], []>} : vector<2x128xbf16>, vector<128x128xbf16>, vector<2x128xf32> -> vector<2x128xf32>
    %c0_30 = arith.constant 0 : index
    %c0_31 = arith.constant 0 : index
    %68 = vector.load %arg14[%c0_30, %c0_31] : memref<1x128xf32, #tpu.memory_space<vmem>>, vector<1x128xf32>
    %69 = vector.broadcast %68 : vector<1x128xf32> to vector<2x128xf32>
    %70 = arith.addf %67, %69 : vector<2x128xf32>
    %c0_32 = arith.constant 0 : index
    %c0_33 = arith.constant 0 : index
    %71 = vector.load %arg15[%c0_32, %c0_33] : memref<2x128xf32, #tpu.memory_space<vmem>>, vector<2x128xf32>
    tpu.vector_store %arg15[%c0_32, %c0_33], %70 {strides = array<i32>} : memref<2x128xf32, #tpu.memory_space<vmem>>, vector<2x128xf32>,
    return
  }
  func.func @transform_0(%arg0: i32) -> (i32, i32) {
    %c0_i32 = arith.constant 0 : i32
    %c0_i32_0 = arith.constant 0 : i32
    return %arg0, %c0_i32 : i32, i32
  }
  func.func @transform_1(%arg0: i32) -> (i32, i32) {
    %c0_i32 = arith.constant 0 : i32
    %c0_i32_0 = arith.constant 0 : i32
    %c0_i32_1 = arith.constant 0 : i32
    return %c0_i32, %c0_i32_0 : i32, i32
  }
  func.func @transform_2(%arg0: i32) -> (i32, i32) {
    %c0_i32 = arith.constant 0 : i32
    %c0_i32_0 = arith.constant 0 : i32
    %c0_i32_1 = arith.constant 0 : i32
    return %c0_i32, %c0_i32_0 : i32, i32
  }
  func.func @transform_3(%arg0: i32) -> (i32, i32, i32) {
    %c0_i32 = arith.constant 0 : i32
    %c0_i32_0 = arith.constant 0 : i32
    %c0_i32_1 = arith.constant 0 : i32
    %c0_i32_2 = arith.constant 0 : i32
    return %c0_i32, %c0_i32_0, %c0_i32_1 : i32, i32, i32
  }
  func.func @transform_4(%arg0: i32) -> (i32, i32, i32) {
    %c0_i32 = arith.constant 0 : i32
    %c0_i32_0 = arith.constant 0 : i32
    %c0_i32_1 = arith.constant 0 : i32
    %c0_i32_2 = arith.constant 0 : i32
    return %c0_i32, %c0_i32_0, %c0_i32_1 : i32, i32, i32
  }
  func.func @transform_5(%arg0: i32) -> (i32, i32, i32) {
    %c0_i32 = arith.constant 0 : i32
    %c0_i32_0 = arith.constant 0 : i32
    %c0_i32_1 = arith.constant 0 : i32
    %c0_i32_2 = arith.constant 0 : i32
    return %c0_i32, %c0_i32_0, %c0_i32_1 : i32, i32, i32
  }
  func.func @transform_6(%arg0: i32) -> (i32, i32, i32) {
    %c0_i32 = arith.constant 0 : i32
    %c0_i32_0 = arith.constant 0 : i32
    %c0_i32_1 = arith.constant 0 : i32
    %c0_i32_2 = arith.constant 0 : i32
    return %c0_i32, %c0_i32_0, %c0_i32_1 : i32, i32, i32
  }
  func.func @transform_7(%arg0: i32) -> (i32, i32, i32) {
    %c0_i32 = arith.constant 0 : i32
    %c0_i32_0 = arith.constant 0 : i32
    %c0_i32_1 = arith.constant 0 : i32
    %c0_i32_2 = arith.constant 0 : i32
    return %c0_i32, %c0_i32_0, %c0_i32_1 : i32, i32, i32
  }
  func.func @transform_8(%arg0: i32) -> (i32, i32, i32) {
    %c0_i32 = arith.constant 0 : i32
    %c0_i32_0 = arith.constant 0 : i32
    %c0_i32_1 = arith.constant 0 : i32
    %c0_i32_2 = arith.constant 0 : i32
    return %c0_i32, %c0_i32_0, %c0_i32_1 : i32, i32, i32
  }
  func.func @transform_9(%arg0: i32) -> (i32, i32, i32) {
    %c0_i32 = arith.constant 0 : i32
    %c0_i32_0 = arith.constant 0 : i32
    %c0_i32_1 = arith.constant 0 : i32
    %c0_i32_2 = arith.constant 0 : i32
    return %c0_i32, %c0_i32_0, %c0_i32_1 : i32, i32, i32
  }
  func.func @transform_10(%arg0: i32) -> (i32, i32, i32) {
    %c0_i32 = arith.constant 0 : i32
    %c0_i32_0 = arith.constant 0 : i32
    %c0_i32_1 = arith.constant 0 : i32
    %c0_i32_2 = arith.constant 0 : i32
    return %c0_i32, %c0_i32_0, %c0_i32_1 : i32, i32, i32
  }
  func.func @transform_11(%arg0: i32) -> (i32, i32) {
    %c0_i32 = arith.constant 0 : i32
    %c0_i32_0 = arith.constant 0 : i32
    %c0_i32_1 = arith.constant 0 : i32
    return %c0_i32, %c0_i32_0 : i32, i32
  }
  func.func @transform_12(%arg0: i32) -> (i32, i32) {
    %c0_i32 = arith.constant 0 : i32
    %c0_i32_0 = arith.constant 0 : i32
    %c0_i32_1 = arith.constant 0 : i32
    return %c0_i32, %c0_i32_0 : i32, i32
  }
  func.func @transform_13(%arg0: i32) -> (i32, i32) {
    %c0_i32 = arith.constant 0 : i32
    %c0_i32_0 = arith.constant 0 : i32
    %c0_i32_1 = arith.constant 0 : i32
    return %c0_i32, %c0_i32_0 : i32, i32
  }
  func.func @transform_14(%arg0: i32) -> (i32, i32) {
    %c0_i32 = arith.constant 0 : i32
    %c0_i32_0 = arith.constant 0 : i32
    return %arg0, %c0_i32 : i32, i32
  }
}

</mosaic_0001>

<bundles_post_ra>
// kernel: model_forward.1
= control target key start
LH: loop header
LB: loop body
LE: loop exit
PB: predicated region body
PF: predicated region fallthrough
CT: control target
= control target key end

     0   :  { %19 = vsyncpa [#allocation4], 0  ;;  %s5229_s0 = inlined_call_operand.vmem [shape: bf16[48,256], index: 0, kind: input, shape index: {}]   ;;  %s5230_s1 = inlined_call_operand.vmem [shape: bf16[256,128], index: 1, kind: input, shape index: {}]   ;;  %s5231_s2 = inlined_call_operand.hbm [shape: f32[24,128], index: 2, kind: input, shape index: {}]   ;;  %s5232_s3 = inlined_call_operand.hbm [shape: bf16[10,128,384], index: 3, kind: input, shape index: {}]   ;;  %s5233_s4 = inlined_call_operand.hbm [shape: bf16[10,128,128], index: 4, kind: input, shape index: {}]   ;;  %s5234_s5 = inlined_call_operand.vmem [shape: bf16[10,128,256], index: 5, kind: input, shape index: {}]   ;;  %s5235_s6 = inlined_call_operand.hbm [shape: bf16[10,256,128], index: 6, kind: input, shape index: {}]   ;;  %s5236_s7 = inlined_call_operand.hbm [shape: f32[10,4,128], index: 7, kind: input, shape index: {}]   ;;  %s5237_s8 = inlined_call_operand.hbm [shape: f32[10,1,384], index: 8, kind: input, shape index: {}]   ;;  %s5238_s9 = inlined_call_operand.hbm [shape: f32[10,1,256], index: 9, kind: input, shape index: {}]   ;;  %s5239_s10 = inlined_call_operand.hbm [shape: f32[10,2,128], index: 10, kind: input, shape index: {}]   ;;  %s5240_s11 = inlined_call_operand.vmem [shape: f32[4,128], index: 11, kind: input, shape index: {}]   ;;  %s5241_s12 = inlined_call_operand.hbm [shape: bf16[128,128], index: 12, kind: input, shape index: {}]   ;;  %s5242_s13 = inlined_call_operand.vmem [shape: f32[1,128], index: 13, kind: input, shape index: {}]   ;;  %s5243_s14 = inlined_call_operand.hbm [shape: f32[2,128], index: 14, kind: output, shape index: {}]  }
   0x1   :  { %20 = vsyncpa [#allocation7], 0 }
   0x2   :  { %21 = vsyncpa [#allocation10], 0 }
   0x3   :  { %22 = vsyncpa [#allocation13], 0 }
   0x4   :  { %23 = vsyncpa [#allocation16], 0 }
   0x5   :  { %24 = vsyncpa [#allocation5], 0  ;;  %s4246_s29 = smov [#allocation6]  }
   0x6   :  { %s46_s30 = sshll.u32 %s4246_s29, 4  ;;  %s47_s30 = int_to_ptr.vmem [resolvable:$true] %s46_s30 }
   0x7   :  { %s4034_s15 = scalar_lea.vmem %s47_s30, 30720  ;;  %p4039_p1 = scmp.lt.s32.totalorder %s47_s30, %s47_s30 }
   0x8   :  { %p4035_p0 = scmp.ne.s32.totalorder %s47_s30, %s4034_s15  ;;  %p4040_p2 = scmp.lt.s32.totalorder %s4034_s15, %s4034_s15 }
   0xa   :  { %p4041_p3 = por %p4040_p2, %p4039_p1 }
   0xc   :  { %p4042_p4 = pnand %p4041_p3, %p4035_p0 }
   0xe   :  { %4045 = shalt.err (!%p4042_p4)
}
   0xf   :  { %s4247_s16 = smov 192   ;;  %s4248_s17 = smov 12  }
  0x10   :  { %52 = dma.hbm_to_vmem [thread:$0]  %s5232_s3, 30720, %s47_s30, [#allocation7], %s4247_s16, %s4247_s16, %s4248_s17  }
  0x11   :  { %s4249_s20 = smov [#allocation9]   ;;  %s4250_s22 = smov [#allocation12]  }
  0x12   :  { %s72_s21 = sshll.u32 %s4249_s20, 4  ;;  %s96_s23 = sshll.u32 %s4250_s22, 4  ;;  %s73_s21 = int_to_ptr.vmem [resolvable:$true] %s72_s21  ;;  %s97_s23 = int_to_ptr.vmem [resolvable:$true] %s96_s23 }
  0x13   :  { %s4054_s24 = scalar_lea.vmem %s73_s21, 20480  ;;  %p4059_p6 = scmp.lt.s32.totalorder %s73_s21, %s73_s21 }
  0x14   :  { %p4055_p5 = scmp.ne.s32.totalorder %s73_s21, %s4054_s24  ;;  %p4060_p7 = scmp.lt.s32.totalorder %s4054_s24, %s4054_s24 }
  0x16   :  { %p4061_p8 = por %p4060_p7, %p4059_p6 }
  0x18   :  { %p4062_p9 = pnand %p4061_p8, %p4055_p5 }
  0x1a   :  { %4065 = shalt.err (!%p4062_p9)
}
  0x1b   :  { %s4251_s25 = smov 64   ;;  %s4252_s26 = smov 4  }
  0x1c   :  { %78 = dma.hbm_to_vmem [thread:$0]  %s5235_s6, 20480, %s73_s21, [#allocation10], %s4251_s25, %s4251_s25, %s4252_s26  }
  0x1d   :  { %s4074_s3 = scalar_lea.vmem %s97_s23, 480  ;;  %p4079_p11 = scmp.lt.s32.totalorder %s97_s23, %s97_s23 }
  0x1e   :  { %p4075_p10 = scmp.ne.s32.totalorder %s97_s23, %s4074_s3  ;;  %p4080_p12 = scmp.lt.s32.totalorder %s4074_s3, %s4074_s3 }
  0x20   :  { %p4081_p13 = por %p4080_p12, %p4079_p11 }
  0x22   :  { %p4082_p0 = pnand %p4081_p13, %p4075_p10 }
  0x24   :  { %4085 = shalt.err (!%p4082_p0)
}
  0x25   :  { %s4253_s29 = smov 48   ;;  %s4254_s30 = smov 3  }
  0x26   :  { %102 = dma.hbm_to_vmem [thread:$0]  %s5237_s8, 480, %s97_s23, [#allocation13], %s4253_s29, %s4253_s29, %s4254_s30  }
  0x27   :  { %s4255_s17 = smov [#allocation15]   ;;  %s4256_s19 = smov [#allocation3]  }
  0x28   :  { %s120_s18 = sshll.u32 %s4255_s17, 4  ;;  %s34_s20 = sshll.u32 %s4256_s19, 4  ;;  %s121_s18 = int_to_ptr.vmem [resolvable:$true] %s120_s18  ;;  %s35_s20 = int_to_ptr.vmem [resolvable:$true] %s34_s20 }
  0x29   :  { %s4094_s6 = scalar_lea.vmem %s121_s18, 320  ;;  %p4099_p2 = scmp.lt.s32.totalorder %s121_s18, %s121_s18 }
  0x2a   :  { %p4095_p1 = scmp.ne.s32.totalorder %s121_s18, %s4094_s6  ;;  %p4100_p3 = scmp.lt.s32.totalorder %s4094_s6, %s4094_s6 }
  0x2c   :  { %p4101_p4 = por %p4100_p3, %p4099_p2 }
  0x2e   :  { %p4102_p5 = pnand %p4101_p4, %p4095_p1 }
  0x30   :  { %4105 = shalt.err (!%p4102_p5)
}
  0x31   :  { %s4257_s21 = smov 32   ;;  %s4258_s22 = smov 2  }
  0x32   :  { %126 = dma.hbm_to_vmem [thread:$0]  %s5239_s10, 320, %s121_s18, [#allocation16], %s4257_s21, %s4257_s21, %s4258_s22  }
  0x33   :  { %s4114_s8 = scalar_lea.vmem %s35_s20, 384  ;;  %p4119_p7 = scmp.lt.s32.totalorder %s35_s20, %s35_s20 }
  0x34   :  { %p4115_p6 = scmp.ne.s32.totalorder %s35_s20, %s4114_s8  ;;  %p4120_p8 = scmp.lt.s32.totalorder %s4114_s8, %s4114_s8 }
  0x36   :  { %p4121_p9 = por %p4120_p8, %p4119_p7 }
  0x38   :  { %p4122_p10 = pnand %p4121_p9, %p4115_p6 }
  0x3a   :  { %4125 = shalt.err (!%p4122_p10)
}
  0x3b   :  { %s4259_s23 = smov 128   ;;  %s4260_s28 = smov 8  }
  0x3c   :  { %40 = dma.hbm_to_vmem [thread:$0]  %s5231_s2, 384, %s35_s20, [#allocation4], %s4259_s23, %s4259_s23, %s4260_s28  }
  0x3d   :  { %s4261_s30 = smov [#allocation8]   ;;  %s4262_s16 = smov [#allocation11]  }
  0x3e   :  { %s58_s15 = sshll.u32 %s4261_s30, 4  ;;  %s84_s17 = sshll.u32 %s4262_s16, 4  ;;  %s59_s15 = int_to_ptr.vmem [resolvable:$true] %s58_s15  ;;  %s85_s17 = int_to_ptr.vmem [resolvable:$true] %s84_s17 }
  0x3f   :  { %s4134_s10 = scalar_lea.vmem %s59_s15, 10240  ;;  %p4139_p12 = scmp.lt.s32.totalorder %s59_s15, %s59_s15 }
  0x40   :  { %p4135_p11 = scmp.ne.s32.totalorder %s59_s15, %s4134_s10  ;;  %p4140_p13 = scmp.lt.s32.totalorder %s4134_s10, %s4134_s10 }
  0x42   :  { %p4141_p0 = por %p4140_p13, %p4139_p12 }
  0x44   :  { %p4142_p1 = pnand %p4141_p0, %p4135_p11 }
  0x46   :  { %4145 = shalt.err (!%p4142_p1)
}
  0x47   :  { %64 = dma.hbm_to_vmem [thread:$0]  %s5233_s4, 10240, %s59_s15, [#allocation7], %s4251_s25, %s4251_s25, %s4252_s26  }
  0x48   :  { %s4154_s2 = scalar_lea.vmem %s85_s17, 640  ;;  %p4159_p3 = scmp.lt.s32.totalorder %s85_s17, %s85_s17 }
  0x49   :  { %p4155_p2 = scmp.ne.s32.totalorder %s85_s17, %s4154_s2  ;;  %p4160_p4 = scmp.lt.s32.totalorder %s4154_s2, %s4154_s2 }
  0x4b   :  { %p4161_p5 = por %p4160_p4, %p4159_p3 }
  0x4d   :  { %p4162_p6 = pnand %p4161_p5, %p4155_p2 }
  0x4f   :  { %4165 = shalt.err (!%p4162_p6)
}
  0x50   :  { %90 = dma.hbm_to_vmem [thread:$0]  %s5236_s7, 640, %s85_s17, [#allocation10], %s4251_s25, %s4251_s25, %s4252_s26  }
  0x51   :  { %s4263_s24 = smov [#allocation14]   ;;  %s4264_s8 = smov [#allocation17]  }
  0x52   :  { %s108_s27 = sshll.u32 %s4263_s24, 4  ;;  %s134_s4 = sshll.u32 %s4264_s8, 4  ;;  %s109_s27 = int_to_ptr.vmem [resolvable:$true] %s108_s27  ;;  %s135_s4 = int_to_ptr.vmem [resolvable:$true] %s134_s4 }
  0x53   :  { %s4174_s23 = scalar_lea.vmem %s109_s27, 320  ;;  %p4179_p8 = scmp.lt.s32.totalorder %s109_s27, %s109_s27 }
  0x54   :  { %p4175_p7 = scmp.ne.s32.totalorder %s109_s27, %s4174_s23  ;;  %p4180_p9 = scmp.lt.s32.totalorder %s4174_s23, %s4174_s23 }
  0x56   :  { %p4181_p10 = por %p4180_p9, %p4179_p8 }
  0x58   :  { %p4182_p11 = pnand %p4181_p10, %p4175_p7 }
  0x5a   :  { %4185 = shalt.err (!%p4182_p11)
}
  0x5b   :  { %114 = dma.hbm_to_vmem [thread:$0]  %s5238_s9, 320, %s109_s27, [#allocation13], %s4257_s21, %s4257_s21, %s4258_s22  }
  0x5c   :  { %s4194_s7 = scalar_lea.vmem %s135_s4, 1024  ;;  %p4199_p13 = scmp.lt.s32.totalorder %s135_s4, %s135_s4 }
  0x5d   :  { %p4195_p12 = scmp.ne.s32.totalorder %s135_s4, %s4194_s7  ;;  %p4200_p0 = scmp.lt.s32.totalorder %s4194_s7, %s4194_s7 }
  0x5f   :  { %p4201_p1 = por %p4200_p0, %p4199_p13 }
  0x61   :  { %p4202_p2 = pnand %p4201_p1, %p4195_p12 }
  0x63   :  { %4205 = shalt.err (!%p4202_p2)
}
  0x64   :  { %140 = dma.hbm_to_vmem [thread:$0]  %s5241_s12, 1024, %s135_s4, [#allocation16], %s4251_s25, %s4251_s25, %s4252_s26  }
  0x65   :  { %4230 = dma.done.wait [#allocation4], 384  }
  0x66   :  { %4231 = vsyncadd [#allocation4], 4294966912 }
  0x67   :  { %4232 = dma.done.wait [#allocation7], 40960  }
  0x68   :  { %4233 = vsyncadd [#allocation7], 4294926336 }
  0x69   :  { %4234 = dma.done.wait [#allocation10], 21120  }
  0x6a   :  { %4235 = vsyncadd [#allocation10], 4294946176 }
  0x6b   :  { %4236 = dma.done.wait [#allocation13], 800  }
  0x6c   :  { %4237 = vsyncadd [#allocation13], 4294966496 }
  0x6d   :  { %4238 = dma.done.wait [#allocation16], 1344  }
  0x6e   :  { %4239 = vsyncadd [#allocation16], 4294965952  ;;  %v3758_v0 = vld [vmem:[%s5230_s1 + $0x78] sm:$0xff]   ;;  %v3760_v2 = vld [vmem:[%s5230_s1 + $0x70] sm:$0xff]   ;;  %v407_v22 = vlaneseq  ;;  %v4265_v24 = vmov -1e+30  }
  0x6f   :  { %v3759_v1 = vld [vmem:[%s5230_s1 + $0x38] sm:$0xff]   ;;  %3681 = vmatprep.subr.bf16.mxu1 %v3758_v0  ;;  %3314 = vmatprep.subr.bf16.mxu0 %v3758_v0  ;;  %v3761_v3 = vld [vmem:[%s5230_s1 + $0x30] sm:$0xff]   ;;  %v3762_v4 = vld [vmem:[%s5230_s1 + $0x68] sm:$0xff]  }
  0x70   :  { %3689 = vmatpush3.bf16.msra.mxu1 %v3759_v1  ;;  %3315 = vmatpush3.bf16.msra.mxu0 %v3759_v1  ;;  %v3763_v5 = vld [vmem:[%s5230_s1 + $0x28] sm:$0xff]   ;;  %v3764_v6 = vld [vmem:[%s5230_s1 + $0x60] sm:$0xff]   ;;  %v3766_v8 = vld [vmem:[%s5230_s1 + $0x58] sm:$0xff]   ;;  %v408_v23 = vand.u32 127, %v407_v22 }
  0x71   :  { %3682 = vmatprep.subr.bf16.mxu1 %v3760_v2  ;;  %3316 = vmatprep.subr.bf16.mxu0 %v3760_v2  ;;  %v3765_v7 = vld [vmem:[%s5230_s1 + $0x20] sm:$0xff]   ;;  %v3767_v9 = vld [vmem:[%s5230_s1 + $0x18] sm:$0xff]   ;;  %v3768_v10 = vld [vmem:[%s5230_s1 + $0x50] sm:$0xff]  }
  0x72   :  { %v3776_v11 = vld [vmem:[%s5229_s0 + $0x14] ss:$8 sps:$4 sm:$0xff]   ;;  %v3779_v12 = vld [vmem:[%s5229_s0 + $0x4] ss:$8 sps:$4 sm:$0xff]   ;;  %v3774_v18 = vld [vmem:[%s5229_s0 + $0x10] ss:$8 sps:$4 sm:$0xff]  }
  0x73   :  { %v3769_v13 = vld [vmem:[%s5230_s1 + $0x10] sm:$0xff]   ;;  %v3770_v14 = vld [vmem:[%s5230_s1 + $0x48] sm:$0xff]   ;;  %375 = vmatprep.mubr.bf16.mxu1 %v3776_v11  ;;  %367 = vmatprep.mubr.bf16.mxu0 %v3779_v12  ;;  %v3772_v16 = vld [vmem:[%s5230_s1 + $0x40] sm:$0xff]   ;;  %vm409_vm0 = vcmp.lt.s32.totalorder %v408_v23, 17 }
  0x74   :  { %3690 = vmatpush3.bf16.msra.mxu1 %v3761_v3  ;;  %3317 = vmatpush3.bf16.msra.mxu0 %v3761_v3  ;;  %v3771_v15 = vld [vmem:[%s5230_s1 + $0x8] sm:$0xff]   ;;  %v3773_v17 = vld [vmem:[%s5230_s1] sm:$0xff]   ;;  %v4462_v25 = vsel %vm409_vm0, 0.0, %v4265_v24  ;;  %v392_v33 = vld [vmem:[#allocation3] sm:$0xff] }
  0x75   :  { %3683 = vmatprep.subr.bf16.mxu1 %v3762_v4  ;;  %3318 = vmatprep.subr.bf16.mxu0 %v3762_v4  ;;  %v3777_v19 = vld [vmem:[%s5229_s0] ss:$8 sps:$4 sm:$0xff]   ;;  %v3780_v20 = vld [vmem:[%s5229_s0 + $0x24] ss:$8 sps:$4 sm:$0xff]   ;;  %v393_v40 = vld [vmem:[#allocation3 + $0x8] sm:$0xff] }
  0x76   :  { %v3782_v21 = vld [vmem:[%s5229_s0 + $0x20] ss:$8 sps:$4 sm:$0xff]   ;;  %s4464_s0 = smov 0  }
  0x77   :  { %v394_v29 = vld [vmem:[#allocation3 + $0x10] sm:$0xff] }
  0x78   :  { %3691 = vmatpush3.bf16.msra.mxu1 %v3763_v5  ;;  %3319 = vmatpush3.bf16.msra.mxu0 %v3763_v5 }
  0x79   :  { %3684 = vmatprep.subr.bf16.mxu1 %v3764_v6  ;;  %3320 = vmatprep.subr.bf16.mxu0 %v3764_v6 }
  0x7c   :  { %3692 = vmatpush3.bf16.msra.mxu1 %v3765_v7  ;;  %3321 = vmatpush3.bf16.msra.mxu0 %v3765_v7 }
  0x7d   :  { %3685 = vmatprep.subr.bf16.mxu1 %v3766_v8  ;;  %3322 = vmatprep.subr.bf16.mxu0 %v3766_v8 }
  0x80   :  { %3693 = vmatpush3.bf16.msra.mxu1 %v3767_v9  ;;  %3323 = vmatpush3.bf16.msra.mxu0 %v3767_v9 }
  0x81   :  { %3686 = vmatprep.subr.bf16.mxu1 %v3768_v10  ;;  %3324 = vmatprep.subr.bf16.mxu0 %v3768_v10 }
  0x84   :  { %3694 = vmatpush3.bf16.msra.mxu1 %v3769_v13  ;;  %3325 = vmatpush3.bf16.msra.mxu0 %v3769_v13 }
  0x85   :  { %3687 = vmatprep.subr.bf16.mxu1 %v3770_v14  ;;  %3326 = vmatprep.subr.bf16.mxu0 %v3770_v14 }
  0x88   :  { %3695 = vmatpush3.bf16.msra.mxu1 %v3771_v15  ;;  %3327 = vmatpush3.bf16.msra.mxu0 %v3771_v15 }
  0x89   :  { %3688 = vmatprep.subr.bf16.mxu1 %v3772_v16  ;;  %3328 = vmatprep.subr.bf16.mxu0 %v3772_v16 }
  0x8c   :  { %3696 = vmatpush3.bf16.msra.mxu1 %v3773_v17  ;;  %3329 = vmatpush3.bf16.msra.mxu0 %v3773_v17 }
  0x8f   :  { %376 = vmatmul.mubr.bf16.vlgmr.msra.gmra.mxu1 %v3774_v18  ;;  %368 = vmatmul.mubr.bf16.vlgmr.msra.gmra.mxu0 %v3777_v19 }
  0x90   :  { %383 = vmatprep.mubr.bf16.mxu1 %v3780_v20 }
  0x97   :  { %384 = vmatmul.mubr.bf16.gmra.mxu1 %v3782_v21 }
 0x14f   :  { %v3336_v26 = vpop.f32.mrf.mxu1  ;;  %v3330_v27 = vpop.f32.mrf.mxu0 }
 0x151   :  { %v3337_v28 = vpop.f32.mrf.mxu1  ;;  %v3331_v30 = vpop.f32.mrf.mxu0 }
 0x152   :  { %v3338_v31 = vadd.f32 %v3337_v28, %v3336_v26  ;;  %v3332_v32 = vadd.f32 %v3331_v30, %v3330_v27 }
 0x153   :  { %v3339_v34 = vpop.f32.mrf.mxu1  ;;  %v3333_v35 = vpop.f32.mrf.mxu0 }
 0x154   :  { %v397_v36 = vadd.f32 %v3338_v31, %v394_v29  ;;  %v395_v37 = vadd.f32 %v3332_v32, %v392_v33 }
 0x155   :  { %v3340_v38 = vpop.f32.mrf.mxu1  ;;  %v3334_v39 = vpop.f32.mrf.mxu0 }
 0x156   :  { %400 = vst [vmem:[#allocation2 + $0x8] sm:$0xff] %v397_v36  ;;  %398 = vst [vmem:[#allocation2 + $0x28] sm:$0xff] %v395_v37  ;;  %v3341_v41 = vadd.f32 %v3340_v38, %v3339_v34  ;;  %v3335_v42 = vadd.f32 %v3334_v39, %v3333_v35 }
 0x157   :  { %v3342_v43 = vpop.f32.mrf.mxu1 }
 0x158   :  { %v401_v44 = vadd.f32 %v3341_v41, %v392_v33  ;;  %v396_v45 = vadd.f32 %v3335_v42, %v393_v40 }
 0x159   :  { %v3343_v46 = vpop.f32.mrf.mxu1 }
 0x15a   :  { %404 = vst [vmem:[#allocation2] sm:$0xff] %v401_v44  ;;  %399 = vst [vmem:[#allocation2 + $0x10] sm:$0xff] %v396_v45  ;;  %v3344_v47 = vadd.f32 %v3343_v46, %v3342_v43 }
 0x15b   :  { %v3345_v48 = vpop.f32.mrf.mxu1 }
 0x15c   :  { %v402_v49 = vadd.f32 %v3344_v47, %v393_v40 }
 0x15d   :  { %v3346_v50 = vpop.f32.mrf.mxu1 }
 0x15e   :  { %405 = vst [vmem:[#allocation2 + $0x18] sm:$0xff] %v402_v49  ;;  %v3347_v51 = vadd.f32 %v3346_v50, %v3345_v48 }
 0x160   :  { %v403_v52 = vadd.f32 %v3347_v51, %v394_v29 }
 0x162   :  { %406 = vst [vmem:[#allocation2 + $0x20] sm:$0xff] %v403_v52 }
 0x163 LB: > { %v417_v53 = vld [vmem:[#allocation2 + $0x28] sm:$0xff]  ;;  %v418_v55 = vld [vmem:[#allocation2 + $0x10] sm:$0xff]  ;;  %v420_v56 = vld [vmem:[#allocation2] sm:$0xff]  ;;  %v4266_v57 = vmov 0.0   ;;  %s3310_s4 = smul.u32 192, %s4244_s0  ;;  %v4267_v36 = vmov 0   ;;  %s4244_s0 = sphi %s4464_s0, %s416_s0  }
 0x164   : > { %v419_v54 = vld [vmem:[#allocation2 + $0x8] sm:$0xff]  ;;  %429 = vadd.xlane.f32.xlu0 %v417_v53  ;;  %3477 = vmatprep.subr.bf16.mxu1 %v4266_v57  ;;  %vm4268_vm1 = vmmov 0   ;;  %s3197_s28 = sshll.u32 %s4244_s0, 2  ;;  %s554_s7 = smul.u32 3, %s4244_s0  ;;  %vm830_vm2 = vcmask 261120   ;;  %vm933_vm3 = vcmask 1043456  }
 0x165   : > { %433 = vadd.xlane.f32.xlu1 %v419_v54  ;;  %s4471_s23 = scalar_lea.vmem [#allocation6], %s3310_s4  ;;  %v4490_v11 = vld [vmem:[#allocation2 + $0x18] sm:$0xff]  ;;  %733 = vmatprep.mubr.bf16.mxu0 %v4267_v36  ;;  %s4538_s3 = scalar_lea.vmem [#allocation11], %s3197_s28  ;;  %vm891_vm4 = vcmask 195584   ;;  %vm1518_vm5 = vcmask 523264   ;;  %vm1523_vm6 = vcmask 785408  }
 0x166   : > { %v3783_v58 = vld [vmem:[%s4471_s23 + $0xac] ss:$12 sps:$4 sm:$0xff]   ;;  %v3785_v12 = vld [vmem:[%s4471_s23 + $0xa8] ss:$12 sps:$4 sm:$0xff]   ;;  %v3786_v13 = vld [vmem:[%s4471_s23 + $0xb0] ss:$12 sps:$4 sm:$0xff]   ;;  %3493 = vmatprep.mubr.msk.bf16.mxu1 %vm4268_vm1, %v4266_v57 }
 0x167   : > { %701 = vmatprep.subr.bf16.mxu0 %v3783_v58  ;;  %3478 = vmatpush3.bf16.msra.mxu1 %v3786_v13  ;;  %v3787_v15 = vld [vmem:[%s4471_s23 + $0x94] ss:$12 sps:$4 sm:$0xff]   ;;  %v3789_v16 = vld [vmem:[%s4471_s23 + $0x90] ss:$12 sps:$4 sm:$0xff]   ;;  %v3790_v17 = vld [vmem:[%s4471_s23 + $0x98] ss:$12 sps:$4 sm:$0xff]  }
 0x168   : > { %431 = vadd.xlane.f32.xlu0 %v418_v55  ;;  %702 = vmatpush1.bf16.msra.mxu0 %v3785_v12  ;;  %v3791_v18 = vld [vmem:[%s4471_s23 + $0x7c] ss:$12 sps:$4 sm:$0xff]   ;;  %v3793_v19 = vld [vmem:[%s4471_s23 + $0x78] ss:$12 sps:$4 sm:$0xff]   ;;  %v3794_v20 = vld [vmem:[%s4471_s23 + $0x80] ss:$12 sps:$4 sm:$0xff]  }
 0x169   : > { %435 = vadd.xlane.f32.xlu1 %v420_v56  ;;  %v4495_v14 = vld [vmem:[#allocation2 + $0x20] sm:$0xff]  ;;  %3479 = vmatprep.subr.bf16.mxu1 %v4266_v57  ;;  %v3798_v24 = vld [vmem:[%s4471_s23 + $0x68] ss:$12 sps:$4 sm:$0xff]   ;;  %v3799_v26 = vld [vmem:[%s4471_s23 + $0x4c] ss:$12 sps:$4 sm:$0xff]   ;;  %s555_s29 = scalar_lea.vmem [#allocation12], %s554_s7 }
 0x16a   : > { %703 = vmatprep.subr.bf16.mxu0 %v3787_v15  ;;  %v3795_v21 = vld [vmem:[%s4471_s23 + $0x64] ss:$12 sps:$4 sm:$0xff]   ;;  %v3797_v23 = vld [vmem:[%s4471_s23 + $0x60] ss:$12 sps:$4 sm:$0xff]   ;;  %v3801_v27 = vld [vmem:[%s4471_s23 + $0x48] ss:$12 sps:$4 sm:$0xff]  }
 0x16b   : > { %3480 = vmatpush3.bf16.msra.mxu1 %v3790_v17  ;;  %v3802_v28 = vld [vmem:[%s4471_s23 + $0x50] ss:$12 sps:$4 sm:$0xff]   ;;  %v3803_v29 = vld [vmem:[%s4471_s23 + $0x34] ss:$12 sps:$4 sm:$0xff]   ;;  %v3806_v31 = vld [vmem:[%s4471_s23 + $0x38] ss:$12 sps:$4 sm:$0xff]  }
 0x16c   : > { %704 = vmatpush1.bf16.msra.mxu0 %v3789_v16  ;;  %3481 = vmatprep.subr.bf16.mxu1 %v4266_v57  ;;  %v3805_v30 = vld [vmem:[%s4471_s23 + $0x30] ss:$12 sps:$4 sm:$0xff]   ;;  %v3809_v33 = vld [vmem:[%s4471_s23 + $0x18] ss:$12 sps:$4 sm:$0xff]   ;;  %v3810_v34 = vld [vmem:[%s4471_s23 + $0x20] ss:$12 sps:$4 sm:$0xff]  }
 0x16d   : > { %705 = vmatprep.subr.bf16.mxu0 %v3791_v18  ;;  %v3807_v32 = vld [vmem:[%s4471_s23 + $0x1c] ss:$12 sps:$4 sm:$0xff]   ;;  %v3811_v35 = vld [vmem:[%s4471_s23 + $0x4] ss:$12 sps:$4 sm:$0xff]   ;;  %v3813_v37 = vld [vmem:[%s4471_s23] ss:$12 sps:$4 sm:$0xff]  }
 0x16e   : > { %v3814_v38 = vld [vmem:[%s4471_s23 + $0x8] ss:$12 sps:$4 sm:$0xff]   ;;  %s4269_s30 = smov 96   ;;  %s4270_s9 = smov 64  }
 0x16f   : > { %3482 = vmatpush3.bf16.msra.mxu1 %v3794_v20  ;;  %s4271_s21 = smov 32   ;;  %s3311_s22 = sshll.u32 %s4244_s0, 6 }
 0x170   : > { %706 = vmatpush1.bf16.msra.mxu0 %v3793_v19  ;;  %3483 = vmatprep.subr.bf16.mxu1 %v4266_v57  ;;  %s4932_s15 = scalar_lea.vmem [#allocation8], %s3311_s22  ;;  %s3198_s12 = sshll.u32 %s4244_s0, 1 }
 0x171   : > { %707 = vmatprep.subr.bf16.mxu0 %v3795_v21  ;;  %s427_s25 = scalar_lea.vmem [#allocation15], %s3198_s12  ;;  %s3312_s26 = sshll.u32 %s4244_s0, 7 }
 0x172   : > { %s5053_s10 = scalar_lea.vmem %s5234_s5, %s3312_s26  ;;  %s5059_s18 = scalar_lea.vmem [#allocation9], %s3312_s26 }
 0x173   : > { %3484 = vmatpush3.bf16.msra.mxu1 %v3798_v24  ;;  %s2487_s19 = scalar_lea.vmem [#allocation14], %s3198_s12  ;;  %s416_s0 = sadd.s32 1, %s4244_s0  }
 0x174   : > { %708 = vmatpush1.bf16.msra.mxu0 %v3797_v23  ;;  %3485 = vmatprep.subr.bf16.mxu1 %v4266_v57  ;;  %p413_p3 = scmp.ge.s32.totalorder %s416_s0, 10  }
 0x175   : > { %709 = vmatprep.subr.bf16.mxu0 %v3799_v26  ;;  %vm2972_vm7 = vcmask (%p413_p3), 1040384   ;;  %vm2974_vm8 = vcmask (%p413_p3), 1041408   ;;  %vm4273_vm9 = vmmov (%p413_p3), 0   ;;  %s4274_s6 = smov (%p413_p3), [#allocation18]  }
 0x176   :  { %s3141_s24 = sshll.u32 (%p413_p3), %s4274_s6, 4  ;;  %s3142_s24 = int_to_ptr.vmem [resolvable:$true] %s3141_s24 }
 0x177   : > { %3486 = vmatpush3.bf16.msra.mxu1 %v3802_v28  ;;  %s4206_s27 = scalar_lea.vmem (%p413_p3), %s3142_s24, 32  ;;  %p4211_p5 = scmp.lt.s32.totalorder (%p413_p3), %s3142_s24, %s3142_s24 }
 0x178   : > { %710 = vmatpush1.bf16.msra.mxu0 %v3801_v27  ;;  %3487 = vmatprep.subr.bf16.mxu1 %v4266_v57  ;;  %p4207_p4 = scmp.ne.s32.totalorder (%p413_p3), %s3142_s24, %s4206_s27  ;;  %p4212_p6 = scmp.lt.s32.totalorder (%p413_p3), %s4206_s27, %s4206_s27 }
 0x179   : > { %711 = vmatprep.subr.bf16.mxu0 %v3803_v29 }
 0x17a   :  { %p4213_p7 = por (%p413_p3), %p4212_p6, %p4211_p5 }
 0x17b   : > { %3488 = vmatpush3.bf16.msra.mxu1 %v3806_v31 }
 0x17c   : > { %712 = vmatpush1.bf16.msra.mxu0 %v3805_v30  ;;  %3489 = vmatprep.subr.bf16.mxu1 %v4266_v57  ;;  %p4214_p8 = pnand (%p413_p3), %p4213_p7, %p4207_p4 }
 0x17d   : > { %713 = vmatprep.subr.bf16.mxu0 %v3807_v32 }
 0x17f   : > { %3490 = vmatpush3.bf16.msra.mxu1 %v3810_v34 }
 0x180   : > { %714 = vmatpush1.bf16.msra.mxu0 %v3809_v33  ;;  %3491 = vmatprep.subr.bf16.mxu1 %v4266_v57 }
 0x181   : > { %715 = vmatprep.subr.bf16.mxu0 %v3811_v35 }
 0x183   : > { %3492 = vmatpush3.bf16.msra.mxu1 %v3814_v38  ;;  %v556_v38 = vld [vmem:[%s555_s29] sm:$0x7] }
 0x184   : > { %716 = vmatpush1.bf16.msra.mxu0 %v3813_v37 }
 0x1ed   : > { %v430_v59 = vpop.xlane.xlu0 %429 }
 0x1ee   : > { %v434_v60 = vpop.xlane.xlu1 %433  ;;  %v442_v61 = vmul.f32 0.0078125, %v430_v59 }
 0x1ef   : > { %v444_v62 = vmul.f32 0.0078125, %v434_v60 }
 0x1f0   : > { %v4474_v63 = vsub.f32 %v417_v53, %v442_v61  ;;  %v425_v61 = vld [vmem:[%s4538_s3] sm:$0xf] }
 0x1f1   : > { %v4476_v0 = vsub.f32 %v419_v54, %v444_v62  ;;  %v432_v1 = vpop.xlane.xlu0 %431  ;;  %v4532_v54 = vshrl.u32 %v407_v22, 7  ;;  %v2966_v22 = vld [vmem:[%s5240_s11] sm:$0xf] (%p413_p3) }
 0x1f2   : > { %v436_v2 = vpop.xlane.xlu1 %435  ;;  %v443_v3 = vmul.f32 0.0078125, %v432_v1  ;;  %v454_v4 = vmul.f32 %v4474_v63, %v4474_v63 }
 0x1f3   : > { %v445_v5 = vmul.f32 0.0078125, %v436_v2  ;;  %v456_v6 = vmul.f32 %v4476_v0, %v4476_v0  ;;  %v4536_v60 = vsub.s32 0, %v4532_v54 }
 0x1f4   : > { %460 = vadd.xlane.f32.xlu0 %v454_v4  ;;  %v4482_v7 = vsub.f32 %v418_v55, %v443_v3  ;;  %v4544_v4 = vsub.s32 1, %v4532_v54 }
 0x1f5   : > { %v4484_v8 = vsub.f32 %v420_v56, %v445_v5  ;;  %v499_v3 = vrot.slane %v425_v61, %v4536_v60 }
 0x1f6   : > { %v455_v9 = vmul.f32 %v4482_v7, %v4482_v7 }
 0x1f7   : > { %v457_v10 = vmul.f32 %v4484_v8, %v4484_v8 }
 0x1f8   : > { %464 = vadd.xlane.f32.xlu0 %v456_v6  ;;  %462 = vadd.xlane.f32.xlu1 %v455_v9 }
 0x1fc   : > { %437 = vadd.xlane.f32.xlu0 %v4490_v11  ;;  %466 = vadd.xlane.f32.xlu1 %v457_v10  ;;  %v509_v10 = vrot.slane %v425_v61, %v4544_v4 }
 0x200   : > { %439 = vadd.xlane.f32.xlu1 %v4495_v14 }
 0x27d   : > { %v461_v39 = vpop.xlane.xlu0 %460 }
 0x27e   : > { %v472_v40 = vmul.f32 0.0078125, %v461_v39 }
 0x280   : > { %v478_v41 = vadd.f32 1e-12, %v472_v40 }
 0x281   : > { %v463_v42 = vpop.xlane.xlu1 %462  ;;  %v465_v43 = vpop.xlane.xlu0 %464 }
 0x282   : > { %3863 = vrsqrt.f32 %v478_v41  ;;  %v473_v44 = vmul.f32 0.0078125, %v463_v42  ;;  %v474_v45 = vmul.f32 0.0078125, %v465_v43  ;;  %v561_v41 = vrot.slane %v556_v38, %v4536_v60 }
 0x284   : > { %v479_v46 = vadd.f32 1e-12, %v473_v44  ;;  %v480_v47 = vadd.f32 1e-12, %v474_v45 }
 0x285   : > { %v467_v48 = vpop.xlane.xlu1 %466  ;;  %v438_v49 = vpop.xlane.xlu0 %437 }
 0x286   : > { %3865 = vrsqrt.f32 %v479_v46  ;;  %v475_v50 = vmul.f32 0.0078125, %v467_v48  ;;  %v446_v51 = vmul.f32 0.0078125, %v438_v49 }
 0x287   : > { %3867 = vrsqrt.f32 %v480_v47 }
 0x288   : > { %v481_v52 = vadd.f32 1e-12, %v475_v50  ;;  %v452_v53 = vsub.f32 %v4490_v11, %v446_v51 }
 0x289   : > { %v440_v55 = vpop.xlane.xlu1 %439 }
 0x28a   : > { %3869 = vrsqrt.f32 %v481_v52  ;;  %v447_v56 = vmul.f32 0.0078125, %v440_v55  ;;  %v458_v58 = vmul.f32 %v452_v53, %v452_v53 }
 0x28c   : > { %468 = vadd.xlane.f32.xlu0 %v458_v58  ;;  %v453_v59 = vsub.f32 %v4495_v14, %v447_v56 }
 0x28e   : > { %v459_v62 = vmul.f32 %v453_v59, %v453_v59 }
 0x28f   : > { %v3864_v1 = vpop.eup %3863 }
 0x290   : > { %470 = vadd.xlane.f32.xlu1 %v459_v62  ;;  %v490_v2 = vmul.f32 %v3864_v1, %v4474_v63 }
 0x292   : > { %v500_v9 = vmul.f32 %v499_v3, %v490_v2 }
 0x293   : > { %v3866_v5 = vpop.eup %3865 }
 0x294   : > { %v491_v6 = vmul.f32 %v3866_v5, %v4482_v7  ;;  %v3868_v11 = vpop.eup %3867  ;;  %v510_v14 = vadd.f32 %v509_v10, %v500_v9  ;;  %v4569_v5 = vsub.s32 2, %v4532_v54 }
 0x295   : > { %v492_v16 = vmul.f32 %v3868_v11, %v4476_v0 }
 0x296   : > { %v501_v12 = vmul.f32 %v499_v3, %v491_v6 }
 0x297   : > { %v3870_v13 = vpop.eup %3869  ;;  %v502_v19 = vmul.f32 %v499_v3, %v492_v16 }
 0x298   : > { %v511_v15 = vadd.f32 %v509_v10, %v501_v12  ;;  %v493_v63 = vmul.f32 %v3870_v13, %v4484_v8  ;;  %v569_v12 = vrot.slane %v556_v38, %v4569_v5 }
 0x299   : > { %v512_v20 = vadd.f32 %v509_v10, %v502_v19 }
 0x29a   : > { %v516_v17 = vpack.c.bf16 %v511_v15, %v510_v14  ;;  %v503_v18 = vmul.f32 %v499_v3, %v493_v63 }
 0x29c   : > { %734 = vmatmul.mubr.bf16.vlgmr.msra.gmra.mxu0 %v516_v17  ;;  %3494 = vmatmul.mubr.bf16.vlgmr.msra.gmra.mxu1 %v516_v17  ;;  %v513_v7 = vadd.f32 %v509_v10, %v503_v18 }
 0x29d   : > { %743 = vmatprep.mubr.bf16.mxu0 %v4267_v36  ;;  %3497 = vmatprep.mubr.msk.bf16.mxu1 %vm4268_vm1, %v4266_v57 }
 0x29e   : > { %v517_v21 = vpack.c.bf16 %v513_v7, %v512_v20 }
 0x2a4   : > { %744 = vmatmul.mubr.bf16.gmra.mxu0 %v517_v21  ;;  %3498 = vmatmul.mubr.bf16.gmra.mxu1 %v517_v21 }
 0x2a5   : > { %753 = vmatprep.mubr.bf16.mxu0 %v4267_v36  ;;  %3501 = vmatprep.mubr.msk.bf16.mxu1 %vm4268_vm1, %v4266_v57 }
 0x315   : > { %v469_v0 = vpop.xlane.xlu0 %468 }
 0x316   : > { %v476_v8 = vmul.f32 0.0078125, %v469_v0 }
 0x318   : > { %v482_v23 = vadd.f32 1e-12, %v476_v8 }
 0x319   : > { %v471_v24 = vpop.xlane.xlu1 %470 }
 0x31a   : > { %3871 = vrsqrt.f32 %v482_v23  ;;  %v477_v26 = vmul.f32 0.0078125, %v471_v24 }
 0x31c   : > { %v483_v27 = vadd.f32 1e-12, %v477_v26 }
 0x31e   : > { %3873 = vrsqrt.f32 %v483_v27 }
 0x327   : > { %v3872_v28 = vpop.eup %3871 }
 0x328   : > { %v494_v29 = vmul.f32 %v3872_v28, %v452_v53 }
 0x32a   : > { %v504_v32 = vmul.f32 %v499_v3, %v494_v29 }
 0x32b   : > { %v3874_v30 = vpop.eup %3873 }
 0x32c   : > { %v495_v31 = vmul.f32 %v3874_v30, %v453_v59  ;;  %v514_v34 = vadd.f32 %v509_v10, %v504_v32  ;;  %v4563_v59 = vrot.slane %v556_v38, %v4544_v4 }
 0x32e   : > { %v505_v33 = vmul.f32 %v499_v3, %v495_v31 }
 0x330   : > { %v515_v35 = vadd.f32 %v509_v10, %v505_v33 }
 0x332   : > { %v518_v37 = vpack.c.bf16 %v515_v35, %v514_v34 }
 0x334   : > { %754 = vmatmul.mubr.bf16.gmra.mxu0 %v518_v37  ;;  %3502 = vmatmul.mubr.bf16.gmra.mxu1 %v518_v37 }
 0x35c   : > { %v735_v39 = vpop.f32.mrf.mxu0  ;;  %v798_v40 = vpop.f32.mrf.mxu1 }
 0x35d   : > { %v736_v46 = vadd.f32 %v735_v39, %v561_v41  ;;  %v799_v19 = vadd.f32 %v798_v40, %v569_v12 }
 0x35e   : > { %v737_v42 = vpop.f32.mrf.mxu0  ;;  %v3495_v43 = vpop.f32.mrf.mxu1 }
 0x35f   : > { %v738_v6 = vadd.f32 %v737_v42, %v4563_v59 }
 0x360   : > { %v739_v44 = vpop.f32.mrf.mxu0  ;;  %v801_v45 = vpop.f32.mrf.mxu1 }
 0x361   : > { %v740_v47 = vadd.f32 %v739_v44, %v561_v41  ;;  %v802_v17 = vadd.f32 %v801_v45, %v569_v12 }
 0x362   : > { %v741_v48 = vpop.f32.mrf.mxu0  ;;  %v3496_v49 = vpop.f32.mrf.mxu1 }
 0x363   : > { %v4558_v50 = vpack.c.bf16 %v740_v47, %v736_v46  ;;  %v742_v1 = vadd.f32 %v741_v48, %v4563_v59  ;;  %v4591_v20 = vpack.c.bf16 %v802_v17, %v799_v19 }
 0x364   : > { %v745_v51 = vpop.f32.mrf.mxu0  ;;  %v806_v52 = vpop.f32.mrf.mxu1 }
 0x365   : > { %3509 = vmatprep.mubr.msk.bf16.mxu0 %vm830_vm2, %v4558_v50  ;;  %v4574_v10 = vpack.c.bf16 %v742_v1, %v738_v6  ;;  %v807_v14 = vadd.f32 %v806_v52, %v569_v12  ;;  %v746_v18 = vadd.f32 %v745_v51, %v561_v41 }
 0x366   : > { %v747_v53 = vpop.f32.mrf.mxu0  ;;  %v3499_v55 = vpop.f32.mrf.mxu1 }
 0x367   : > { %v748_v2 = vadd.f32 %v747_v53, %v4563_v59  ;;  %v838_v16 = vsel %vm830_vm2, %v4574_v10, 0 }
 0x368   : > { %v749_v56 = vpop.f32.mrf.mxu0  ;;  %v809_v58 = vpop.f32.mrf.mxu1 }
 0x369   : > { %v810_v13 = vadd.f32 %v809_v58, %v569_v12  ;;  %v750_v63 = vadd.f32 %v749_v56, %v561_v41 }
 0x36a   : > { %v751_v61 = vpop.f32.mrf.mxu0  ;;  %v3500_v62 = vpop.f32.mrf.mxu1 }
 0x36b   : > { %v752_v3 = vadd.f32 %v751_v61, %v4563_v59  ;;  %v4583_v15 = vpack.c.bf16 %v810_v13, %v807_v14  ;;  %v4589_v7 = vpack.c.bf16 %v750_v63, %v746_v18 }
 0x36d   : > { %v4572_v9 = vpack.c.bf16 %v752_v3, %v748_v2  ;;  %v935_v21 = vsel %vm933_vm3, %v4583_v15, 0 }
 0x36f   : > { %3697 = vmatprep.subr.msk.bf16.mxu0 %vm830_vm2, %v4572_v9  ;;  %v841_v11 = vsel %vm830_vm2, %v4572_v9, 0 }
 0x370   : > { %3506 = vmatpush3.bf16.xpose.msra.mxu0 %v841_v11 }
 0x371   : > { %3698 = vmatprep.subr.msk.bf16.mxu0 %vm830_vm2, %v4574_v10 }
 0x378   : > { %3508 = vmatpush3.bf16.xpose.msra.mxu0 %v838_v16 }
 0x379   : > { %3699 = vmatprep.subr.msk.bf16.mxu0 %vm933_vm3, %v4583_v15 }
 0x37f   : > { %3510 = vmatmul.mubr.msk.bf16.vlgmr.msra.gmra.mxu0 %vm830_vm2, %v4589_v7 }
 0x380   : > { %3514 = vmatpush3.bf16.msra.mxu0 %v935_v21 }
 0x381   : > { %3515 = vmatprep.subr.bf16.mxu0 %v4591_v20 }
 0x384   : > { %3516 = vmatpush3.bf16.msra.mxu0 %v4591_v20 }
 0x3f4   : > { %v755_v0 = vpop.f32.mrf.mxu0  ;;  %v814_v8 = vpop.f32.mrf.mxu1 }
 0x3f5   : > { %v4601_v28 = vadd.f32 %v755_v0, %v561_v41  ;;  %v4603_v29 = vadd.f32 %v814_v8, %v569_v12 }
 0x3f6   : > { %v4599_v23 = vpop.f32.mrf.mxu0  ;;  %v3503_v24 = vpop.f32.mrf.mxu1 }
 0x3f8   : > { %v759_v26 = vpop.f32.mrf.mxu0  ;;  %v817_v27 = vpop.f32.mrf.mxu1 }
 0x3f9   : > { %v4605_v30 = vadd.f32 %v759_v26, %v561_v41  ;;  %v4607_v31 = vadd.f32 %v817_v27, %v569_v12 }
 0x3fa   : > { %v3504_v32 = vpop.f32.mrf.mxu1  ;;  %v4613_v35 = vpop.f32.mrf.mxu0 }
 0x3fb   : > { %v827_v33 = vpack.c.bf16 %v4605_v30, %v4601_v28  ;;  %v829_v34 = vpack.c.bf16 %v4607_v31, %v4603_v29 }
 0x43f   : > { %v3511_v37 = vpop.f32.mrf.mxu0 }
 0x440   : > { %v886_v41 = vadd.f32 %v3511_v37, %v4462_v25 }
 0x441   : > { %v877_v38 = vpop.f32.mrf.mxu0 }
 0x442   : > { %v878_v39 = vadd.f32 %v877_v38, %v4462_v25  ;;  %v898_v46 = vsel %vm891_vm4, %v886_v41, -inf }
 0x443   : > { %v3512_v40 = vpop.f32.mrf.mxu0 }
 0x444   : > { %v892_v42 = vsel %vm891_vm4, %v878_v39, -inf }
 0x445   : > { %v880_v43 = vpop.f32.mrf.mxu0  ;;  %893 = vmax.xlane.f32.xlu0 %v892_v42 }
 0x446   : > { %v881_v44 = vadd.f32 %v880_v43, %v4462_v25 }
 0x448   : > { %v895_v45 = vsel %vm891_vm4, %v881_v44, -inf }
 0x449   : > { %896 = vmax.xlane.f32.xlu1 %v895_v45  ;;  %899 = vmax.xlane.f32.xlu0 %v898_v46 }
 0x4ce   : > { %v894_v47 = vpop.xlane.xlu0 %893 }
 0x4cf   : > { %v901_v48 = vsub.f32 %v878_v39, %v894_v47 }
 0x4d1   : > { %v904_v49 = vmul.f32 1.442695, %v901_v48 }
 0x4d2   : > { %v897_v51 = vpop.xlane.xlu1 %896  ;;  %v900_v52 = vpop.xlane.xlu0 %899 }
 0x4d3   : > { %3875 = vpow2.f32 %v904_v49  ;;  %v902_v53 = vsub.f32 %v881_v44, %v897_v51  ;;  %v903_v55 = vsub.f32 %v886_v41, %v900_v52 }
 0x4d5   : > { %v906_v56 = vmul.f32 1.442695, %v902_v53  ;;  %v908_v58 = vmul.f32 1.442695, %v903_v55 }
 0x4d7   : > { %3877 = vpow2.f32 %v906_v56 }
 0x4d8   : > { %3879 = vpow2.f32 %v908_v58 }
 0x4e0   : > { %v3876_v61 = vpop.eup %3875 }
 0x4e1   : > { %v910_v62 = vsel %vm891_vm4, %v3876_v61, 0.0 }
 0x4e2   : > { %911 = vadd.xlane.f32.xlu1 %v910_v62 }
 0x4e4   : > { %v3878_v1 = vpop.eup %3877 }
 0x4e5   : > { %v3880_v2 = vpop.eup %3879  ;;  %v913_v3 = vsel %vm891_vm4, %v3878_v1, 0.0 }
 0x4e6   : > { %914 = vadd.xlane.f32.xlu0 %v913_v3  ;;  %v916_v6 = vsel %vm891_vm4, %v3880_v2, 0.0 }
 0x4e7   : > { %917 = vadd.xlane.f32.xlu1 %v916_v6 }
 0x4f8   : > { %995 = vrot.lane.b32.xlu1 %v4574_v10, %s4269_s30 }
 0x4fc   : > { %989 = vrot.lane.b32.xlu1 %v4558_v50, %s4269_s30  ;;  %997 = vrot.lane.b32.xlu0 %v4572_v9, %s4269_s30 }
 0x500   : > { %991 = vrot.lane.b32.xlu1 %v4589_v7, %s4269_s30 }
 0x56b   : > { %v912_v11 = vpop.xlane.xlu1 %911 }
 0x56c   : > { %3881 = vrcp.f32 %v912_v11 }
 0x56f   : > { %v915_v12 = vpop.xlane.xlu0 %914 }
 0x570   : > { %v918_v13 = vpop.xlane.xlu1 %917  ;;  %3883 = vrcp.f32 %v915_v12 }
 0x571   : > { %3885 = vrcp.f32 %v918_v13 }
 0x573   : > { %v998_v14 = vpop.permute.xlu0 %997 }
 0x574   : > { %3700 = vmatprep.subr.msk.bf16.mxu0 %vm830_vm2, %v998_v14  ;;  %v996_v17 = vpop.permute.xlu1 %995  ;;  %v1009_v27 = vsel %vm830_vm2, %v998_v14, 0 }
 0x575   : > { %v1006_v32 = vsel %vm830_vm2, %v996_v17, 0 }
 0x578   : > { %v990_v26 = vpop.permute.xlu1 %989 }
 0x579   : > { %v3882_v16 = vpop.eup %3881 }
 0x57a   : > { %v920_v19 = vmul.f32 %v3882_v16, %v3876_v61 }
 0x57c   : > { %v992_v37 = vpop.permute.xlu1 %991 }
 0x57d   : > { %v3884_v63 = vpop.eup %3883 }
 0x57e   : > { %v3886_v18 = vpop.eup %3885  ;;  %v922_v21 = vmul.f32 %v3884_v63, %v3878_v1 }
 0x57f   : > { %v924_v0 = vmul.f32 %v3886_v18, %v3880_v2 }
 0x580   : > { %v925_v8 = vpack.c.bf16 %v922_v21, %v920_v19 }
 0x581   : > { %v926_v24 = vpack.c.bf16 %v924_v0, %v924_v0 }
 0x582   : > { %3517 = vmatprep.mubr.msk.bf16.mxu0 %vm891_vm4, %v925_v8 }
 0x583   : > { %3518 = vmatmul.mubr.msk.bf16.vlgmr.msra.gmra.mxu0 %vm891_vm4, %v926_v24 }
 0x584   : > { %3522 = vmatpush3.bf16.xpose.msra.mxu0 %v1009_v27  ;;  %3525 = vmatprep.mubr.msk.bf16.mxu0 %vm830_vm2, %v990_v26 }
 0x585   : > { %3701 = vmatprep.subr.msk.bf16.mxu0 %vm830_vm2, %v996_v17 }
 0x58c   : > { %3524 = vmatpush3.bf16.xpose.msra.mxu0 %v1006_v32 }
 0x593   : > { %3526 = vmatmul.mubr.msk.bf16.vlgmr.msra.gmra.mxu0 %vm830_vm2, %v992_v37 }
 0x643   : > { %v4640_v38 = vpop.f32.mrf.mxu0 }
 0x645   : > { %v4642_v39 = vpop.f32.mrf.mxu0 }
 0x647   : > { %v3520_v40 = vpop.f32.mrf.mxu0 }
 0x649   : > { %v4644_v41 = vpop.f32.mrf.mxu0 }
 0x64a   : > { %v985_v42 = vpack.c.bf16 %v4644_v41, %v4642_v39 }
 0x653   : > { %v3527_v43 = vpop.f32.mrf.mxu0 }
 0x654   : > { %v1054_v47 = vadd.f32 %v3527_v43, %v4462_v25 }
 0x655   : > { %v1045_v44 = vpop.f32.mrf.mxu0 }
 0x656   : > { %v1046_v45 = vadd.f32 %v1045_v44, %v4462_v25  ;;  %v1065_v53 = vsel %vm891_vm4, %v1054_v47, -inf }
 0x657   : > { %v3528_v46 = vpop.f32.mrf.mxu0 }
 0x658   : > { %v1059_v48 = vsel %vm891_vm4, %v1046_v45, -inf }
 0x659   : > { %v1048_v49 = vpop.f32.mrf.mxu0  ;;  %1060 = vmax.xlane.f32.xlu0 %v1059_v48 }
 0x65a   : > { %v1049_v51 = vadd.f32 %v1048_v49, %v4462_v25 }
 0x65c   : > { %v1062_v52 = vsel %vm891_vm4, %v1049_v51, -inf }
 0x65d   : > { %1063 = vmax.xlane.f32.xlu1 %v1062_v52  ;;  %1066 = vmax.xlane.f32.xlu0 %v1065_v53 }
 0x6e2   : > { %v1061_v55 = vpop.xlane.xlu0 %1060 }
 0x6e3   : > { %v1068_v56 = vsub.f32 %v1046_v45, %v1061_v55 }
 0x6e5   : > { %v1071_v58 = vmul.f32 1.442695, %v1068_v56 }
 0x6e6   : > { %v1064_v61 = vpop.xlane.xlu1 %1063  ;;  %v1067_v62 = vpop.xlane.xlu0 %1066 }
 0x6e7   : > { %3887 = vpow2.f32 %v1071_v58  ;;  %v1069_v1 = vsub.f32 %v1049_v51, %v1064_v61  ;;  %v1070_v2 = vsub.f32 %v1054_v47, %v1067_v62 }
 0x6e9   : > { %v1073_v3 = vmul.f32 1.442695, %v1069_v1  ;;  %v1075_v6 = vmul.f32 1.442695, %v1070_v2 }
 0x6eb   : > { %3889 = vpow2.f32 %v1073_v3 }
 0x6ec   : > { %3891 = vpow2.f32 %v1075_v6 }
 0x6f4   : > { %v3888_v11 = vpop.eup %3887 }
 0x6f5   : > { %v1077_v12 = vsel %vm891_vm4, %v3888_v11, 0.0 }
 0x6f6   : > { %1078 = vadd.xlane.f32.xlu0 %v1077_v12 }
 0x6f8   : > { %v3890_v13 = vpop.eup %3889 }
 0x6f9   : > { %v3892_v14 = vpop.eup %3891  ;;  %v1080_v16 = vsel %vm891_vm4, %v3890_v13, 0.0 }
 0x6fa   : > { %1081 = vadd.xlane.f32.xlu0 %v1080_v16  ;;  %v1083_v63 = vsel %vm891_vm4, %v3892_v14, 0.0 }
 0x6fb   : > { %1084 = vadd.xlane.f32.xlu1 %v1083_v63 }
 0x70c   : > { %1096 = vrot.lane.b32.xlu1 %v4591_v20, %s4269_s30 }
 0x710   : > { %1166 = vrot.lane.b32.xlu1 %v4572_v9, %s4270_s9  ;;  %1098 = vrot.lane.b32.xlu0 %v4583_v15, %s4269_s30 }
 0x714   : > { %1164 = vrot.lane.b32.xlu1 %v4574_v10, %s4270_s9  ;;  %1160 = vrot.lane.b32.xlu0 %v4558_v50, %s4270_s9 }
 0x718   : > { %1162 = vrot.lane.b32.xlu1 %v4589_v7, %s4270_s9 }
 0x77f   : > { %v1079_v17 = vpop.xlane.xlu0 %1078 }
 0x780   : > { %3893 = vrcp.f32 %v1079_v17 }
 0x783   : > { %v1082_v18 = vpop.xlane.xlu0 %1081 }
 0x784   : > { %v1085_v19 = vpop.xlane.xlu1 %1084  ;;  %3895 = vrcp.f32 %v1082_v18 }
 0x785   : > { %3897 = vrcp.f32 %v1085_v19 }
 0x787   : > { %v1099_v21 = vpop.permute.xlu0 %1098 }
 0x788   : > { %v1097_v0 = vpop.permute.xlu1 %1096  ;;  %v1108_v8 = vsel %vm933_vm3, %v1099_v21, 0  ;;  %3702 = vmatprep.subr.msk.bf16.mxu1 %vm933_vm3, %v1099_v21 }
 0x789   : > { %3530 = vmatpush3.bf16.msra.mxu1 %v1108_v8 }
 0x78a   : > { %3531 = vmatprep.subr.bf16.mxu1 %v1097_v0 }
 0x78b   : > { %v1161_v47 = vpop.permute.xlu0 %1160 }
 0x78c   : > { %v1167_v24 = vpop.permute.xlu1 %1166 }
 0x78d   : > { %3532 = vmatpush3.bf16.msra.mxu1 %v1097_v0  ;;  %v3894_v26 = vpop.eup %3893  ;;  %v1178_v46 = vsel %vm830_vm2, %v1167_v24, 0 }
 0x78e   : > { %3703 = vmatprep.subr.msk.bf16.mxu1 %vm830_vm2, %v1167_v24  ;;  %v1087_v37 = vmul.f32 %v3894_v26, %v3888_v11 }
 0x790   : > { %v1165_v48 = vpop.permute.xlu1 %1164 }
 0x791   : > { %v3896_v27 = vpop.eup %3895  ;;  %v1175_v49 = vsel %vm830_vm2, %v1165_v48, 0 }
 0x792   : > { %v3898_v32 = vpop.eup %3897  ;;  %v1089_v40 = vmul.f32 %v3896_v27, %v3890_v13 }
 0x793   : > { %v1091_v43 = vmul.f32 %v3898_v32, %v3892_v14 }
 0x794   : > { %v1092_v44 = vpack.c.bf16 %v1089_v40, %v1087_v37  ;;  %v1163_v51 = vpop.permute.xlu1 %1162 }
 0x795   : > { %v1093_v45 = vpack.c.bf16 %v1091_v43, %v1091_v43 }
 0x796   : > { %3533 = vmatprep.mubr.msk.bf16.mxu1 %vm891_vm4, %v1092_v44 }
 0x797   : > { %3534 = vmatmul.mubr.msk.bf16.vlgmr.msra.gmra.mxu1 %vm891_vm4, %v1093_v45 }
 0x798   : > { %3538 = vmatpush3.bf16.xpose.msra.mxu1 %v1178_v46  ;;  %3541 = vmatprep.mubr.msk.bf16.mxu1 %vm830_vm2, %v1161_v47 }
 0x799   : > { %3704 = vmatprep.subr.msk.bf16.mxu1 %vm830_vm2, %v1165_v48 }
 0x7a0   : > { %3540 = vmatpush3.bf16.xpose.msra.mxu1 %v1175_v49 }
 0x7a7   : > { %3542 = vmatmul.mubr.msk.bf16.vlgmr.msra.gmra.mxu1 %vm830_vm2, %v1163_v51 }
 0x857   : > { %v4679_v52 = vpop.f32.mrf.mxu1 }
 0x859   : > { %v4681_v53 = vpop.f32.mrf.mxu1 }
 0x85b   : > { %v3536_v55 = vpop.f32.mrf.mxu1 }
 0x85d   : > { %v4683_v56 = vpop.f32.mrf.mxu1 }
 0x85e   : > { %v1158_v58 = vpack.c.bf16 %v4683_v56, %v4681_v53  ;;  %v1159_v53 = vpack.c.bf16 %v4679_v52, %v4679_v52 }
 0x867   : > { %v3543_v61 = vpop.f32.mrf.mxu1 }
 0x868   : > { %v1223_v3 = vadd.f32 %v3543_v61, %v4462_v25 }
 0x869   : > { %v1214_v62 = vpop.f32.mrf.mxu1 }
 0x86a   : > { %v1215_v1 = vadd.f32 %v1214_v62, %v4462_v25  ;;  %v1234_v14 = vsel %vm891_vm4, %v1223_v3, -inf }
 0x86b   : > { %v3544_v2 = vpop.f32.mrf.mxu1 }
 0x86c   : > { %v1228_v6 = vsel %vm891_vm4, %v1215_v1, -inf }
 0x86d   : > { %v1217_v11 = vpop.f32.mrf.mxu1  ;;  %1229 = vmax.xlane.f32.xlu0 %v1228_v6 }
 0x86e   : > { %v1218_v12 = vadd.f32 %v1217_v11, %v4462_v25 }
 0x870   : > { %v1231_v13 = vsel %vm891_vm4, %v1218_v12, -inf }
 0x871   : > { %1232 = vmax.xlane.f32.xlu1 %v1231_v13  ;;  %1235 = vmax.xlane.f32.xlu0 %v1234_v14  ;;  %v4719_v13 = vrot.slane %v829_v34, 4 }
 0x8f6   : > { %v1230_v16 = vpop.xlane.xlu0 %1229 }
 0x8f7   : > { %v1237_v63 = vsub.f32 %v1215_v1, %v1230_v16 }
 0x8f9   : > { %v1240_v17 = vmul.f32 1.442695, %v1237_v63  ;;  %v1634_v63 = vrot.slane %v4583_v15, 4 }
 0x8fa   : > { %v1233_v18 = vpop.xlane.xlu1 %1232  ;;  %v1236_v19 = vpop.xlane.xlu0 %1235 }
 0x8fb   : > { %3899 = vpow2.f32 %v1240_v17  ;;  %v1238_v21 = vsub.f32 %v1218_v12, %v1233_v18  ;;  %v1239_v0 = vsub.f32 %v1223_v3, %v1236_v19  ;;  %v1645_v17 = vsel %vm933_vm3, %v4719_v13, 0 }
 0x8fc   : > { %v4730_v29 = vsel %vm933_vm3, %v1634_v63, %v4719_v13  ;;  %v758_v63 = vadd.f32 %v4599_v23, %v4563_v59  ;;  %v4768_v23 = vrot.slane %v827_v33, 4 }
 0x8fd   : > { %v1242_v8 = vmul.f32 1.442695, %v1238_v21  ;;  %v1244_v24 = vmul.f32 1.442695, %v1239_v0 }
 0x8ff   : > { %3901 = vpow2.f32 %v1242_v8 }
 0x900   : > { %3903 = vpow2.f32 %v1244_v24 }
 0x908   : > { %v3900_v26 = vpop.eup %3899 }
 0x909   : > { %v1246_v27 = vsel %vm891_vm4, %v3900_v26, 0.0 }
 0x90a   : > { %1247 = vadd.xlane.f32.xlu0 %v1246_v27 }
 0x90c   : > { %v3902_v32 = vpop.eup %3901 }
 0x90d   : > { %v3904_v37 = vpop.eup %3903  ;;  %v1249_v40 = vsel %vm891_vm4, %v3902_v32, 0.0 }
 0x90e   : > { %1250 = vadd.xlane.f32.xlu0 %v1249_v40  ;;  %v1252_v43 = vsel %vm891_vm4, %v3904_v37, 0.0 }
 0x90f   : > { %1253 = vadd.xlane.f32.xlu1 %v1252_v43 }
 0x920   : > { %1263 = vrot.lane.b32.xlu1 %v4591_v20, %s4270_s9 }
 0x924   : > { %1333 = vrot.lane.b32.xlu1 %v4572_v9, %s4271_s21  ;;  %1265 = vrot.lane.b32.xlu0 %v4583_v15, %s4270_s9 }
 0x928   : > { %1331 = vrot.lane.b32.xlu1 %v4574_v10, %s4271_s21  ;;  %1327 = vrot.lane.b32.xlu0 %v4558_v50, %s4271_s21 }
 0x92c   : > { %1329 = vrot.lane.b32.xlu1 %v4589_v7, %s4271_s21 }
 0x993   : > { %v1248_v44 = vpop.xlane.xlu0 %1247 }
 0x994   : > { %3905 = vrcp.f32 %v1248_v44 }
 0x997   : > { %v1251_v45 = vpop.xlane.xlu0 %1250 }
 0x998   : > { %v1254_v46 = vpop.xlane.xlu1 %1253  ;;  %3907 = vrcp.f32 %v1251_v45 }
 0x999   : > { %3909 = vrcp.f32 %v1254_v46 }
 0x99b   : > { %v1266_v47 = vpop.permute.xlu0 %1265 }
 0x99c   : > { %v1264_v48 = vpop.permute.xlu1 %1263  ;;  %v1275_v49 = vsel %vm933_vm3, %v1266_v47, 0  ;;  %3705 = vmatprep.subr.msk.bf16.mxu0 %vm933_vm3, %v1266_v47 }
 0x99d   : > { %3546 = vmatpush3.bf16.msra.mxu0 %v1275_v49 }
 0x99e   : > { %3547 = vmatprep.subr.bf16.mxu0 %v1264_v48 }
 0x99f   : > { %v1328_v11 = vpop.permute.xlu0 %1327 }
 0x9a0   : > { %v1334_v10 = vpop.permute.xlu1 %1333 }
 0x9a1   : > { %3548 = vmatpush3.bf16.msra.mxu0 %v1264_v48  ;;  %v3906_v50 = vpop.eup %3905  ;;  %v1345_v6 = vsel %vm830_vm2, %v1334_v10, 0 }
 0x9a2   : > { %3706 = vmatprep.subr.msk.bf16.mxu0 %vm830_vm2, %v1334_v10  ;;  %v1256_v61 = vmul.f32 %v3906_v50, %v3900_v26 }
 0x9a4   : > { %v1332_v12 = vpop.permute.xlu1 %1331 }
 0x9a5   : > { %v3908_v51 = vpop.eup %3907  ;;  %v1342_v14 = vsel %vm830_vm2, %v1332_v12, 0 }
 0x9a6   : > { %v3910_v55 = vpop.eup %3909  ;;  %v1258_v62 = vmul.f32 %v3908_v51, %v3902_v32 }
 0x9a7   : > { %v1260_v1 = vmul.f32 %v3910_v55, %v3904_v37 }
 0x9a8   : > { %v1261_v2 = vpack.c.bf16 %v1258_v62, %v1256_v61  ;;  %v1330_v16 = vpop.permute.xlu1 %1329 }
 0x9a9   : > { %v1262_v3 = vpack.c.bf16 %v1260_v1, %v1260_v1 }
 0x9aa   : > { %3549 = vmatprep.mubr.msk.bf16.mxu0 %vm891_vm4, %v1261_v2 }
 0x9ab   : > { %3550 = vmatmul.mubr.msk.bf16.vlgmr.msra.gmra.mxu0 %vm891_vm4, %v1262_v3 }
 0x9ac   : > { %3554 = vmatpush3.bf16.xpose.msra.mxu0 %v1345_v6  ;;  %3557 = vmatprep.mubr.msk.bf16.mxu0 %vm830_vm2, %v1328_v11 }
 0x9ad   : > { %3707 = vmatprep.subr.msk.bf16.mxu0 %vm830_vm2, %v1332_v12 }
 0x9b4   : > { %3556 = vmatpush3.bf16.xpose.msra.mxu0 %v1342_v14  ;;  %v762_v14 = vadd.f32 %v4613_v35, %v4563_v59 }
 0x9b5   : > { %3711 = vmatprep.subr.msk.bf16.mxu0 %vm933_vm3, %v4719_v13 }
 0x9bb   : > { %3558 = vmatmul.mubr.msk.bf16.vlgmr.msra.gmra.mxu0 %vm830_vm2, %v1330_v16 }
 0x9bc   : > { %3578 = vmatpush3.bf16.msra.mxu0 %v1645_v17 }
 0x9bd   : > { %3579 = vmatprep.subr.bf16.mxu0 %v4730_v29 }
 0x9c0   : > { %3580 = vmatpush3.bf16.msra.mxu0 %v4730_v29 }
 0xa6b   : > { %v4734_v31 = vpop.f32.mrf.mxu0 }
 0xa6c   : > { %v1326_v56 = vpack.c.bf16 %v4734_v31, %v4734_v31 }
 0xa6d   : > { %v4736_v34 = vpop.f32.mrf.mxu0 }
 0xa6f   : > { %v3552_v18 = vpop.f32.mrf.mxu0 }
 0xa70   : > { %v828_v18 = vpack.c.bf16 %v762_v14, %v758_v63 }
 0xa71   : > { %v4738_v19 = vpop.f32.mrf.mxu0 }
 0xa72   : > { %v1325_v21 = vpack.c.bf16 %v4738_v19, %v4736_v34 }
 0xa7b   : > { %v3559_v0 = vpop.f32.mrf.mxu0 }
 0xa7c   : > { %v1390_v27 = vadd.f32 %v3559_v0, %v4462_v25 }
 0xa7d   : > { %v1381_v8 = vpop.f32.mrf.mxu0 }
 0xa7e   : > { %v1382_v24 = vadd.f32 %v1381_v8, %v4462_v25  ;;  %v1401_v44 = vsel %vm891_vm4, %v1390_v27, -inf }
 0xa7f   : > { %v3560_v26 = vpop.f32.mrf.mxu0 }
 0xa80   : > { %v1395_v32 = vsel %vm891_vm4, %v1382_v24, -inf }
 0xa81   : > { %v1384_v37 = vpop.f32.mrf.mxu0  ;;  %1396 = vmax.xlane.f32.xlu0 %v1395_v32 }
 0xa82   : > { %v1385_v40 = vadd.f32 %v1384_v37, %v4462_v25 }
 0xa84   : > { %v1398_v43 = vsel %vm891_vm4, %v1385_v40, -inf }
 0xa85   : > { %1399 = vmax.xlane.f32.xlu1 %v1398_v43  ;;  %1402 = vmax.xlane.f32.xlu0 %v1401_v44  ;;  %v1535_v43 = vrot.slane %v4572_v9, 4 }
 0xb0a   : > { %v1397_v45 = vpop.xlane.xlu0 %1396 }
 0xb0b   : > { %v1404_v46 = vsub.f32 %v1382_v24, %v1397_v45 }
 0xb0d   : > { %v1407_v47 = vmul.f32 1.442695, %v1404_v46 }
 0xb0e   : > { %v1400_v48 = vpop.xlane.xlu1 %1399  ;;  %v1403_v49 = vpop.xlane.xlu0 %1402 }
 0xb0f   : > { %3911 = vpow2.f32 %v1407_v47  ;;  %v1405_v10 = vsub.f32 %v1385_v40, %v1400_v48  ;;  %v1406_v50 = vsub.f32 %v1390_v27, %v1403_v49  ;;  %v1531_v40 = vrot.slane %v4589_v7, 4 }
 0xb11   : > { %v1409_v51 = vmul.f32 1.442695, %v1405_v10  ;;  %v1411_v55 = vmul.f32 1.442695, %v1406_v50  ;;  %v4778_v45 = vsel %vm933_vm3, %v1531_v40, %v4768_v23 }
 0xb13   : > { %3913 = vpow2.f32 %v1409_v51 }
 0xb14   : > { %3915 = vpow2.f32 %v1411_v55 }
 0xb1c   : > { %v3912_v61 = vpop.eup %3911 }
 0xb1d   : > { %v1413_v62 = vsel %vm891_vm4, %v3912_v61, 0.0 }
 0xb1e   : > { %1414 = vadd.xlane.f32.xlu0 %v1413_v62 }
 0xb20   : > { %v3914_v1 = vpop.eup %3913 }
 0xb21   : > { %v3916_v2 = vpop.eup %3915  ;;  %v1416_v3 = vsel %vm891_vm4, %v3914_v1, 0.0 }
 0xb22   : > { %1417 = vadd.xlane.f32.xlu0 %v1416_v3  ;;  %v1419_v6 = vsel %vm891_vm4, %v3916_v2, 0.0 }
 0xb23   : > { %1420 = vadd.xlane.f32.xlu1 %v1419_v6 }
 0xb34   : > { %1430 = vrot.lane.b32.xlu1 %v4591_v20, %s4271_s21 }
 0xb38   : > { %1432 = vrot.lane.b32.xlu0 %v4583_v15, %s4271_s21  ;;  %v4761_v15 = vrot.slane %v828_v18, 4 }
 0xb3a   : > { %v1548_v44 = vsel %vm830_vm2, %v4761_v15, 0  ;;  %v4782_v28 = vsel %vm933_vm3, %v1535_v43, %v4761_v15 }
 0xb3b   : > { %v1545_v9 = vsel %vm830_vm2, %v4782_v28, 0 }
 0xba7   : > { %v1415_v11 = vpop.xlane.xlu0 %1414 }
 0xba8   : > { %3917 = vrcp.f32 %v1415_v11 }
 0xbab   : > { %v1418_v12 = vpop.xlane.xlu0 %1417 }
 0xbac   : > { %v1421_v16 = vpop.xlane.xlu1 %1420  ;;  %3919 = vrcp.f32 %v1418_v12 }
 0xbad   : > { %3921 = vrcp.f32 %v1421_v16 }
 0xbaf   : > { %v1433_v17 = vpop.permute.xlu0 %1432 }
 0xbb0   : > { %v1442_v0 = vsel %vm933_vm3, %v1433_v17, 0  ;;  %3708 = vmatprep.subr.msk.bf16.mxu1 %vm933_vm3, %v1433_v17  ;;  %v1431_v20 = vpop.permute.xlu1 %1430 }
 0xbb1   : > { %3562 = vmatpush3.bf16.msra.mxu1 %v1442_v0 }
 0xbb2   : > { %3563 = vmatprep.subr.bf16.mxu1 %v1431_v20 }
 0xbb5   : > { %3564 = vmatpush3.bf16.msra.mxu1 %v1431_v20  ;;  %v3918_v35 = vpop.eup %3917 }
 0xbb6   : > { %3709 = vmatprep.subr.msk.bf16.mxu1 %vm830_vm2, %v4761_v15  ;;  %v1423_v26 = vmul.f32 %v3918_v35, %v3912_v61 }
 0xbb9   : > { %v3920_v8 = vpop.eup %3919 }
 0xbba   : > { %v3922_v24 = vpop.eup %3921  ;;  %v1425_v59 = vmul.f32 %v3920_v8, %v3914_v1 }
 0xbbb   : > { %v1427_v27 = vmul.f32 %v3922_v24, %v3916_v2 }
 0xbbc   : > { %v1428_v32 = vpack.c.bf16 %v1425_v59, %v1423_v26 }
 0xbbd   : > { %v1429_v37 = vpack.c.bf16 %v1427_v27, %v1427_v27 }
 0xbbe   : > { %3565 = vmatprep.mubr.msk.bf16.mxu1 %vm891_vm4, %v1428_v32 }
 0xbbf   : > { %3566 = vmatmul.mubr.msk.bf16.vlgmr.msra.gmra.mxu1 %vm891_vm4, %v1429_v37 }
 0xbc0   : > { %3570 = vmatpush3.bf16.xpose.msra.mxu1 %v1548_v44  ;;  %3573 = vmatprep.mubr.msk.bf16.mxu1 %vm830_vm2, %v4778_v45 }
 0xbc1   : > { %3710 = vmatprep.subr.msk.bf16.mxu1 %vm830_vm2, %v4782_v28 }
 0xbc8   : > { %3572 = vmatpush3.bf16.xpose.msra.mxu1 %v1545_v9 }
 0xbcf   : > { %3574 = vmatmul.mubr.msk.bf16.vlgmr.msra.gmra.mxu1 %vm830_vm2, %v4768_v23 }
 0xc7f   : > { %v4792_v7 = vpop.f32.mrf.mxu1 }
 0xc81   : > { %v4794_v30 = vpop.f32.mrf.mxu1 }
 0xc83   : > { %v3568_v33 = vpop.f32.mrf.mxu1 }
 0xc85   : > { %v4796_v46 = vpop.f32.mrf.mxu1 }
 0xc86   : > { %v1492_v47 = vpack.c.bf16 %v4796_v46, %v4794_v30 }
 0xc8f   : > { %v3575_v48 = vpop.f32.mrf.mxu1 }
 0xc90   : > { %v1593_v62 = vadd.f32 %v3575_v48, %v4462_v25 }
 0xc91   : > { %v1584_v49 = vpop.f32.mrf.mxu1 }
 0xc92   : > { %v1585_v10 = vadd.f32 %v1584_v49, %v4462_v25  ;;  %v1604_v2 = vsel %vm891_vm4, %v1593_v62, -inf }
 0xc93   : > { %v3576_v50 = vpop.f32.mrf.mxu1 }
 0xc94   : > { %v1598_v51 = vsel %vm891_vm4, %v1585_v10, -inf }
 0xc95   : > { %v1587_v55 = vpop.f32.mrf.mxu1  ;;  %1599 = vmax.xlane.f32.xlu1 %v1598_v51 }
 0xc96   : > { %v1588_v61 = vadd.f32 %v1587_v55, %v4462_v25 }
 0xc98   : > { %v1601_v1 = vsel %vm891_vm4, %v1588_v61, -inf }
 0xc99   : > { %1602 = vmax.xlane.f32.xlu0 %v1601_v1 }
 0xc9d   : > { %1605 = vmax.xlane.f32.xlu0 %v1604_v2 }
 0xd1e   : > { %v1600_v3 = vpop.xlane.xlu1 %1599 }
 0xd1f   : > { %v1607_v6 = vsub.f32 %v1585_v10, %v1600_v3 }
 0xd21   : > { %v1610_v11 = vmul.f32 1.442695, %v1607_v6 }
 0xd22   : > { %v1603_v12 = vpop.xlane.xlu0 %1602 }
 0xd23   : > { %3923 = vpow2.f32 %v1610_v11  ;;  %v1608_v14 = vsub.f32 %v1588_v61, %v1603_v12 }
 0xd25   : > { %v1612_v16 = vmul.f32 1.442695, %v1608_v14 }
 0xd26   : > { %v1606_v63 = vpop.xlane.xlu0 %1605 }
 0xd27   : > { %3925 = vpow2.f32 %v1612_v16  ;;  %v1609_v17 = vsub.f32 %v1593_v62, %v1606_v63 }
 0xd29   : > { %v1614_v18 = vmul.f32 1.442695, %v1609_v17 }
 0xd2b   : > { %3927 = vpow2.f32 %v1614_v18 }
 0xd30   : > { %v3924_v0 = vpop.eup %3923 }
 0xd31   : > { %v1616_v20 = vsel %vm891_vm4, %v3924_v0, 0.0 }
 0xd32   : > { %1617 = vadd.xlane.f32.xlu1 %v1616_v20 }
 0xd34   : > { %v3926_v35 = vpop.eup %3925 }
 0xd35   : > { %v1619_v8 = vsel %vm891_vm4, %v3926_v35, 0.0 }
 0xd36   : > { %1620 = vadd.xlane.f32.xlu0 %v1619_v8 }
 0xd38   : > { %v3928_v24 = vpop.eup %3927 }
 0xd39   : > { %v1622_v26 = vsel %vm891_vm4, %v3928_v24, 0.0 }
 0xd3a   : > { %1623 = vadd.xlane.f32.xlu1 %v1622_v26 }
 0xd4b   : > { %1701 = vrot.lane.b32.xlu1 %v4782_v28, %s4269_s30 }
 0xd4c   : > { %1703 = vrot.lane.b32.xlu0 %v4761_v15, %s4269_s30 }
 0xd4f   : > { %1697 = vrot.lane.b32.xlu1 %v4778_v45, %s4269_s30 }
 0xd53   : > { %1699 = vrot.lane.b32.xlu1 %v4768_v23, %s4269_s30 }
 0xdbb   : > { %v1618_v59 = vpop.xlane.xlu1 %1617 }
 0xdbc   : > { %3929 = vrcp.f32 %v1618_v59 }
 0xdbf   : > { %v1621_v27 = vpop.xlane.xlu0 %1620 }
 0xdc0   : > { %3931 = vrcp.f32 %v1621_v27 }
 0xdc3   : > { %v1704_v32 = vpop.permute.xlu0 %1703  ;;  %v1624_v37 = vpop.xlane.xlu1 %1623 }
 0xdc4   : > { %3933 = vrcp.f32 %v1624_v37  ;;  %3712 = vmatprep.subr.msk.bf16.mxu0 %vm830_vm2, %v1704_v32  ;;  %v1715_v51 = vsel %vm830_vm2, %v1704_v32, 0 }
 0xdc7   : > { %v1702_v33 = vpop.permute.xlu1 %1701 }
 0xdc8   : > { %v1712_v61 = vsel %vm830_vm2, %v1702_v33, 0 }
 0xdc9   : > { %v3930_v40 = vpop.eup %3929 }
 0xdca   : > { %v1626_v44 = vmul.f32 %v3930_v40, %v3924_v0 }
 0xdcb   : > { %v1698_v55 = vpop.permute.xlu1 %1697 }
 0xdcd   : > { %v3932_v43 = vpop.eup %3931 }
 0xdce   : > { %v1628_v9 = vmul.f32 %v3932_v43, %v3926_v35 }
 0xdcf   : > { %v1700_v62 = vpop.permute.xlu1 %1699 }
 0xdd0   : > { %v1631_v48 = vpack.c.bf16 %v1628_v9, %v1626_v44 }
 0xdd1   : > { %v3934_v49 = vpop.eup %3933 }
 0xdd2   : > { %3581 = vmatprep.mubr.msk.bf16.mxu0 %vm891_vm4, %v1631_v48  ;;  %v1630_v10 = vmul.f32 %v3934_v49, %v3928_v24 }
 0xdd4   : > { %v1632_v50 = vpack.c.bf16 %v1630_v10, %v1630_v10 }
 0xdd6   : > { %3582 = vmatmul.mubr.msk.bf16.vlgmr.msra.gmra.mxu0 %vm891_vm4, %v1632_v50 }
 0xdd7   : > { %3586 = vmatpush3.bf16.xpose.msra.mxu0 %v1715_v51  ;;  %3589 = vmatprep.mubr.msk.bf16.mxu0 %vm830_vm2, %v1698_v55 }
 0xdd8   : > { %3713 = vmatprep.subr.msk.bf16.mxu0 %vm830_vm2, %v1702_v33 }
 0xddf   : > { %3588 = vmatpush3.bf16.xpose.msra.mxu0 %v1712_v61 }
 0xde6   : > { %3590 = vmatmul.mubr.msk.bf16.vlgmr.msra.gmra.mxu0 %vm830_vm2, %v1700_v62 }
 0xe96   : > { %v4825_v1 = vpop.f32.mrf.mxu0 }
 0xe98   : > { %v4827_v2 = vpop.f32.mrf.mxu0 }
 0xe9a   : > { %v3584_v3 = vpop.f32.mrf.mxu0 }
 0xe9c   : > { %v4829_v6 = vpop.f32.mrf.mxu0 }
 0xe9d   : > { %v1695_v11 = vpack.c.bf16 %v4829_v6, %v4827_v2  ;;  %v1696_v6 = vpack.c.bf16 %v4825_v1, %v4825_v1  ;;  %v4009_v1 = vld [vmem:[#allocation2 + $0x8] sm:$0xff] }
 0xea6   : > { %v3591_v12 = vpop.f32.mrf.mxu0 }
 0xea7   : > { %v1760_v17 = vadd.f32 %v3591_v12, %v4462_v25 }
 0xea8   : > { %v1751_v14 = vpop.f32.mrf.mxu0 }
 0xea9   : > { %v1752_v16 = vadd.f32 %v1751_v14, %v4462_v25  ;;  %v1771_v8 = vsel %vm891_vm4, %v1760_v17, -inf }
 0xeaa   : > { %v3592_v63 = vpop.f32.mrf.mxu0 }
 0xeab   : > { %v1765_v18 = vsel %vm891_vm4, %v1752_v16, -inf }
 0xeac   : > { %v1754_v0 = vpop.f32.mrf.mxu0  ;;  %1766 = vmax.xlane.f32.xlu0 %v1765_v18 }
 0xead   : > { %v1755_v20 = vadd.f32 %v1754_v0, %v4462_v25 }
 0xeaf   : > { %v1768_v35 = vsel %vm891_vm4, %v1755_v20, -inf }
 0xeb0   : > { %1769 = vmax.xlane.f32.xlu1 %v1768_v35  ;;  %1772 = vmax.xlane.f32.xlu0 %v1771_v8 }
 0xf35   : > { %v1767_v24 = vpop.xlane.xlu0 %1766 }
 0xf36   : > { %v1774_v26 = vsub.f32 %v1752_v16, %v1767_v24 }
 0xf38   : > { %v1777_v59 = vmul.f32 1.442695, %v1774_v26 }
 0xf39   : > { %v1770_v27 = vpop.xlane.xlu1 %1769  ;;  %v1773_v32 = vpop.xlane.xlu0 %1772 }
 0xf3a   : > { %3935 = vpow2.f32 %v1777_v59  ;;  %v1775_v37 = vsub.f32 %v1755_v20, %v1770_v27  ;;  %v1776_v40 = vsub.f32 %v1760_v17, %v1773_v32 }
 0xf3c   : > { %v1779_v43 = vmul.f32 1.442695, %v1775_v37  ;;  %v1781_v44 = vmul.f32 1.442695, %v1776_v40 }
 0xf3e   : > { %3937 = vpow2.f32 %v1779_v43 }
 0xf3f   : > { %3939 = vpow2.f32 %v1781_v44 }
 0xf47   : > { %v3936_v9 = vpop.eup %3935 }
 0xf48   : > { %v1783_v33 = vsel %vm891_vm4, %v3936_v9, 0.0 }
 0xf49   : > { %1784 = vadd.xlane.f32.xlu0 %v1783_v33 }
 0xf4b   : > { %v3938_v48 = vpop.eup %3937 }
 0xf4c   : > { %v3940_v49 = vpop.eup %3939  ;;  %v1786_v10 = vsel %vm891_vm4, %v3938_v48, 0.0 }
 0xf4d   : > { %1787 = vadd.xlane.f32.xlu0 %v1786_v10  ;;  %v1789_v50 = vsel %vm891_vm4, %v3940_v49, 0.0 }
 0xf4e   : > { %1790 = vadd.xlane.f32.xlu1 %v1789_v50 }
 0xf5f   : > { %1800 = vrot.lane.b32.xlu1 %v4730_v29, %s4269_s30 }
 0xf63   : > { %1870 = vrot.lane.b32.xlu1 %v4761_v15, %s4270_s9  ;;  %1802 = vrot.lane.b32.xlu0 %v4719_v13, %s4269_s30 }
 0xf67   : > { %1868 = vrot.lane.b32.xlu1 %v4782_v28, %s4270_s9  ;;  %1864 = vrot.lane.b32.xlu0 %v4778_v45, %s4270_s9 }
 0xf6b   : > { %1866 = vrot.lane.b32.xlu1 %v4768_v23, %s4270_s9 }
 0xfd2   : > { %v1785_v51 = vpop.xlane.xlu0 %1784 }
 0xfd3   : > { %3941 = vrcp.f32 %v1785_v51 }
 0xfd6   : > { %v1788_v55 = vpop.xlane.xlu0 %1787 }
 0xfd7   : > { %v1791_v61 = vpop.xlane.xlu1 %1790  ;;  %3943 = vrcp.f32 %v1788_v55 }
 0xfd8   : > { %3945 = vrcp.f32 %v1791_v61 }
 0xfda   : > { %v1803_v62 = vpop.permute.xlu0 %1802 }
 0xfdb   : > { %v1801_v3 = vpop.permute.xlu1 %1800  ;;  %v1812_v12 = vsel %vm933_vm3, %v1803_v62, 0  ;;  %3714 = vmatprep.subr.msk.bf16.mxu1 %vm933_vm3, %v1803_v62 }
 0xfdc   : > { %3594 = vmatpush3.bf16.msra.mxu1 %v1812_v12 }
 0xfdd   : > { %3595 = vmatprep.subr.bf16.mxu1 %v1801_v3 }
 0xfde   : > { %v1865_v26 = vpop.permute.xlu0 %1864 }
 0xfdf   : > { %v1871_v14 = vpop.permute.xlu1 %1870 }
 0xfe0   : > { %3596 = vmatpush3.bf16.msra.mxu1 %v1801_v3  ;;  %v3942_v16 = vpop.eup %3941  ;;  %v1882_v24 = vsel %vm830_vm2, %v1871_v14, 0 }
 0xfe1   : > { %3715 = vmatprep.subr.msk.bf16.mxu1 %vm830_vm2, %v1871_v14  ;;  %v1793_v18 = vmul.f32 %v3942_v16, %v3936_v9 }
 0xfe3   : > { %v1869_v59 = vpop.permute.xlu1 %1868 }
 0xfe4   : > { %v3944_v63 = vpop.eup %3943  ;;  %v1879_v27 = vsel %vm830_vm2, %v1869_v59, 0 }
 0xfe5   : > { %v3946_v17 = vpop.eup %3945  ;;  %v1795_v0 = vmul.f32 %v3944_v63, %v3938_v48 }
 0xfe6   : > { %v1797_v20 = vmul.f32 %v3946_v17, %v3940_v49 }
 0xfe7   : > { %v1798_v35 = vpack.c.bf16 %v1795_v0, %v1793_v18  ;;  %v1867_v32 = vpop.permute.xlu1 %1866 }
 0xfe8   : > { %v1799_v8 = vpack.c.bf16 %v1797_v20, %v1797_v20 }
 0xfe9   : > { %3597 = vmatprep.mubr.msk.bf16.mxu1 %vm891_vm4, %v1798_v35 }
 0xfea   : > { %3598 = vmatmul.mubr.msk.bf16.vlgmr.msra.gmra.mxu1 %vm891_vm4, %v1799_v8 }
 0xfeb   : > { %3602 = vmatpush3.bf16.xpose.msra.mxu1 %v1882_v24  ;;  %3605 = vmatprep.mubr.msk.bf16.mxu1 %vm830_vm2, %v1865_v26 }
 0xfec   : > { %3716 = vmatprep.subr.msk.bf16.mxu1 %vm830_vm2, %v1869_v59 }
 0xff3   : > { %3604 = vmatpush3.bf16.xpose.msra.mxu1 %v1879_v27 }
 0xffa   : > { %3606 = vmatmul.mubr.msk.bf16.vlgmr.msra.gmra.mxu1 %vm830_vm2, %v1867_v32 }
0x10aa   : > { %v4864_v37 = vpop.f32.mrf.mxu1 }
0x10ac   : > { %v4866_v40 = vpop.f32.mrf.mxu1 }
0x10ae   : > { %v3600_v43 = vpop.f32.mrf.mxu1 }
0x10b0   : > { %v4868_v44 = vpop.f32.mrf.mxu1 }
0x10b1   : > { %v1862_v9 = vpack.c.bf16 %v4868_v44, %v4866_v40 }
0x10ba   : > { %v3607_v33 = vpop.f32.mrf.mxu1 }
0x10bb   : > { %v1927_v50 = vadd.f32 %v3607_v33, %v4462_v25 }
0x10bc   : > { %v1918_v48 = vpop.f32.mrf.mxu1 }
0x10bd   : > { %v1919_v49 = vadd.f32 %v1918_v48, %v4462_v25  ;;  %v1938_v3 = vsel %vm891_vm4, %v1927_v50, -inf }
0x10be   : > { %v3608_v10 = vpop.f32.mrf.mxu1 }
0x10bf   : > { %v1932_v51 = vsel %vm891_vm4, %v1919_v49, -inf }
0x10c0   : > { %v1921_v55 = vpop.f32.mrf.mxu1  ;;  %1933 = vmax.xlane.f32.xlu0 %v1932_v51 }
0x10c1   : > { %v1922_v61 = vadd.f32 %v1921_v55, %v4462_v25 }
0x10c3   : > { %v1935_v62 = vsel %vm891_vm4, %v1922_v61, -inf }
0x10c4   : > { %1936 = vmax.xlane.f32.xlu1 %v1935_v62  ;;  %1939 = vmax.xlane.f32.xlu0 %v1938_v3 }
0x1149   : > { %v1934_v12 = vpop.xlane.xlu0 %1933 }
0x114a   : > { %v1941_v14 = vsub.f32 %v1919_v49, %v1934_v12 }
0x114c   : > { %v1944_v16 = vmul.f32 1.442695, %v1941_v14 }
0x114d   : > { %v1937_v63 = vpop.xlane.xlu1 %1936  ;;  %v1940_v17 = vpop.xlane.xlu0 %1939 }
0x114e   : > { %3947 = vpow2.f32 %v1944_v16  ;;  %v1942_v18 = vsub.f32 %v1922_v61, %v1937_v63  ;;  %v1943_v0 = vsub.f32 %v1927_v50, %v1940_v17 }
0x1150   : > { %v1946_v20 = vmul.f32 1.442695, %v1942_v18  ;;  %v1948_v35 = vmul.f32 1.442695, %v1943_v0 }
0x1152   : > { %3949 = vpow2.f32 %v1946_v20 }
0x1153   : > { %3951 = vpow2.f32 %v1948_v35 }
0x115b   : > { %v3948_v8 = vpop.eup %3947 }
0x115c   : > { %v1950_v24 = vsel %vm891_vm4, %v3948_v8, 0.0 }
0x115d   : > { %1951 = vadd.xlane.f32.xlu0 %v1950_v24 }
0x115f   : > { %v3950_v26 = vpop.eup %3949 }
0x1160   : > { %v3952_v59 = vpop.eup %3951  ;;  %v1953_v27 = vsel %vm891_vm4, %v3950_v26, 0.0 }
0x1161   : > { %1954 = vadd.xlane.f32.xlu0 %v1953_v27  ;;  %v1956_v32 = vsel %vm891_vm4, %v3952_v59, 0.0 }
0x1162   : > { %1957 = vadd.xlane.f32.xlu1 %v1956_v32 }
0x1173   : > { %1967 = vrot.lane.b32.xlu1 %v4730_v29, %s4270_s9 }
0x1177   : > { %2037 = vrot.lane.b32.xlu1 %v4761_v15, %s4271_s21  ;;  %1969 = vrot.lane.b32.xlu0 %v4719_v13, %s4270_s9 }
0x117b   : > { %2035 = vrot.lane.b32.xlu1 %v4782_v28, %s4271_s21  ;;  %2031 = vrot.lane.b32.xlu0 %v4778_v45, %s4271_s21 }
0x117f   : > { %2033 = vrot.lane.b32.xlu1 %v4768_v23, %s4271_s21 }
0x11e6   : > { %v1952_v43 = vpop.xlane.xlu0 %1951 }
0x11e7   : > { %3953 = vrcp.f32 %v1952_v43 }
0x11ea   : > { %v1955_v33 = vpop.xlane.xlu0 %1954 }
0x11eb   : > { %v1958_v48 = vpop.xlane.xlu1 %1957  ;;  %3955 = vrcp.f32 %v1955_v33 }
0x11ec   : > { %3957 = vrcp.f32 %v1958_v48 }
0x11ee   : > { %v1970_v49 = vpop.permute.xlu0 %1969 }
0x11ef   : > { %v1968_v15 = vpop.permute.xlu1 %1967  ;;  %v1979_v10 = vsel %vm933_vm3, %v1970_v49, 0  ;;  %3717 = vmatprep.subr.msk.bf16.mxu0 %vm933_vm3, %v1970_v49 }
0x11f0   : > { %3610 = vmatpush3.bf16.msra.mxu0 %v1979_v10 }
0x11f1   : > { %3611 = vmatprep.subr.bf16.mxu0 %v1968_v15 }
0x11f2   : > { %v2032_v14 = vpop.permute.xlu0 %2031 }
0x11f3   : > { %v2038_v28 = vpop.permute.xlu1 %2037 }
0x11f4   : > { %3612 = vmatpush3.bf16.msra.mxu0 %v1968_v15  ;;  %v3954_v45 = vpop.eup %3953  ;;  %v2049_v12 = vsel %vm830_vm2, %v2038_v28, 0 }
0x11f5   : > { %3718 = vmatprep.subr.msk.bf16.mxu0 %vm830_vm2, %v2038_v28  ;;  %v1960_v51 = vmul.f32 %v3954_v45, %v3948_v8 }
0x11f7   : > { %v2036_v16 = vpop.permute.xlu1 %2035 }
0x11f8   : > { %v3956_v23 = vpop.eup %3955  ;;  %v2046_v63 = vsel %vm830_vm2, %v2036_v16, 0 }
0x11f9   : > { %v3958_v50 = vpop.eup %3957  ;;  %v1962_v55 = vmul.f32 %v3956_v23, %v3950_v26 }
0x11fa   : > { %v1964_v61 = vmul.f32 %v3958_v50, %v3952_v59 }
0x11fb   : > { %v1965_v62 = vpack.c.bf16 %v1962_v55, %v1960_v51  ;;  %v2034_v17 = vpop.permute.xlu1 %2033 }
0x11fc   : > { %v1966_v3 = vpack.c.bf16 %v1964_v61, %v1964_v61 }
0x11fd   : > { %3613 = vmatprep.mubr.msk.bf16.mxu0 %vm891_vm4, %v1965_v62 }
0x11fe   : > { %3614 = vmatmul.mubr.msk.bf16.vlgmr.msra.gmra.mxu0 %vm891_vm4, %v1966_v3 }
0x11ff   : > { %3618 = vmatpush3.bf16.xpose.msra.mxu0 %v2049_v12  ;;  %3621 = vmatprep.mubr.msk.bf16.mxu0 %vm830_vm2, %v2032_v14 }
0x1200   : > { %3719 = vmatprep.subr.msk.bf16.mxu0 %vm830_vm2, %v2036_v16 }
0x1207   : > { %3620 = vmatpush3.bf16.xpose.msra.mxu0 %v2046_v63 }
0x120e   : > { %3622 = vmatmul.mubr.msk.bf16.vlgmr.msra.gmra.mxu0 %vm830_vm2, %v2034_v17 }
0x120f   : > { %2612 = vmatprep.mubr.bf16.mxu0 %v4267_v36 }
0x12be   : > { %v4904_v18 = vpop.f32.mrf.mxu0 }
0x12c0   : > { %v2015_v0 = vpop.f32.mrf.mxu0 }
0x12c2   : > { %v3616_v20 = vpop.f32.mrf.mxu0 }
0x12c3   : > { %v3816_v20 = vld [vmem:[%s4932_s15 + $0x30] sm:$0xff]  }
0x12c4   : > { %v2018_v35 = vpop.f32.mrf.mxu0 }
0x12c5   : > { %v2029_v8 = vpack.c.bf16 %v2018_v35, %v2015_v0  ;;  %v3817_v35 = vld [vmem:[%s4932_s15 + $0x28] sm:$0xff]  }
0x12ce   : > { %v3623_v24 = vpop.f32.mrf.mxu0 }
0x12cf   : > { %v2094_v32 = vadd.f32 %v3623_v24, %v4462_v25  ;;  %v3819_v24 = vld [vmem:[%s4932_s15 + $0x18] sm:$0xff]  }
0x12d0   : > { %v2085_v26 = vpop.f32.mrf.mxu0 }
0x12d1   : > { %v2086_v59 = vadd.f32 %v2085_v26, %v4462_v25  ;;  %v2105_v15 = vsel %vm891_vm4, %v2094_v32, -inf  ;;  %v3820_v26 = vld [vmem:[%s4932_s15 + $0x10] sm:$0xff]  }
0x12d2   : > { %v3624_v27 = vpop.f32.mrf.mxu0 }
0x12d3   : > { %v2099_v43 = vsel %vm891_vm4, %v2086_v59, -inf  ;;  %v3821_v27 = vld [vmem:[%s4932_s15 + $0x8] sm:$0xff]  }
0x12d4   : > { %v2088_v33 = vpop.f32.mrf.mxu0  ;;  %2100 = vmax.xlane.f32.xlu0 %v2099_v43  ;;  %v3822_v43 = vld [vmem:[%s4932_s15] sm:$0xff]  }
0x12d5   : > { %v2089_v48 = vadd.f32 %v2088_v33, %v4462_v25  ;;  %v2992_v25 = vrot.slane (%p413_p3), %v2966_v22, %v4536_v60 }
0x12d7   : > { %v2102_v49 = vsel %vm891_vm4, %v2089_v48, -inf }
0x12d8   : > { %2103 = vmax.xlane.f32.xlu1 %v2102_v49  ;;  %2106 = vmax.xlane.f32.xlu0 %v2105_v15 }
0x135d   : > { %v2101_v10 = vpop.xlane.xlu0 %2100 }
0x135e   : > { %v2108_v28 = vsub.f32 %v2086_v59, %v2101_v10 }
0x1360   : > { %v2111_v45 = vmul.f32 1.442695, %v2108_v28 }
0x1361   : > { %v2104_v23 = vpop.xlane.xlu1 %2103  ;;  %v2107_v50 = vpop.xlane.xlu0 %2106 }
0x1362   : > { %3959 = vpow2.f32 %v2111_v45  ;;  %v2109_v51 = vsub.f32 %v2089_v48, %v2104_v23  ;;  %v2110_v55 = vsub.f32 %v2094_v32, %v2107_v50  ;;  %v1493_v23 = vpack.c.bf16 %v4792_v7, %v4792_v7  ;;  %v4007_v7 = vld [vmem:[#allocation2 + $0x10] sm:$0xff] }
0x1363   : > { %v2030_v50 = vpack.c.bf16 %v4904_v18, %v4904_v18  ;;  %v4008_v18 = vld [vmem:[#allocation2 + $0x28] sm:$0xff] }
0x1364   : > { %v2113_v61 = vmul.f32 1.442695, %v2109_v51  ;;  %v2115_v62 = vmul.f32 1.442695, %v2110_v55  ;;  %v4989_v55 = vld [vmem:[%s427_s25] sm:$0x3] }
0x1366   : > { %3961 = vpow2.f32 %v2113_v61 }
0x1367   : > { %3963 = vpow2.f32 %v2115_v62 }
0x136f   : > { %v3960_v3 = vpop.eup %3959 }
0x1370   : > { %v2117_v12 = vsel %vm891_vm4, %v3960_v3, 0.0 }
0x1371   : > { %2118 = vadd.xlane.f32.xlu0 %v2117_v12 }
0x1373   : > { %v3962_v14 = vpop.eup %3961 }
0x1374   : > { %v3964_v16 = vpop.eup %3963  ;;  %v2120_v63 = vsel %vm891_vm4, %v3962_v14, 0.0 }
0x1375   : > { %2121 = vadd.xlane.f32.xlu0 %v2120_v63  ;;  %v2123_v17 = vsel %vm891_vm4, %v3964_v16, 0.0 }
0x1376   : > { %2124 = vadd.xlane.f32.xlu1 %v2123_v17 }
0x1387   : > { %2134 = vrot.lane.b32.xlu1 %v4730_v29, %s4271_s21 }
0x138b   : > { %1496 = vrot.lane.b32.xlu1 %v1158_v58, %s4271_s21  ;;  %2136 = vrot.lane.b32.xlu0 %v4719_v13, %s4271_s21  ;;  %v1863_v58 = vpack.c.bf16 %v4864_v37, %v4864_v37 }
0x138f   : > { %1502 = vrot.lane.b32.xlu1 %v1325_v21, %s4270_s9  ;;  %1508 = vrot.lane.b32.xlu0 %v1492_v47, %s4269_s30 }
0x1393   : > { %2200 = vrot.lane.b32.xlu1 %v1862_v9, %s4271_s21  ;;  %2206 = vrot.lane.b32.xlu0 %v2029_v8, %s4270_s9  ;;  %v3815_v9 = vld [vmem:[%s4932_s15 + $0x38] sm:$0xff]   ;;  %v3818_v8 = vld [vmem:[%s4932_s15 + $0x20] sm:$0xff]  }
0x1397   : > { %1498 = vrot.lane.b32.xlu1 %v1159_v53, %s4271_s21 }
0x139b   : > { %1504 = vrot.lane.b32.xlu1 %v1326_v56, %s4270_s9 }
0x139f   : > { %2202 = vrot.lane.b32.xlu1 %v1863_v58, %s4271_s21 }
0x13fa   : > { %v2119_v13 = vpop.xlane.xlu0 %2118 }
0x13fb   : > { %3965 = vrcp.f32 %v2119_v13 }
0x13fe   : > { %v2122_v29 = vpop.xlane.xlu0 %2121 }
0x13ff   : > { %v2125_v34 = vpop.xlane.xlu1 %2124  ;;  %3967 = vrcp.f32 %v2122_v29 }
0x1400   : > { %3969 = vrcp.f32 %v2125_v34 }
0x1402   : > { %v2137_v52 = vpop.permute.xlu0 %2136 }
0x1403   : > { %v2146_v19 = vsel %vm933_vm3, %v2137_v52, 0  ;;  %3720 = vmatprep.subr.msk.bf16.mxu1 %vm933_vm3, %v2137_v52  ;;  %v2135_v31 = vpop.permute.xlu1 %2134 }
0x1404   : > { %3626 = vmatpush3.bf16.msra.mxu1 %v2146_v19  ;;  %v986_v19 = vpack.c.bf16 %v4640_v38, %v4640_v38 }
0x1405   : > { %3627 = vmatprep.subr.bf16.mxu1 %v2135_v31 }
0x1406   : > { %v1509_v49 = vpop.permute.xlu0 %1508 }
0x1407   : > { %v1497_v59 = vpop.permute.xlu1 %1496 }
0x1408   : > { %3628 = vmatpush3.bf16.msra.mxu1 %v2135_v31  ;;  %v3966_v21 = vpop.eup %3965  ;;  %v1514_v33 = vsel %vm830_vm2, %v985_v42, %v1497_v59 }
0x1409   : > { %3633 = vmatprep.subr.bf16.mxu1 %v4266_v57  ;;  %v2127_v47 = vmul.f32 %v3966_v21, %v3960_v3  ;;  %v4993_v3 = vrot.slane %v4989_v55, %v4536_v60 }
0x140a   : > { %v2207_v58 = vpop.permute.xlu0 %2206 }
0x140b   : > { %v1503_v32 = vpop.permute.xlu1 %1502 }
0x140c   : > { %v3968_v30 = vpop.eup %3967  ;;  %v1520_v48 = vsel %vm1518_vm5, %v1514_v33, %v1503_v32 }
0x140d   : > { %v3970_v46 = vpop.eup %3969  ;;  %v2129_v37 = vmul.f32 %v3968_v30, %v3962_v14  ;;  %v1525_v15 = vsel %vm1523_vm6, %v1520_v48, %v1509_v49 }
0x140e   : > { %v2131_v40 = vmul.f32 %v3970_v46, %v3964_v16 }
0x140f   : > { %v2132_v44 = vpack.c.bf16 %v2129_v37, %v2127_v47  ;;  %v2201_v53 = vpop.permute.xlu1 %2200 }
0x1410   : > { %v2133_v0 = vpack.c.bf16 %v2131_v40, %v2131_v40  ;;  %v2218_v13 = vsel %vm830_vm2, %v1695_v11, %v2201_v53  ;;  %v3828_v53 = vld [vmem:[%s5053_s10 + $0x64] ss:$8 sps:$4 sm:$0xff]  }
0x1411   : > { %3629 = vmatprep.mubr.msk.bf16.mxu1 %vm891_vm4, %v2132_v44  ;;  %v2223_v34 = vsel %vm1518_vm5, %v2218_v13, %v2207_v58  ;;  %v3831_v58 = vld [vmem:[%s5053_s10 + $0x54] ss:$8 sps:$4 sm:$0xff]   ;;  %v3829_v13 = vld [vmem:[%s5053_s10 + $0x50] ss:$8 sps:$4 sm:$0xff]  }
0x1412   : > { %3630 = vmatmul.mubr.msk.bf16.vlgmr.msra.gmra.mxu1 %vm891_vm4, %v2133_v0 }
0x1413   : > { %3634 = vmatpush3.bf16.msra.mxu1 %v3815_v9  ;;  %3649 = vmatprep.mubr.msk.bf16.mxu1 %vm4268_vm1, %v4266_v57  ;;  %v1499_v56 = vpop.permute.xlu1 %1498 }
0x1414   : > { %3635 = vmatprep.subr.bf16.mxu1 %v4266_v57  ;;  %v1517_v21 = vsel %vm830_vm2, %v986_v19, %v1499_v56  ;;  %v3826_v56 = vld [vmem:[%s5053_s10 + $0x60] ss:$8 sps:$4 sm:$0xff]   ;;  %v3835_v19 = vld [vmem:[%s5053_s10 + $0x30] ss:$8 sps:$4 sm:$0xff]  }
0x1417   : > { %3636 = vmatpush3.bf16.msra.mxu1 %v3816_v20  ;;  %v1505_v29 = vpop.permute.xlu1 %1504 }
0x1418   : > { %3637 = vmatprep.subr.bf16.mxu1 %v4266_v57  ;;  %v1522_v30 = vsel %vm1518_vm5, %v1517_v21, %v1505_v29  ;;  %v3832_v29 = vld [vmem:[%s5053_s10 + $0x40] ss:$8 sps:$4 sm:$0xff]  }
0x1419   : > { %v3838_v21 = vld [vmem:[%s5053_s10 + $0x20] ss:$8 sps:$4 sm:$0xff]  }
0x141b   : > { %3638 = vmatpush3.bf16.msra.mxu1 %v3817_v35  ;;  %v2203_v37 = vpop.permute.xlu1 %2202 }
0x141c   : > { %3639 = vmatprep.subr.bf16.mxu1 %v4266_v57  ;;  %v2221_v40 = vsel %vm830_vm2, %v1696_v6, %v2203_v37  ;;  %v3844_v37 = vld [vmem:[%s5053_s10] ss:$8 sps:$4 sm:$0xff]  }
0x141f   : > { %3640 = vmatpush3.bf16.msra.mxu1 %v3818_v8 }
0x1420   : > { %3641 = vmatprep.subr.bf16.mxu1 %v4266_v57 }
0x1423   : > { %3642 = vmatpush3.bf16.msra.mxu1 %v3819_v24 }
0x1424   : > { %3643 = vmatprep.subr.bf16.mxu1 %v4266_v57 }
0x1427   : > { %3644 = vmatpush3.bf16.msra.mxu1 %v3820_v26 }
0x1428   : > { %3645 = vmatprep.subr.bf16.mxu1 %v4266_v57 }
0x142b   : > { %3646 = vmatpush3.bf16.msra.mxu1 %v3821_v27 }
0x142c   : > { %3647 = vmatprep.subr.bf16.mxu1 %v4266_v57 }
0x142f   : > { %3648 = vmatpush3.bf16.msra.mxu1 %v3822_v43  ;;  %v4010_v43 = vld [vmem:[#allocation2] sm:$0xff] }
0x1432   : > { %3650 = vmatmul.mubr.bf16.vlgmr.msra.gmra.mxu1 %v1525_v15 }
0x1433   : > { %3653 = vmatprep.mubr.msk.bf16.mxu1 %vm4268_vm1, %v4266_v57 }
0x14d2   : > { %v3631_v10 = vpop.f32.mrf.mxu1 }
0x14d3   : > { %v2197_v28 = vpack.c.bf16 %v3631_v10, %v3631_v10 }
0x14d4   : > { %v2182_v45 = vpop.f32.mrf.mxu1 }
0x14d5   : > { %2214 = vrot.lane.b32.xlu1 %v2197_v28, %s4269_s30  ;;  %v4011_v28 = vld [vmem:[#allocation2 + $0x18] sm:$0xff] }
0x14d6   : > { %v3632_v39 = vpop.f32.mrf.mxu1 }
0x14d8   : > { %v2185_v41 = vpop.f32.mrf.mxu1 }
0x14d9   : > { %v2196_v42 = vpack.c.bf16 %v2185_v41, %v2182_v45 }
0x14db   : > { %2212 = vrot.lane.b32.xlu0 %v2196_v42, %s4269_s30 }
0x14df   : > { %1510 = vrot.lane.b32.xlu0 %v1493_v23, %s4269_s30 }
0x14e3   : > { %2208 = vrot.lane.b32.xlu0 %v2030_v50, %s4270_s9 }
0x14f2   : > { %v2340_v51 = vpop.f32.mrf.mxu1 }
0x14f3   : > { %v2363_v63 = vadd.f32 %v4008_v18, %v2340_v51  ;;  %v4012_v51 = vld [vmem:[#allocation2 + $0x20] sm:$0xff] }
0x14f4   : > { %v3651_v61 = vpop.f32.mrf.mxu1 }
0x14f5   : > { %v5000_v17 = vadd.f32 %v4993_v3, %v2363_v63  ;;  %v3823_v63 = vld [vmem:[%s5053_s10 + $0x70] ss:$8 sps:$4 sm:$0xff]  }
0x14f6   : > { %v2343_v62 = vpop.f32.mrf.mxu1 }
0x14f7   : > { %v2364_v12 = vadd.f32 %v4007_v7, %v2343_v62 }
0x14f8   : > { %v3652_v14 = vpop.f32.mrf.mxu1 }
0x14f9   : > { %v4996_v16 = vadd.f32 %v4993_v3, %v2364_v12 }
0x14fb   : > { %2381 = vadd.xlane.f32.xlu1 %v4996_v16 }
0x1502   : > { %2379 = vadd.xlane.f32.xlu0 %v5000_v17 }
0x1547   : > { %v2215_v44 = vpop.permute.xlu1 %2214 }
0x154d   : > { %v2213_v52 = vpop.permute.xlu0 %2212 }
0x154e   : > { %v2227_v31 = vsel %vm1523_vm6, %v2223_v34, %v2213_v52  ;;  %v3834_v34 = vld [vmem:[%s5053_s10 + $0x44] ss:$8 sps:$4 sm:$0xff]   ;;  %v3837_v52 = vld [vmem:[%s5053_s10 + $0x34] ss:$8 sps:$4 sm:$0xff]  }
0x154f   : > { %v2232_v46 = vrot.slane %v2227_v31, 4  ;;  %v3840_v31 = vld [vmem:[%s5053_s10 + $0x24] ss:$8 sps:$4 sm:$0xff]  }
0x1551   : > { %v1511_v47 = vpop.permute.xlu0 %1510 }
0x1552   : > { %v1528_v2 = vsel %vm1523_vm6, %v1522_v30, %v1511_v47  ;;  %v3843_v30 = vld [vmem:[%s5053_s10 + $0x14] ss:$8 sps:$4 sm:$0xff]   ;;  %v3846_v47 = vld [vmem:[%s5053_s10 + $0x4] ss:$8 sps:$4 sm:$0xff]  }
0x1553   : > { %v2237_v11 = vsel %vm933_vm3, %v1528_v2, %v2232_v46 }
0x1554   : > { %3654 = vmatmul.mubr.bf16.gmra.mxu1 %v2237_v11 }
0x1555   : > { %v2209_v38 = vpop.permute.xlu0 %2208  ;;  %3657 = vmatprep.mubr.msk.bf16.mxu1 %vm4268_vm1, %v4266_v57 }
0x1556   : > { %v2225_v9 = vsel %vm1518_vm5, %v2221_v40, %v2209_v38 }
0x1557   : > { %v2229_v0 = vsel %vm1523_vm6, %v2225_v9, %v2215_v44 }
0x1558   : > { %v2233_v20 = vrot.slane %v2229_v0, 4 }
0x155a   : > { %v2234_v35 = vsel %vm933_vm3, %v2232_v46, %v2233_v20  ;;  %v3841_v46 = vld [vmem:[%s5053_s10 + $0x10] ss:$8 sps:$4 sm:$0xff]  }
0x155c   : > { %3658 = vmatmul.mubr.bf16.gmra.mxu1 %v2234_v35 }
0x1584   : > { %v2382_v15 = vpop.xlane.xlu1 %2381 }
0x1585   : > { %v2392_v41 = vmul.f32 0.0078125, %v2382_v15 }
0x1587   : > { %v5039_v7 = vsub.f32 %v4996_v16, %v2392_v41 }
0x1589   : > { %v2404_v18 = vmul.f32 %v5039_v7, %v5039_v7 }
0x158b   : > { %v2380_v27 = vpop.xlane.xlu0 %2379 }
0x158c   : > { %v2391_v48 = vmul.f32 0.0078125, %v2380_v27 }
0x158e   : > { %v5032_v42 = vsub.f32 %v5000_v17, %v2391_v48 }
0x1590   : > { %v2403_v14 = vmul.f32 %v5032_v42, %v5032_v42 }
0x1614   : > { %v2348_v8 = vpop.f32.mrf.mxu1 }
0x1615   : > { %v2365_v24 = vadd.f32 %v4009_v1, %v2348_v8 }
0x1616   : > { %v3655_v26 = vpop.f32.mrf.mxu1 }
0x1617   : > { %v5024_v59 = vadd.f32 %v4993_v3, %v2365_v24 }
0x1618   : > { %v2351_v32 = vpop.f32.mrf.mxu1 }
0x1619   : > { %v2366_v57 = vadd.f32 %v4010_v43, %v2351_v32  ;;  %2383 = vadd.xlane.f32.xlu0 %v5024_v59 }
0x161a   : > { %v3656_v33 = vpop.f32.mrf.mxu1 }
0x161b   : > { %v5028_v49 = vadd.f32 %v4993_v3, %v2366_v57 }
0x161c   : > { %v2356_v10 = vpop.f32.mrf.mxu1 }
0x161d   : > { %v2367_v45 = vadd.f32 %v4011_v28, %v2356_v10  ;;  %2385 = vadd.xlane.f32.xlu0 %v5028_v49 }
0x161e   : > { %v3659_v39 = vpop.f32.mrf.mxu1 }
0x161f   : > { %v5035_v23 = vadd.f32 %v4993_v3, %v2367_v45  ;;  %v4013_v45 = vld [vmem:[%s4538_s3] sm:$0xf] }
0x1620   : > { %v2359_v50 = vpop.f32.mrf.mxu1  ;;  %v5095_v39 = vrot.slane %v4013_v45, %v4569_v5 }
0x1621   : > { %v2368_v61 = vadd.f32 %v4012_v51, %v2359_v50  ;;  %2387 = vadd.xlane.f32.xlu0 %v5035_v23  ;;  %v2457_v50 = vsub.s32 3, %v4532_v54 }
0x1622   : > { %v3660_v62 = vpop.f32.mrf.mxu1 }
0x1623   : > { %v5042_v12 = vadd.f32 %v4993_v3, %v2368_v61  ;;  %v3825_v3 = vld [vmem:[%s5053_s10 + $0x74] ss:$8 sps:$4 sm:$0xff]  }
0x1624   : > { %2580 = vmatprep.subr.bf16.mxu0 %v3825_v3 }
0x1625   : > { %2389 = vadd.xlane.f32.xlu1 %v5042_v12  ;;  %2409 = vadd.xlane.f32.xlu0 %v2403_v14  ;;  %v5103_v14 = vrot.slane %v4013_v45, %v2457_v50 }
0x1626   : > { %2581 = vmatpush1.bf16.msra.mxu0 %v3823_v63 }
0x1627   : > { %2582 = vmatprep.subr.bf16.mxu0 %v3828_v53  ;;  %v3848_v53 = vld [vmem:[%s5059_s18 + $0x38] sm:$0xff]  }
0x1629   : > { %2411 = vadd.xlane.f32.xlu1 %v2404_v18 }
0x162a   : > { %2583 = vmatpush1.bf16.msra.mxu0 %v3826_v56  ;;  %v3849_v56 = vld [vmem:[%s5059_s18 + $0x70] sm:$0xff]  }
0x162b   : > { %2584 = vmatprep.subr.bf16.mxu0 %v3831_v58  ;;  %v3850_v58 = vld [vmem:[%s5059_s18 + $0x30] sm:$0xff]  }
0x162e   : > { %2585 = vmatpush1.bf16.msra.mxu0 %v3829_v13  ;;  %v3851_v13 = vld [vmem:[%s5059_s18 + $0x68] sm:$0xff]  }
0x162f   : > { %2586 = vmatprep.subr.bf16.mxu0 %v3834_v34  ;;  %v3853_v34 = vld [vmem:[%s5059_s18 + $0x60] sm:$0xff]  }
0x1632   : > { %2587 = vmatpush1.bf16.msra.mxu0 %v3832_v29  ;;  %v3852_v29 = vld [vmem:[%s5059_s18 + $0x28] sm:$0xff]  }
0x1633   : > { %2588 = vmatprep.subr.bf16.mxu0 %v3837_v52  ;;  %v3854_v52 = vld [vmem:[%s5059_s18 + $0x20] sm:$0xff]  }
0x1636   : > { %2589 = vmatpush1.bf16.msra.mxu0 %v3835_v19  ;;  %v3855_v19 = vld [vmem:[%s5059_s18 + $0x58] sm:$0xff]  }
0x1637   : > { %2590 = vmatprep.subr.bf16.mxu0 %v3840_v31  ;;  %v3856_v31 = vld [vmem:[%s5059_s18 + $0x18] sm:$0xff]  }
0x163a   : > { %2591 = vmatpush1.bf16.msra.mxu0 %v3838_v21  ;;  %v3857_v21 = vld [vmem:[%s5059_s18 + $0x50] sm:$0xff]  }
0x163b   : > { %2592 = vmatprep.subr.bf16.mxu0 %v3843_v30  ;;  %v3858_v30 = vld [vmem:[%s5059_s18 + $0x10] sm:$0xff]  }
0x163e   : > { %2593 = vmatpush1.bf16.msra.mxu0 %v3841_v46  ;;  %v3859_v46 = vld [vmem:[%s5059_s18 + $0x48] sm:$0xff]  }
0x163f   : > { %2594 = vmatprep.subr.bf16.mxu0 %v3846_v47  ;;  %v3860_v47 = vld [vmem:[%s5059_s18 + $0x8] sm:$0xff]  }
0x1642   : > { %2595 = vmatpush1.bf16.msra.mxu0 %v3844_v37 }
0x16a2   : > { %v2384_v2 = vpop.xlane.xlu0 %2383 }
0x16a3   : > { %v2393_v6 = vmul.f32 0.0078125, %v2384_v2  ;;  %v3861_v2 = vld [vmem:[%s5059_s18 + $0x40] sm:$0xff]  }
0x16a5   : > { %v5074_v11 = vsub.f32 %v5024_v59, %v2393_v6  ;;  %v3862_v6 = vld [vmem:[%s5059_s18] sm:$0xff]  }
0x16a6   : > { %v2386_v40 = vpop.xlane.xlu0 %2385 }
0x16a7   : > { %v2394_v38 = vmul.f32 0.0078125, %v2386_v40  ;;  %v2405_v44 = vmul.f32 %v5074_v11, %v5074_v11 }
0x16a9   : > { %v5079_v9 = vsub.f32 %v5028_v49, %v2394_v38  ;;  %2413 = vadd.xlane.f32.xlu0 %v2405_v44 }
0x16aa   : > { %v2388_v0 = vpop.xlane.xlu0 %2387 }
0x16ab   : > { %v2395_v20 = vmul.f32 0.0078125, %v2388_v0  ;;  %v2406_v35 = vmul.f32 %v5079_v9, %v5079_v9 }
0x16ad   : > { %v5084_v8 = vsub.f32 %v5035_v23, %v2395_v20  ;;  %2415 = vadd.xlane.f32.xlu1 %v2406_v35 }
0x16ae   : > { %v2390_v1 = vpop.xlane.xlu1 %2389  ;;  %v2410_v24 = vpop.xlane.xlu0 %2409 }
0x16af   : > { %v2396_v26 = vmul.f32 0.0078125, %v2390_v1  ;;  %v2421_v27 = vmul.f32 0.0078125, %v2410_v24  ;;  %v2407_v32 = vmul.f32 %v5084_v8, %v5084_v8 }
0x16b1   : > { %v5089_v43 = vsub.f32 %v5042_v12, %v2396_v26  ;;  %v2427_v57 = vadd.f32 1e-12, %v2421_v27  ;;  %2417 = vadd.xlane.f32.xlu0 %v2407_v32 }
0x16b2   : > { %v2412_v33 = vpop.xlane.xlu1 %2411 }
0x16b3   : > { %3971 = vrsqrt.f32 %v2427_v57  ;;  %v2422_v48 = vmul.f32 0.0078125, %v2412_v33  ;;  %v2408_v15 = vmul.f32 %v5089_v43, %v5089_v43 }
0x16b5   : > { %v2428_v10 = vadd.f32 1e-12, %v2422_v48  ;;  %2419 = vadd.xlane.f32.xlu1 %v2408_v15 }
0x16b7   : > { %3973 = vrsqrt.f32 %v2428_v10 }
0x16c0   : > { %v3972_v28 = vpop.eup %3971 }
0x16c1   : > { %v2439_v41 = vmul.f32 %v3972_v28, %v5032_v42 }
0x16c3   : > { %v2449_v62 = vmul.f32 %v5095_v39, %v2439_v41 }
0x16c4   : > { %v3974_v51 = vpop.eup %3973 }
0x16c5   : > { %v2440_v61 = vmul.f32 %v3974_v51, %v5039_v7  ;;  %v2459_v3 = vadd.f32 %v5103_v14, %v2449_v62  ;;  %v3847_v7 = vld [vmem:[%s5059_s18 + $0x78] sm:$0xff]  }
0x16c6   : > { %3434 = vmatprep.subr.bf16.mxu1 %v3847_v7 }
0x16c7   : > { %v2450_v18 = vmul.f32 %v5095_v39, %v2440_v61  ;;  %3435 = vmatpush3.bf16.msra.mxu1 %v3848_v53 }
0x16c8   : > { %3436 = vmatprep.subr.bf16.mxu1 %v3849_v56 }
0x16c9   : > { %v2460_v42 = vadd.f32 %v5103_v14, %v2450_v18 }
0x16cb   : > { %v2465_v63 = vpack.c.bf16 %v2460_v42, %v2459_v3  ;;  %3437 = vmatpush3.bf16.msra.mxu1 %v3850_v58 }
0x16cc   : > { %3438 = vmatprep.subr.bf16.mxu1 %v3851_v13 }
0x16cd   : > { %2613 = vmatmul.mubr.bf16.vlgmr.msra.gmra.mxu0 %v2465_v63 }
0x16ce   : > { %2622 = vmatprep.mubr.bf16.mxu0 %v4267_v36 }
0x16cf   : > { %3439 = vmatpush3.bf16.msra.mxu1 %v3852_v29 }
0x16d0   : > { %3440 = vmatprep.subr.bf16.mxu1 %v3853_v34 }
0x16d3   : > { %3441 = vmatpush3.bf16.msra.mxu1 %v3854_v52 }
0x16d4   : > { %3442 = vmatprep.subr.bf16.mxu1 %v3855_v19 }
0x16d7   : > { %3443 = vmatpush3.bf16.msra.mxu1 %v3856_v31 }
0x16d8   : > { %3444 = vmatprep.subr.bf16.mxu1 %v3857_v21 }
0x16db   : > { %3445 = vmatpush3.bf16.msra.mxu1 %v3858_v30 }
0x16dc   : > { %3446 = vmatprep.subr.bf16.mxu1 %v3859_v46 }
0x16df   : > { %3447 = vmatpush3.bf16.msra.mxu1 %v3860_v47 }
0x16e0   : > { %3448 = vmatprep.subr.bf16.mxu1 %v3861_v2 }
0x16e3   : > { %3449 = vmatpush3.bf16.msra.mxu1 %v3862_v6 }
0x1732   : > { %v2414_v37 = vpop.xlane.xlu0 %2413 }
0x1733   : > { %v2423_v40 = vmul.f32 0.0078125, %v2414_v37 }
0x1735   : > { %v2429_v38 = vadd.f32 1e-12, %v2423_v40 }
0x1736   : > { %v2416_v44 = vpop.xlane.xlu1 %2415 }
0x1737   : > { %3975 = vrsqrt.f32 %v2429_v38  ;;  %v2424_v0 = vmul.f32 0.0078125, %v2416_v44 }
0x1739   : > { %v2430_v20 = vadd.f32 1e-12, %v2424_v0 }
0x173a   : > { %v2418_v35 = vpop.xlane.xlu0 %2417 }
0x173b   : > { %3977 = vrsqrt.f32 %v2430_v20  ;;  %v2425_v1 = vmul.f32 0.0078125, %v2418_v35 }
0x173d   : > { %v2431_v24 = vadd.f32 1e-12, %v2425_v1 }
0x173e   : > { %v2420_v26 = vpop.xlane.xlu1 %2419 }
0x173f   : > { %3979 = vrsqrt.f32 %v2431_v24  ;;  %v2426_v27 = vmul.f32 0.0078125, %v2420_v26 }
0x1741   : > { %v2432_v32 = vadd.f32 1e-12, %v2426_v27 }
0x1743   : > { %3981 = vrsqrt.f32 %v2432_v32 }
0x1744   : > { %v3976_v57 = vpop.eup %3975 }
0x1745   : > { %v2441_v33 = vmul.f32 %v3976_v57, %v5074_v11 }
0x1747   : > { %v2451_v10 = vmul.f32 %v5095_v39, %v2441_v33 }
0x1748   : > { %v3978_v48 = vpop.eup %3977 }
0x1749   : > { %v2442_v15 = vmul.f32 %v3978_v48, %v5079_v9  ;;  %v2461_v41 = vadd.f32 %v5103_v14, %v2451_v10 }
0x174b   : > { %v2452_v28 = vmul.f32 %v5095_v39, %v2442_v15 }
0x174c   : > { %v3980_v45 = vpop.eup %3979 }
0x174d   : > { %v2462_v51 = vadd.f32 %v5103_v14, %v2452_v28  ;;  %v2443_v61 = vmul.f32 %v3980_v45, %v5084_v8  ;;  %v2488_v8 = vld [vmem:[%s2487_s19] sm:$0x3] }
0x174e   : > { %v5141_v53 = vrot.slane %v2488_v8, %v4536_v60 }
0x174f   : > { %v2466_v62 = vpack.c.bf16 %v2462_v51, %v2461_v41  ;;  %v2453_v3 = vmul.f32 %v5095_v39, %v2443_v61 }
0x1750   : > { %v3982_v18 = vpop.eup %3981 }
0x1751   : > { %2623 = vmatmul.mubr.bf16.gmra.mxu0 %v2466_v62  ;;  %v2444_v11 = vmul.f32 %v3982_v18, %v5089_v43  ;;  %v2463_v42 = vadd.f32 %v5103_v14, %v2453_v3  ;;  %v5144_v43 = vrot.slane %v2488_v8, %v4544_v4 }
0x1752   : > { %2632 = vmatprep.mubr.bf16.mxu0 %v4267_v36 }
0x1753   : > { %v2454_v9 = vmul.f32 %v5095_v39, %v2444_v11 }
0x1755   : > { %v2464_v63 = vadd.f32 %v5103_v14, %v2454_v9 }
0x1757   : > { %v2467_v7 = vpack.c.bf16 %v2464_v63, %v2463_v42 }
0x1759   : > { %2633 = vmatmul.mubr.bf16.gmra.mxu0 %v2467_v7 }
0x178d   : > { %v2614_v56 = vpop.f32.mrf.mxu0 }
0x178e   : > { %v2615_v36 = vadd.f32 %v2614_v56, %v5141_v53 }
0x178f   : > { %v2616_v58 = vpop.f32.mrf.mxu0 }
0x1790   : > { %v2643_v39 = vmul.f32 %v2615_v36, %v2615_v36  ;;  %v2617_v13 = vadd.f32 %v2616_v58, %v5144_v43 }
0x1791   : > { %v2618_v29 = vpop.f32.mrf.mxu0 }
0x1792   : > { %v2655_v14 = vmul.f32 %v2643_v39, %v2615_v36  ;;  %v2644_v34 = vmul.f32 %v2617_v13, %v2617_v13  ;;  %v2619_v52 = vadd.f32 %v2618_v29, %v5141_v53 }
0x1793   : > { %v2620_v19 = vpop.f32.mrf.mxu0 }
0x1794   : > { %v2667_v31 = vmul.f32 0.044715, %v2655_v14  ;;  %v2656_v21 = vmul.f32 %v2644_v34, %v2617_v13  ;;  %v2645_v30 = vmul.f32 %v2619_v52, %v2619_v52  ;;  %v2621_v46 = vadd.f32 %v2620_v19, %v5144_v43 }
0x1796   : > { %v2679_v47 = vadd.f32 %v2667_v31, %v2615_v36  ;;  %v2668_v37 = vmul.f32 0.044715, %v2656_v21  ;;  %v2657_v2 = vmul.f32 %v2645_v30, %v2619_v52  ;;  %v2646_v6 = vmul.f32 %v2621_v46, %v2621_v46 }
0x1798   : > { %v2691_v40 = vmul.f32 0.7978846, %v2679_v47  ;;  %v2680_v38 = vadd.f32 %v2668_v37, %v2617_v13  ;;  %v2669_v44 = vmul.f32 0.044715, %v2657_v2  ;;  %v2658_v0 = vmul.f32 %v2646_v6, %v2621_v46 }
0x179a   : > { %v2692_v20 = vmul.f32 0.7978846, %v2680_v38  ;;  %v2681_v35 = vadd.f32 %v2669_v44, %v2619_v52  ;;  %v2670_v1 = vmul.f32 0.044715, %v2658_v0  ;;  %3983 = vtanh.f32 %v2691_v40 }
0x179c   : > { %3985 = vtanh.f32 %v2692_v20  ;;  %v2693_v24 = vmul.f32 0.7978846, %v2681_v35  ;;  %v2682_v26 = vadd.f32 %v2670_v1, %v2621_v46 }
0x179e   : > { %3987 = vtanh.f32 %v2693_v24  ;;  %v2694_v27 = vmul.f32 0.7978846, %v2682_v26 }
0x17a0   : > { %3989 = vtanh.f32 %v2694_v27 }
0x17a7   : > { %v3984_v32 = vpop.eup %3983 }
0x17a8   : > { %v2715_v15 = vadd.f32 1.0, %v3984_v32 }
0x17a9   : > { %v3986_v57 = vpop.eup %3985 }
0x17aa   : > { %v2716_v33 = vadd.f32 1.0, %v3986_v57  ;;  %v2727_v61 = vmul.f32 0.5, %v2715_v15 }
0x17ab   : > { %v3988_v48 = vpop.eup %3987 }
0x17ac   : > { %v2717_v10 = vadd.f32 1.0, %v3988_v48  ;;  %v2728_v51 = vmul.f32 0.5, %v2716_v33  ;;  %v2739_v9 = vmul.f32 %v2727_v61, %v2615_v36 }
0x17ad   : > { %v3990_v28 = vpop.eup %3989 }
0x17ae   : > { %v2729_v45 = vmul.f32 0.5, %v2717_v10  ;;  %v2718_v41 = vadd.f32 1.0, %v3990_v28  ;;  %v2740_v11 = vmul.f32 %v2728_v51, %v2617_v13 }
0x17b0   : > { %v2730_v62 = vmul.f32 0.5, %v2718_v41  ;;  %v2741_v18 = vmul.f32 %v2729_v45, %v2619_v52 }
0x17b2   : > { %v2742_v3 = vmul.f32 %v2730_v62, %v2621_v46  ;;  %v2751_v63 = vpack.c.bf16 %v2741_v18, %v2739_v9 }
0x17b4   : > { %v2752_v42 = vpack.c.bf16 %v2742_v3, %v2740_v11 }
0x17b6   : > { %2919 = vmatprep.mubr.bf16.mxu1 %v2752_v42 }
0x17b7   : > { %2920 = vmatmul.mubr.bf16.vlgmr.msra.gmra.mxu1 %v2751_v63 }
0x1811   : > { %v2624_v7 = vpop.f32.mrf.mxu0 }
0x1812   : > { %v5151_v8 = vadd.f32 %v2624_v7, %v5141_v53 }
0x1813   : > { %v2626_v56 = vpop.f32.mrf.mxu0 }
0x1814   : > { %v2647_v58 = vmul.f32 %v5151_v8, %v5151_v8  ;;  %v5156_v39 = vadd.f32 %v2626_v56, %v5144_v43 }
0x1815   : > { %v2628_v29 = vpop.f32.mrf.mxu0 }
0x1816   : > { %v2659_v13 = vmul.f32 %v2647_v58, %v5151_v8  ;;  %v2648_v36 = vmul.f32 %v5156_v39, %v5156_v39  ;;  %v5162_v14 = vadd.f32 %v2628_v29, %v5141_v53 }
0x1817   : > { %v2630_v34 = vpop.f32.mrf.mxu0 }
0x1818   : > { %v2671_v52 = vmul.f32 0.044715, %v2659_v13  ;;  %v2660_v19 = vmul.f32 %v2648_v36, %v5156_v39  ;;  %v2649_v31 = vmul.f32 %v5162_v14, %v5162_v14  ;;  %v5168_v21 = vadd.f32 %v2630_v34, %v5144_v43 }
0x1819   : > { %v2634_v30 = vpop.f32.mrf.mxu0 }
0x181a   : > { %v2683_v46 = vadd.f32 %v2671_v52, %v5151_v8  ;;  %v2672_v47 = vmul.f32 0.044715, %v2660_v19  ;;  %v2661_v37 = vmul.f32 %v2649_v31, %v5162_v14  ;;  %v2650_v2 = vmul.f32 %v5168_v21, %v5168_v21 }
0x181b   : > { %v5175_v6 = vadd.f32 %v2634_v30, %v5141_v53  ;;  %v2636_v40 = vpop.f32.mrf.mxu0 }
0x181c   : > { %v2695_v38 = vmul.f32 0.7978846, %v2683_v46  ;;  %v2684_v44 = vadd.f32 %v2672_v47, %v5156_v39  ;;  %v2673_v0 = vmul.f32 0.044715, %v2661_v37  ;;  %v2662_v20 = vmul.f32 %v2650_v2, %v5168_v21 }
0x181d   : > { %v2651_v35 = vmul.f32 %v5175_v6, %v5175_v6  ;;  %v5182_v1 = vadd.f32 %v2636_v40, %v5144_v43  ;;  %v2638_v24 = vpop.f32.mrf.mxu0 }
0x181e   : > { %v2696_v26 = vmul.f32 0.7978846, %v2684_v44  ;;  %v2685_v27 = vadd.f32 %v2673_v0, %v5162_v14  ;;  %v2674_v32 = vmul.f32 0.044715, %v2662_v20  ;;  %3991 = vtanh.f32 %v2695_v38 }
0x181f   : > { %v2663_v57 = vmul.f32 %v2651_v35, %v5175_v6  ;;  %v2652_v33 = vmul.f32 %v5182_v1, %v5182_v1  ;;  %v2639_v48 = vadd.f32 %v2638_v24, %v5141_v53  ;;  %v2640_v15 = vpop.f32.mrf.mxu0 }
0x1820   : > { %3993 = vtanh.f32 %v2696_v26  ;;  %v2697_v10 = vmul.f32 0.7978846, %v2685_v27  ;;  %v2686_v28 = vadd.f32 %v2674_v32, %v5168_v21  ;;  %v2641_v45 = vadd.f32 %v2640_v15, %v5144_v43 }
0x1821   : > { %v2675_v41 = vmul.f32 0.044715, %v2663_v57  ;;  %v2664_v51 = vmul.f32 %v2652_v33, %v5182_v1  ;;  %v2653_v61 = vmul.f32 %v2639_v48, %v2639_v48 }
0x1822   : > { %3995 = vtanh.f32 %v2697_v10  ;;  %v2698_v62 = vmul.f32 0.7978846, %v2686_v28  ;;  %v2654_v18 = vmul.f32 %v2641_v45, %v2641_v45 }
0x1823   : > { %v2687_v11 = vadd.f32 %v2675_v41, %v5175_v6  ;;  %v2676_v3 = vmul.f32 0.044715, %v2664_v51  ;;  %v2665_v9 = vmul.f32 %v2653_v61, %v2639_v48 }
0x1824   : > { %3997 = vtanh.f32 %v2698_v62  ;;  %v2666_v53 = vmul.f32 %v2654_v18, %v2641_v45 }
0x1825   : > { %v2699_v42 = vmul.f32 0.7978846, %v2687_v11  ;;  %v2688_v63 = vadd.f32 %v2676_v3, %v5182_v1  ;;  %v2677_v7 = vmul.f32 0.044715, %v2665_v9 }
0x1826   : > { %v2678_v56 = vmul.f32 0.044715, %v2666_v53 }
0x1827   : > { %3999 = vtanh.f32 %v2699_v42  ;;  %v2700_v43 = vmul.f32 0.7978846, %v2688_v63  ;;  %v2689_v58 = vadd.f32 %v2677_v7, %v2639_v48  ;;  %v2953_v7 = vrot.slane %v4989_v55, %v4544_v4 }
0x1828   : > { %v2690_v29 = vadd.f32 %v2678_v56, %v2641_v45 }
0x1829   : > { %4001 = vtanh.f32 %v2700_v43  ;;  %v2701_v13 = vmul.f32 0.7978846, %v2689_v58 }
0x182a   : > { %v2702_v36 = vmul.f32 0.7978846, %v2690_v29 }
0x182b   : > { %4003 = vtanh.f32 %v2701_v13  ;;  %v3992_v34 = vpop.eup %3991 }
0x182c   : > { %4005 = vtanh.f32 %v2702_v36  ;;  %v2719_v30 = vadd.f32 1.0, %v3992_v34 }
0x182d   : > { %v3994_v52 = vpop.eup %3993 }
0x182e   : > { %v2720_v19 = vadd.f32 1.0, %v3994_v52  ;;  %v2731_v38 = vmul.f32 0.5, %v2719_v30 }
0x182f   : > { %v3996_v31 = vpop.eup %3995 }
0x1830   : > { %v2721_v46 = vadd.f32 1.0, %v3996_v31  ;;  %v2732_v2 = vmul.f32 0.5, %v2720_v19  ;;  %v2743_v27 = vmul.f32 %v2731_v38, %v5151_v8 }
0x1831   : > { %v3998_v47 = vpop.eup %3997 }
0x1832   : > { %v2722_v37 = vadd.f32 1.0, %v3998_v47  ;;  %v2733_v40 = vmul.f32 0.5, %v2721_v46  ;;  %v2744_v24 = vmul.f32 %v2732_v2, %v5156_v39 }
0x1834   : > { %v4000_v44 = vpop.eup %3999  ;;  %v2734_v0 = vmul.f32 0.5, %v2722_v37  ;;  %v2745_v20 = vmul.f32 %v2733_v40, %v5162_v14 }
0x1835   : > { %v2723_v57 = vadd.f32 1.0, %v4000_v44 }
0x1836   : > { %v4002_v35 = vpop.eup %4001  ;;  %v2746_v26 = vmul.f32 %v2734_v0, %v5168_v21  ;;  %v2753_v28 = vpack.c.bf16 %v2745_v20, %v2743_v27 }
0x1837   : > { %v2724_v32 = vadd.f32 1.0, %v4002_v35  ;;  %v2735_v62 = vmul.f32 0.5, %v2723_v57 }
0x1838   : > { %v4004_v33 = vpop.eup %4003  ;;  %v2754_v15 = vpack.c.bf16 %v2746_v26, %v2744_v24 }
0x1839   : > { %v4006_v10 = vpop.eup %4005  ;;  %v2725_v41 = vadd.f32 1.0, %v4004_v33  ;;  %v2736_v61 = vmul.f32 0.5, %v2724_v32  ;;  %v2747_v8 = vmul.f32 %v2735_v62, %v5175_v6 }
0x183a   : > { %2927 = vmatprep.mubr.bf16.mxu1 %v2754_v15  ;;  %v2726_v51 = vadd.f32 1.0, %v4006_v10 }
0x183b   : > { %2928 = vmatmul.mubr.bf16.gmra.mxu1 %v2753_v28  ;;  %v2737_v14 = vmul.f32 0.5, %v2725_v41  ;;  %v2748_v39 = vmul.f32 %v2736_v61, %v5182_v1 }
0x183c   : > { %v2738_v18 = vmul.f32 0.5, %v2726_v51  ;;  %v2997_v51 = vrot.slane (%p413_p3), %v2966_v22, %v4544_v4  ;;  %v4016_v4 = vld [vmem:[#allocation17 + $0x28] sm:$0xff] (%p413_p3)  }
0x183d   : > { %v2749_v11 = vmul.f32 %v2737_v14, %v2639_v48 }
0x183e   : > { %v2750_v21 = vmul.f32 %v2738_v18, %v2641_v45  ;;  %v4014_v18 = vld [vmem:[#allocation17 + $0x38] sm:$0xff] (%p413_p3)  }
0x183f   : > { %v2755_v9 = vpack.c.bf16 %v2749_v11, %v2747_v8  ;;  %v4272_v11 = vmov (%p413_p3), 0.0  }
0x1840   : > { %v2756_v3 = vpack.c.bf16 %v2750_v21, %v2748_v39  ;;  %3661 = vmatprep.subr.bf16.mxu0 (%p413_p3), %v4272_v11  ;;  %v4015_v39 = vld [vmem:[#allocation17 + $0x30] sm:$0xff] (%p413_p3)   ;;  %3677 = vmatprep.mubr.msk.bf16.mxu0 (%p413_p3), %vm4273_vm9, %v4272_v11 }
0x1841   :  { %3662 = vmatpush3.bf16.msra.mxu0 (%p413_p3), %v4014_v18 }
0x1842   : > { %2935 = vmatprep.mubr.bf16.mxu1 %v2756_v3  ;;  %3663 = vmatprep.subr.bf16.mxu0 (%p413_p3), %v4272_v11 }
0x1843   : > { %2936 = vmatmul.mubr.bf16.gmra.mxu1 %v2755_v9 }
0x1845   :  { %3664 = vmatpush3.bf16.msra.mxu0 (%p413_p3), %v4015_v39 }
0x1846   :  { %3665 = vmatprep.subr.bf16.mxu0 (%p413_p3), %v4272_v11 }
0x1849   :  { %3666 = vmatpush3.bf16.msra.mxu0 (%p413_p3), %v4016_v4 }
0x184a   :  { %3667 = vmatprep.subr.bf16.mxu0 (%p413_p3), %v4272_v11 }
0x1877   : > { %v3450_v53 = vpop.f32.mrf.mxu1 }
0x1879   : > { %v3451_v42 = vpop.f32.mrf.mxu1 }
0x187a   : > { %v3452_v63 = vadd.f32 %v3451_v42, %v3450_v53  ;;  %v4017_v53 = vld [vmem:[#allocation17 + $0x20] sm:$0xff] (%p413_p3)   ;;  %v4018_v42 = vld [vmem:[#allocation17 + $0x18] sm:$0xff] (%p413_p3)  }
0x187b   : > { %v3453_v56 = vpop.f32.mrf.mxu1  ;;  %3668 = vmatpush3.bf16.msra.mxu0 (%p413_p3), %v4017_v53 }
0x187c   : > { %v2944_v43 = vadd.f32 %v3452_v63, %v5000_v17  ;;  %3669 = vmatprep.subr.bf16.mxu0 (%p413_p3), %v4272_v11  ;;  %v4019_v63 = vld [vmem:[#allocation17 + $0x10] sm:$0xff] (%p413_p3)  }
0x187d   : > { %v3454_v58 = vpop.f32.mrf.mxu1 }
0x187e   : > { %v2954_v48 = vadd.f32 %v2953_v7, %v2944_v43  ;;  %v3455_v29 = vadd.f32 %v3454_v58, %v3453_v56  ;;  %v4021_v56 = vld [vmem:[#allocation17] sm:$0xff] (%p413_p3)  }
0x187f   :  { %3670 = vmatpush3.bf16.msra.mxu0 (%p413_p3), %v4018_v42 }
0x1880   : > { %2960 = vst [vmem:[#allocation2 + $0x28] sm:$0xff] %v2954_v48  ;;  %v2945_v1 = vadd.f32 %v3455_v29, %v4996_v16  ;;  %3671 = vmatprep.subr.bf16.mxu0 (%p413_p3), %v4272_v11  ;;  %v3015_v29 = vrot.slane (%p413_p3), %v2966_v22, %v4569_v5 }
0x1882   : > { %v2955_v6 = vadd.f32 %v2953_v7, %v2945_v1 }
0x1883   :  { %3672 = vmatpush3.bf16.msra.mxu0 (%p413_p3), %v4019_v63 }
0x1884   : > { %2961 = vst [vmem:[#allocation2 + $0x10] sm:$0xff] %v2955_v6  ;;  %3673 = vmatprep.subr.bf16.mxu0 (%p413_p3), %v4272_v11 }
0x18fb   : > { %v3456_v45 = vpop.f32.mrf.mxu1 }
0x18fd   : > { %v3457_v13 = vpop.f32.mrf.mxu1 }
0x18fe   : > { %v3458_v36 = vadd.f32 %v3457_v13, %v3456_v45  ;;  %v3020_v45 = vrot.slane (%p413_p3), %v2966_v22, %v2457_v50 }
0x18ff   : > { %v3459_v34 = vpop.f32.mrf.mxu1 }
0x1900   : > { %v2946_v52 = vadd.f32 %v3458_v36, %v5024_v59 }
0x1901   : > { %v3460_v19 = vpop.f32.mrf.mxu1 }
0x1902   : > { %v2956_v31 = vadd.f32 %v2953_v7, %v2946_v52  ;;  %v3461_v55 = vadd.f32 %v3460_v19, %v3459_v34  ;;  %v3301_v52 = vld [vmem:[%s5242_s13] ss:$0 sm:$0xff] (%p413_p3) }
0x1903   : > { %v3462_v30 = vpop.f32.mrf.mxu1 }
0x1904   : > { %2962 = vst [vmem:[#allocation2 + $0x8] sm:$0xff] %v2956_v31  ;;  %v2947_v17 = vadd.f32 %v3461_v55, %v5028_v49  ;;  %v2967_v49 = vld [vmem:[#allocation2 + $0x28] sm:$0x1] (%p413_p3) }
0x1905   : > { %v3463_v46 = vpop.f32.mrf.mxu1 }
0x1906   : > { %v2957_v47 = vadd.f32 %v2953_v7, %v2947_v17  ;;  %v3464_v37 = vadd.f32 %v3463_v46, %v3462_v30 }
0x1907   : > { %v3465_v2 = vpop.f32.mrf.mxu1 }
0x1908   : > { %2963 = vst [vmem:[#allocation2] sm:$0xff] %v2957_v47  ;;  %v2948_v16 = vadd.f32 %v3464_v37, %v5035_v23 }
0x1909   : > { %v3466_v40 = vpop.f32.mrf.mxu1 }
0x190a   : > { %v2958_v38 = vadd.f32 %v2953_v7, %v2948_v16  ;;  %v3467_v44 = vadd.f32 %v3466_v40, %v3465_v2 }
0x190c   : > { %2964 = vst [vmem:[#allocation2 + $0x18] sm:$0xff] %v2958_v38  ;;  %v2949_v59 = vadd.f32 %v3467_v44, %v5042_v12 }
0x190e   : > { %v2959_v0 = vadd.f32 %v2953_v7, %v2949_v59  ;;  %v4020_v7 = vld [vmem:[#allocation17 + $0x8] sm:$0xff] (%p413_p3)  }
0x190f   :  { %415 = sbr.rel (!%p413_p3) target bundleno = 355 (0x163), region = 127  ;;  %v2968_v20 = vld [vmem:[#allocation2] sm:$0x1] (%p413_p3)  ;;  %3674 = vmatpush3.bf16.msra.mxu0 (%p413_p3), %v4020_v7 }
0x1910   : > { %2965 = vst [vmem:[#allocation2 + $0x20] sm:$0xff] %v2959_v0  ;;  %v2970_v35 = vrot.slane (%p413_p3), %v2968_v20, 7  ;;  %3675 = vmatprep.subr.bf16.mxu0 (%p413_p3), %v4272_v11 }
0x1912   :  { %v2973_v23 = vsel (%p413_p3), %vm2972_vm7, %v2967_v49, %v2970_v35 }
0x1913   :  { %v2975_v24 = vsel (%p413_p3), %vm2974_vm8, %v2973_v23, 0.0  ;;  %3676 = vmatpush3.bf16.msra.mxu0 (%p413_p3), %v4021_v56 }
0x1914   :  { %2976 = vadd.xlane.f32.xlu0 %v2975_v24 }
0x199d   :  { %v2977_v26 = vpop.xlane.xlu0 %2976 }
0x199e   :  { %v2979_v27 = vmul.f32 0.0078125, %v2977_v26 }
0x19a0   :  { %v2980_v12 = vsub.f32 %v2973_v23, %v2979_v27 }
0x19a2   :  { %v2981_v32 = vmul.f32 %v2980_v12, %v2980_v12 }
0x19a4   :  { %v2982_v57 = vsel %vm2974_vm8, %v2981_v32, 0.0 }
0x19a5   :  { %2983 = vadd.xlane.f32.xlu0 %v2982_v57 }
0x1a2e   :  { %v2984_v33 = vpop.xlane.xlu0 %2983 }
0x1a2f   :  { %v2985_v15 = vmul.f32 0.0078125, %v2984_v33 }
0x1a31   :  { %v2986_v10 = vadd.f32 1e-12, %v2985_v15 }
0x1a33   :  { %4022 = vrsqrt.f32 %v2986_v10 }
0x1a40   :  { %v4023_v28 = vpop.eup %4022 }
0x1a41   :  { %v2988_v41 = vmul.f32 %v4023_v28, %v2980_v12 }
0x1a43   :  { %v2993_v61 = vmul.f32 %v2992_v25, %v2988_v41 }
0x1a45   :  { %v2998_v62 = vadd.f32 %v2997_v51, %v2993_v61 }
0x1a47   :  { %v2999_v14 = vsel %vm2974_vm8, %v2998_v62, 0.0 }
0x1a48   :  { %3000 = vadd.xlane.f32.xlu1 %v2999_v14 }
0x1ad1   :  { %v3001_v21 = vpop.xlane.xlu1 %3000 }
0x1ad2   :  { %v3002_v8 = vmul.f32 0.0078125, %v3001_v21 }
0x1ad4   :  { %v3003_v60 = vsub.f32 %v2998_v62, %v3002_v8 }
0x1ad6   :  { %v3004_v3 = vmul.f32 %v3003_v60, %v3003_v60 }
0x1ad8   :  { %v3005_v9 = vsel %vm2974_vm8, %v3004_v3, 0.0 }
0x1ad9   :  { %3006 = vadd.xlane.f32.xlu1 %v3005_v9 }
0x1b62   :  { %v3007_v43 = vpop.xlane.xlu1 %3006 }
0x1b63   :  { %v3008_v58 = vmul.f32 0.0078125, %v3007_v43 }
0x1b65   :  { %v3009_v48 = vadd.f32 1e-05, %v3008_v58 }
0x1b67   :  { %4024 = vrsqrt.f32 %v3009_v48 }
0x1b74   :  { %v4025_v1 = vpop.eup %4024 }
0x1b75   :  { %v3011_v6 = vmul.f32 %v4025_v1, %v3003_v60 }
0x1b77   :  { %v3016_v13 = vmul.f32 %v3015_v29, %v3011_v6 }
0x1b79   :  { %v3021_v36 = vadd.f32 %v3020_v45, %v3016_v13 }
0x1b7b   :  { %v3022_v34 = vpack.c.bf16 %v3021_v36, %v3021_v36 }
0x1b7d   :  { %3678 = vmatmul.mubr.bf16.vlgmr.msra.gmra.mxu0 %v3022_v34 }
0x1c3d   :  { %v3128_v19 = vpop.f32.mrf.mxu0 }
0x1c3e   :  { %v3129_v31 = vadd.f32 %v3301_v52, %v3128_v19 }
0x1c3f   :  { %v3679_v55 = vpop.f32.mrf.mxu0 }
0x1c40   :  { %3134 = vst [vmem:[#allocation18] sm:$0x3] %v3129_v31 }
0x1c41   :  { %v3131_v5 = vpop.f32.mrf.mxu0 }
0x1c42   :  { %4217 = shalt.err (!%p4214_p8)
}
0x1c43   :  { %3144 = dma.vmem_to_hbm [thread:$0]  %s3142_s24, 32, %s5243_s14, [#allocation5]   ;;  %v3680_v54 = vpop.f32.mrf.mxu0 }
0x1c44   :  { %4240 = dma.done.wait [#allocation5], 32  }
0x1c45   :  { %4241 = vsyncadd [#allocation5], 4294967264 }
0x1c46   :  { %3148 = vsyncpa [#allocation4], 1 }
0x1c47   :  { %3149 = vsyncpa [#allocation7], 1 }
0x1c48   :  { %3150 = vsyncpa [#allocation10], 1 }
0x1c49   :  { %3151 = vsyncpa [#allocation13], 1 }
0x1c4a   :  { %3152 = vsyncpa [#allocation16], 1 }
0x1c4b   :  { %3153 = vsyncpa [#allocation5], 1 }

</bundles_post_ra>
